<compile_context>
chip_gen: v7x
topology: tpu7x:2x2x1
jax: 0.10.0
libtpu: 0.0.40
codegen_flags: <defaults>
</compile_context>

<pallas_src>
import functools

import jax
import jax.numpy as jnp
from jax.experimental import pallas as pl
from jax.experimental.pallas import tpu as pltpu

_NEG_BIG = -1e30      # masked (padded) class lanes -> exp() == 0
_LANE = 128
_SUBLANE = 8


def _round_up(n, m):
    return ((n + m - 1) // m) * m


# --------------------------------------------------------------------------- kernel

def _discriminator_kernel(x_ref, w1_ref, b1_ref, w2_ref, b2_ref, w3_ref, b3_ref,
                          o_ref, *, n_valid_class):
    """Fused 3-layer MLP + LeakyReLU(0.1) + softmax over one batch tile."""
    cdt = w1_ref.dtype                        # MXU operand dtype (f32 or bf16)
    x = x_ref[...].astype(cdt)                # cast inside kernel: no wrapper HBM pass

    h = jnp.dot(x, w1_ref[...], preferred_element_type=jnp.float32) + b1_ref[...]
    h = jnp.maximum(h, 0.1 * h)               # LeakyReLU(0.1): mul + max

    h = jnp.dot(h.astype(cdt), w2_ref[...],
                preferred_element_type=jnp.float32) + b2_ref[...]
    h = jnp.maximum(h, 0.1 * h)

    logits = jnp.dot(h.astype(cdt), w3_ref[...],
                     preferred_element_type=jnp.float32) + b3_ref[...]
    logits = jnp.maximum(logits, 0.1 * logits)

    # Mask padded class lanes (zero-padded weights/bias -> logit 0) before softmax.
    if logits.shape[1] != n_valid_class:
        lane = jax.lax.broadcasted_iota(jnp.int32, logits.shape, 1)
        logits = jnp.where(lane < n_valid_class, logits, _NEG_BIG)

    m = jnp.max(logits, axis=1, keepdims=True)
    e = jnp.exp(logits - m)
    denom = jnp.sum(e, axis=1, keepdims=True)
    o_ref[...] = (e / denom).astype(o_ref.dtype)   # exact normalization


def _batch_map(i):
    return (i, 0)


def _whole_map(i):
    return (0, 0)


# --------------------------------------------------------------------- param prep

def init_params(key, in_dim, hid_dim, n_class):
    """Raw f32 params (PyTorch-like uniform fan-in init), weights stored as [in, out]."""
    ks = jax.random.split(key, 6)

    def lin(kw, kb, fan_in, fan_out):
        bound = 1.0 / jnp.sqrt(fan_in)
        w = jax.random.uniform(kw, (fan_in, fan_out), jnp.float32, -bound, bound)
        b = jax.random.uniform(kb, (1, fan_out), jnp.float32, -bound, bound)
        return w, b

    w1, b1 = lin(ks[0], ks[1], in_dim, hid_dim)
    w2, b2 = lin(ks[2], ks[3], hid_dim, hid_dim)
    w3, b3 = lin(ks[4], ks[5], hid_dim, n_class)
    return {"w1": w1, "b1": b1, "w2": w2, "b2": b2, "w3": w3, "b3": b3}


def prepare_params(params, *, matmul_dtype=jnp.bfloat16):
    """One-time prep, hoisted off the per-call path:
      * zero-pad hid_dim and n_class up to multiples of 128 (lane-dense activations,
        full MXU tiles, unmasked output stores) -- mathematically exact,
      * cast weights to the MXU operand dtype (bf16 by default on all generations;
        v5e's MXU is bf16-native too).  Biases stay f32 (f32 epilogue)."""
    in_dim, hid_dim = params["w1"].shape
    n_class = params["w3"].shape[1]
    hid_pad = max(_LANE, _round_up(hid_dim, _LANE))
    n_pad = max(_LANE, _round_up(n_class, _LANE))

    def padw(w, rows, cols):
        return jnp.pad(w, ((0, rows - w.shape[0]), (0, cols - w.shape[1])))

    w1 = padw(params["w1"], in_dim, hid_pad)
    b1 = padw(params["b1"], 1, hid_pad)
    w2 = padw(params["w2"], hid_pad, hid_pad)
    b2 = padw(params["b2"], 1, hid_pad)
    w3 = padw(params["w3"], hid_pad, n_pad)
    b3 = padw(params["b3"], 1, n_pad)

    if matmul_dtype is not None:
        w1 = w1.astype(matmul_dtype)
        w2 = w2.astype(matmul_dtype)
        w3 = w3.astype(matmul_dtype)

    return {
        "w1": w1, "b1": b1, "w2": w2, "b2": b2, "w3": w3, "b3": b3,
        "in_dim": in_dim, "hid_pad": hid_pad, "n_pad": n_pad, "n_class": n_class,
    }


# ------------------------------------------------------------------------- wrapper

def _pick_batch_tile(n, block_batch):
    """Largest tile <= block_batch (multiple of 8) that still leaves >= 2 grid steps."""
    n8 = _round_up(max(n, 1), _SUBLANE)
    if n8 < 2 * _SUBLANE:
        bb = n8                                   # tiny batch: single full-extent block
    else:
        half = _round_up((n8 + 1) // 2, _SUBLANE)  # cap so grid >= 2 (both v7x TCs busy)
        bb = max(_SUBLANE, min(block_batch, half))
    n_rows = _round_up(n8, bb)
    return bb, n_rows


def discriminator_forward(x, prepped, *, block_batch=1024):
    """x: [N, in_dim] float32 (or bf16).  prepped: output of prepare_params()."""
    N, in_dim = x.shape
    assert in_dim == prepped["in_dim"], "input feature dim mismatch"
    hid_pad, n_pad, n_class = prepped["hid_pad"], prepped["n_pad"], prepped["n_class"]
    w1, b1 = prepped["w1"], prepped["b1"]
    w2, b2 = prepped["w2"], prepped["b2"]
    w3, b3 = prepped["w3"], prepped["b3"]

    bb, n_rows = _pick_batch_tile(N, block_batch)
    x_p = x if n_rows == N else jnp.pad(x, ((0, n_rows - N), (0, 0)))
    grid = (n_rows // bb,)

    kernel = functools.partial(_discriminator_kernel, n_valid_class=n_class)

    # ---- VMEM budget / advisory cost estimate ----
    x_item = jnp.dtype(x_p.dtype).itemsize
    w_item = jnp.dtype(w1.dtype).itemsize
    w_bytes = (in_dim * hid_pad + hid_pad * hid_pad + hid_pad * n_pad) * w_item
    b_bytes = (2 * hid_pad + n_pad) * 4
    vmem_est = (2 * bb * in_dim * x_item       # x tile, double-buffered
                + 2 * bb * n_pad * 4           # out tile, double-buffered
                + (w_bytes + b_bytes)          # weights single-buffered
                + 3 * bb * hid_pad * 4)        # f32 intermediates (rough)
    vmem_limit = None if vmem_est <= (24 << 20) else int(vmem_est * 1.25)

    flops = 2 * n_rows * (in_dim * hid_pad + hid_pad * hid_pad + hid_pad * n_pad)
    cost = pl.CostEstimate(
        flops=int(flops),
        transcendentals=int(n_rows * n_pad),
        bytes_accessed=int(n_rows * in_dim * x_item + w_bytes + b_bytes
                           + n_rows * n_pad * 4),
    )

    def _weight_spec(shape, single_buffer):
        if single_buffer:
            # Constant-index blocks are DMA'd once; one buffer halves resident VMEM.
            return pl.BlockSpec(shape, _whole_map, pipeline_mode=pl.Buffered(1))
        return pl.BlockSpec(shape, _whole_map)

    def _run(single_buffer_weights):
        in_specs = [
            pl.BlockSpec((bb, in_dim), _batch_map),                    # x (streamed)
            _weight_spec((in_dim, hid_pad), single_buffer_weights),    # w1 (resident)
            _weight_spec((1, hid_pad), single_buffer_weights),         # b1
            _weight_spec((hid_pad, hid_pad), single_buffer_weights),   # w2
            _weight_spec((1, hid_pad), single_buffer_weights),         # b2
            _weight_spec((hid_pad, n_pad), single_buffer_weights),     # w3
            _weight_spec((1, n_pad), single_buffer_weights),           # b3
        ]
        return pl.pallas_call(
            kernel,
            out_shape=jax.ShapeDtypeStruct((n_rows, n_pad), jnp.float32),
            grid_spec=pltpu.PrefetchScalarGridSpec(
                num_scalar_prefetch=0,
                grid=grid,
                in_specs=in_specs,
                out_specs=pl.BlockSpec((bb, n_pad), _batch_map),       # lane-dense slab
            ),
            compiler_params=pltpu.CompilerParams(
                dimension_semantics=("parallel",),
                vmem_limit_bytes=vmem_limit,
            ),
            cost_estimate=cost,
        )(x_p, w1, b1, w2, b2, w3, b3)

    try:
        out = _run(True)
    except Exception:
        # Fallback for JAX versions without BlockSpec pipeline_mode / pl.Buffered.
        out = _run(False)

    return out[:N, :n_class]


# ----------------------------------------------------------------------- reference

def _reference_forward(x, p):
    def lrelu(v):
        return jnp.where(v > 0, v, 0.1 * v)
    h = lrelu(x @ p["w1"] + p["b1"])
    h = lrelu(h @ p["w2"] + p["b2"])
    logits = lrelu(h @ p["w3"] + p["b3"])
    return jax.nn.softmax(logits, axis=1)


if __name__ == "__main__":
    key = jax.random.PRNGKey(0)
    kx, kp = jax.random.split(key)

    # Small footprint, but a batch that exercises the production tiling:
    # default block_batch caps the tile at 256 rows here -> grid of 2 parallel steps.
    batch, in_dim, hid_dim, n_class = 512, 64, 32, 10
    x = jax.random.normal(kx, (batch, in_dim), dtype=jnp.float32)
    params = init_params(kp, in_dim, hid_dim, n_class)
    ref = _reference_forward(x, params)

    # Default path: bf16 MXU operands (all generations), f32 epilogue.
    prepped_bf16 = prepare_params(params, matmul_dtype=jnp.bfloat16)
    out_bf16 = jax.block_until_ready(discriminator_forward(x, prepped_bf16))
    assert out_bf16.shape == (batch, n_class)
    assert jnp.allclose(out_bf16, ref, atol=5e-2), "mismatch vs reference (bf16 MXU)"
    assert jnp.allclose(jnp.sum(out_bf16, axis=1), 1.0, atol=1e-3), "rows must sum to 1"

    # Full-f32 path (tighter correctness check).
    prepped_f32 = prepare_params(params, matmul_dtype=None)
    out_f32 = jax.block_until_ready(discriminator_forward(x, prepped_f32))
    assert out_f32.shape == (batch, n_class)
    assert jnp.allclose(out_f32, ref, atol=2e-3, rtol=2e-3), "mismatch vs reference (f32)"
    assert jnp.allclose(jnp.sum(out_f32, axis=1), 1.0, atol=1e-3), "rows must sum to 1"

    print("KERNEL_OK")
</pallas_src>

<mosaic_0001>
module attributes {stable_mosaic.version = 11 : i64} {
  func.func @_discriminator_kernel(%arg0: i32, %arg1: memref<256x64xf32, #tpu.memory_space<vmem>>, %arg2: memref<64x128xbf16, #tpu.memory_space<vmem>>, %arg3: memref<1x128xf32, #tpu.memory_space<vmem>>, %arg4: memref<128x128xbf16, #tpu.memory_space<vmem>>, %arg5: memref<1x128xf32, #tpu.memory_space<vmem>>, %arg6: memref<128x128xbf16, #tpu.memory_space<vmem>>, %arg7: memref<1x128xf32, #tpu.memory_space<vmem>>, %arg8: memref<256x128xf32, #tpu.memory_space<vmem>>) attributes {dimension_semantics = [#tpu.dimension_semantics<parallel>], iteration_bounds = array<i64: 2>, scalar_prefetch = 0 : i64, scratch_operands = 0 : i64, tpu.core_type = #tpu.core_type<tc>, window_params = [{transform_indices = @transform_0, window_bounds = array<i64: 256, 64>}, {pipeline_mode = #tpu.pipeline_mode<synchronous>, transform_indices = @transform_1, window_bounds = array<i64: 64, 128>}, {pipeline_mode = #tpu.pipeline_mode<synchronous>, transform_indices = @transform_2, window_bounds = array<i64: 1, 128>}, {pipeline_mode = #tpu.pipeline_mode<synchronous>, transform_indices = @transform_3, window_bounds = array<i64: 128, 128>}, {pipeline_mode = #tpu.pipeline_mode<synchronous>, transform_indices = @transform_4, window_bounds = array<i64: 1, 128>}, {pipeline_mode = #tpu.pipeline_mode<synchronous>, transform_indices = @transform_5, window_bounds = array<i64: 128, 128>}, {pipeline_mode = #tpu.pipeline_mode<synchronous>, transform_indices = @transform_6, window_bounds = array<i64: 1, 128>}, {transform_indices = @transform_7, window_bounds = array<i64: 256, 128>}]} {
    %c0 = arith.constant 0 : index
    %c0_0 = arith.constant 0 : index
    %0 = vector.load %arg1[%c0, %c0_0] : memref<256x64xf32, #tpu.memory_space<vmem>>, vector<256x64xf32>
    %1 = arith.truncf %0 : vector<256x64xf32> to vector<256x64xbf16>
    %c0_1 = arith.constant 0 : index
    %c0_2 = arith.constant 0 : index
    %2 = vector.load %arg2[%c0_1, %c0_2] : memref<64x128xbf16, #tpu.memory_space<vmem>>, vector<64x128xbf16>
    %cst = arith.constant dense<0.000000e+00> : vector<256x128xf32>
    %3 = tpu.matmul %1, %2, %cst {dimension_numbers = #tpu.dot_dimension_numbers<[1], [0], [0], [1], [0, 0, 1, 1], [], []>} : vector<256x64xbf16>, vector<64x128xbf16>, vector<256x128xf32> -> vector<256x128xf32>
    %c0_3 = arith.constant 0 : index
    %c0_4 = arith.constant 0 : index
    %4 = vector.load %arg3[%c0_3, %c0_4] : memref<1x128xf32, #tpu.memory_space<vmem>>, vector<1x128xf32>
    %5 = vector.broadcast %4 : vector<1x128xf32> to vector<256x128xf32>
    %6 = arith.addf %3, %5 : vector<256x128xf32>
    %cst_5 = arith.constant 1.000000e-01 : f32
    %7 = vector.broadcast %cst_5 : f32 to vector<256x128xf32>
    %8 = arith.mulf %7, %6 : vector<256x128xf32>
    %9 = arith.maximumf %6, %8 : vector<256x128xf32>
    %10 = arith.truncf %9 : vector<256x128xf32> to vector<256x128xbf16>
    %c0_6 = arith.constant 0 : index
    %c0_7 = arith.constant 0 : index
    %11 = vector.load %arg4[%c0_6, %c0_7] : memref<128x128xbf16, #tpu.memory_space<vmem>>, vector<128x128xbf16>
    %cst_8 = arith.constant dense<0.000000e+00> : vector<256x128xf32>
    %12 = tpu.matmul %10, %11, %cst_8 {dimension_numbers = #tpu.dot_dimension_numbers<[1], [0], [0], [1], [0, 0, 1, 1], [], []>} : vector<256x128xbf16>, vector<128x128xbf16>, vector<256x128xf32> -> vector<256x128xf32>
    %c0_9 = arith.constant 0 : index
    %c0_10 = arith.constant 0 : index
    %13 = vector.load %arg5[%c0_9, %c0_10] : memref<1x128xf32, #tpu.memory_space<vmem>>, vector<1x128xf32>
    %14 = vector.broadcast %13 : vector<1x128xf32> to vector<256x128xf32>
    %15 = arith.addf %12, %14 : vector<256x128xf32>
    %cst_11 = arith.constant 1.000000e-01 : f32
    %16 = vector.broadcast %cst_11 : f32 to vector<256x128xf32>
    %17 = arith.mulf %16, %15 : vector<256x128xf32>
    %18 = arith.maximumf %15, %17 : vector<256x128xf32>
    %19 = arith.truncf %18 : vector<256x128xf32> to vector<256x128xbf16>
    %c0_12 = arith.constant 0 : index
    %c0_13 = arith.constant 0 : index
    %20 = vector.load %arg6[%c0_12, %c0_13] : memref<128x128xbf16, #tpu.memory_space<vmem>>, vector<128x128xbf16>
    %cst_14 = arith.constant dense<0.000000e+00> : vector<256x128xf32>
    %21 = tpu.matmul %19, %20, %cst_14 {dimension_numbers = #tpu.dot_dimension_numbers<[1], [0], [0], [1], [0, 0, 1, 1], [], []>} : vector<256x128xbf16>, vector<128x128xbf16>, vector<256x128xf32> -> vector<256x128xf32>
    %c0_15 = arith.constant 0 : index
    %c0_16 = arith.constant 0 : index
    %22 = vector.load %arg7[%c0_15, %c0_16] : memref<1x128xf32, #tpu.memory_space<vmem>>, vector<1x128xf32>
    %23 = vector.broadcast %22 : vector<1x128xf32> to vector<256x128xf32>
    %24 = arith.addf %21, %23 : vector<256x128xf32>
    %cst_17 = arith.constant 1.000000e-01 : f32
    %25 = vector.broadcast %cst_17 : f32 to vector<256x128xf32>
    %26 = arith.mulf %25, %24 : vector<256x128xf32>
    %27 = arith.maximumf %24, %26 : vector<256x128xf32>
    %28 = tpu.iota {dimensions = array<i32: 1>} : vector<256x128xi32>
    %c10_i32 = arith.constant 10 : i32
    %29 = vector.broadcast %c10_i32 : i32 to vector<256x128xi32>
    %30 = arith.cmpi slt, %28, %29 : vector<256x128xi32>
    %cst_18 = arith.constant -1.000000e+30 : f32
    %31 = vector.broadcast %cst_18 : f32 to vector<256x128xf32>
    %32 = arith.select %30, %27, %31 : vector<256x128xi1>, vector<256x128xf32>
    %cst_19 = arith.constant dense<0xFF800000> : vector<256xf32>
    %33 = vector.multi_reduction <maximumf>, %32, %cst_19 [1] : vector<256x128xf32> to vector<256xf32>
    %34 = vector.shape_cast %33 : vector<256xf32> to vector<256x1xf32>
    %35 = vector.broadcast %34 : vector<256x1xf32> to vector<256x128xf32>
    %36 = arith.subf %32, %35 : vector<256x128xf32>
    %37 = math.exp %36 : vector<256x128xf32>
    %cst_20 = arith.constant dense<0.000000e+00> : vector<256xf32>
    %38 = vector.multi_reduction <add>, %37, %cst_20 [1] : vector<256x128xf32> to vector<256xf32>
    %39 = vector.shape_cast %38 : vector<256xf32> to vector<256x1xf32>
    %40 = vector.broadcast %39 : vector<256x1xf32> to vector<256x128xf32>
    %41 = arith.divf %37, %40 : vector<256x128xf32>
    %c0_21 = arith.constant 0 : index
    %c0_22 = arith.constant 0 : index
    %42 = vector.load %arg8[%c0_21, %c0_22] : memref<256x128xf32, #tpu.memory_space<vmem>>, vector<256x128xf32>
    tpu.vector_store %arg8[%c0_21, %c0_22], %41 {strides = array<i32>} : memref<256x128xf32, #tpu.memory_space<vmem>>, vector<256x128xf32>,
    return
  }
  func.func @transform_0(%arg0: i32) -> (i32, i32) {
    %c0_i32 = arith.constant 0 : i32
    %c0_i32_0 = arith.constant 0 : i32
    return %arg0, %c0_i32 : i32, i32
  }
  func.func @transform_1(%arg0: i32) -> (i32, i32) {
    %c0_i32 = arith.constant 0 : i32
    %c0_i32_0 = arith.constant 0 : i32
    %c0_i32_1 = arith.constant 0 : i32
    return %c0_i32, %c0_i32_0 : i32, i32
  }
  func.func @transform_2(%arg0: i32) -> (i32, i32) {
    %c0_i32 = arith.constant 0 : i32
    %c0_i32_0 = arith.constant 0 : i32
    %c0_i32_1 = arith.constant 0 : i32
    return %c0_i32, %c0_i32_0 : i32, i32
  }
  func.func @transform_3(%arg0: i32) -> (i32, i32) {
    %c0_i32 = arith.constant 0 : i32
    %c0_i32_0 = arith.constant 0 : i32
    %c0_i32_1 = arith.constant 0 : i32
    return %c0_i32, %c0_i32_0 : i32, i32
  }
  func.func @transform_4(%arg0: i32) -> (i32, i32) {
    %c0_i32 = arith.constant 0 : i32
    %c0_i32_0 = arith.constant 0 : i32
    %c0_i32_1 = arith.constant 0 : i32
    return %c0_i32, %c0_i32_0 : i32, i32
  }
  func.func @transform_5(%arg0: i32) -> (i32, i32) {
    %c0_i32 = arith.constant 0 : i32
    %c0_i32_0 = arith.constant 0 : i32
    %c0_i32_1 = arith.constant 0 : i32
    return %c0_i32, %c0_i32_0 : i32, i32
  }
  func.func @transform_6(%arg0: i32) -> (i32, i32) {
    %c0_i32 = arith.constant 0 : i32
    %c0_i32_0 = arith.constant 0 : i32
    %c0_i32_1 = arith.constant 0 : i32
    return %c0_i32, %c0_i32_0 : i32, i32
  }
  func.func @transform_7(%arg0: i32) -> (i32, i32) {
    %c0_i32 = arith.constant 0 : i32
    %c0_i32_0 = arith.constant 0 : i32
    return %arg0, %c0_i32 : i32, i32
  }
}

module attributes {stable_mosaic.version = 11 : i64} {
  func.func @_discriminator_kernel(%arg0: i32, %arg1: memref<256x64xf32, #tpu.memory_space<vmem>>, %arg2: memref<64x128xbf16, #tpu.memory_space<vmem>>, %arg3: memref<1x128xf32, #tpu.memory_space<vmem>>, %arg4: memref<128x128xbf16, #tpu.memory_space<vmem>>, %arg5: memref<1x128xf32, #tpu.memory_space<vmem>>, %arg6: memref<128x128xbf16, #tpu.memory_space<vmem>>, %arg7: memref<1x128xf32, #tpu.memory_space<vmem>>, %arg8: memref<256x128xf32, #tpu.memory_space<vmem>>) attributes {dimension_semantics = [#tpu.dimension_semantics<parallel>], iteration_bounds = array<i64: 2>, scalar_prefetch = 0 : i64, scratch_operands = 0 : i64, tpu.core_type = #tpu.core_type<tc>, window_params = [{transform_indices = @transform_0, window_bounds = array<i64: 256, 64>}, {pipeline_mode = #tpu.pipeline_mode<synchronous>, transform_indices = @transform_1, window_bounds = array<i64: 64, 128>}, {pipeline_mode = #tpu.pipeline_mode<synchronous>, transform_indices = @transform_2, window_bounds = array<i64: 1, 128>}, {pipeline_mode = #tpu.pipeline_mode<synchronous>, transform_indices = @transform_3, window_bounds = array<i64: 128, 128>}, {pipeline_mode = #tpu.pipeline_mode<synchronous>, transform_indices = @transform_4, window_bounds = array<i64: 1, 128>}, {pipeline_mode = #tpu.pipeline_mode<synchronous>, transform_indices = @transform_5, window_bounds = array<i64: 128, 128>}, {pipeline_mode = #tpu.pipeline_mode<synchronous>, transform_indices = @transform_6, window_bounds = array<i64: 1, 128>}, {transform_indices = @transform_7, window_bounds = array<i64: 256, 128>}]} {
    %c0 = arith.constant 0 : index
    %c0_0 = arith.constant 0 : index
    %0 = vector.load %arg1[%c0, %c0_0] : memref<256x64xf32, #tpu.memory_space<vmem>>, vector<256x64xf32>
    %1 = arith.truncf %0 : vector<256x64xf32> to vector<256x64xbf16>
    %c0_1 = arith.constant 0 : index
    %c0_2 = arith.constant 0 : index
    %2 = vector.load %arg2[%c0_1, %c0_2] : memref<64x128xbf16, #tpu.memory_space<vmem>>, vector<64x128xbf16>
    %cst = arith.constant dense<0.000000e+00> : vector<256x128xf32>
    %3 = tpu.matmul %1, %2, %cst {dimension_numbers = #tpu.dot_dimension_numbers<[1], [0], [0], [1], [0, 0, 1, 1], [], []>} : vector<256x64xbf16>, vector<64x128xbf16>, vector<256x128xf32> -> vector<256x128xf32>
    %c0_3 = arith.constant 0 : index
    %c0_4 = arith.constant 0 : index
    %4 = vector.load %arg3[%c0_3, %c0_4] : memref<1x128xf32, #tpu.memory_space<vmem>>, vector<1x128xf32>
    %5 = vector.broadcast %4 : vector<1x128xf32> to vector<256x128xf32>
    %6 = arith.addf %3, %5 : vector<256x128xf32>
    %cst_5 = arith.constant 1.000000e-01 : f32
    %7 = vector.broadcast %cst_5 : f32 to vector<256x128xf32>
    %8 = arith.mulf %7, %6 : vector<256x128xf32>
    %9 = arith.maximumf %6, %8 : vector<256x128xf32>
    %10 = arith.truncf %9 : vector<256x128xf32> to vector<256x128xbf16>
    %c0_6 = arith.constant 0 : index
    %c0_7 = arith.constant 0 : index
    %11 = vector.load %arg4[%c0_6, %c0_7] : memref<128x128xbf16, #tpu.memory_space<vmem>>, vector<128x128xbf16>
    %cst_8 = arith.constant dense<0.000000e+00> : vector<256x128xf32>
    %12 = tpu.matmul %10, %11, %cst_8 {dimension_numbers = #tpu.dot_dimension_numbers<[1], [0], [0], [1], [0, 0, 1, 1], [], []>} : vector<256x128xbf16>, vector<128x128xbf16>, vector<256x128xf32> -> vector<256x128xf32>
    %c0_9 = arith.constant 0 : index
    %c0_10 = arith.constant 0 : index
    %13 = vector.load %arg5[%c0_9, %c0_10] : memref<1x128xf32, #tpu.memory_space<vmem>>, vector<1x128xf32>
    %14 = vector.broadcast %13 : vector<1x128xf32> to vector<256x128xf32>
    %15 = arith.addf %12, %14 : vector<256x128xf32>
    %cst_11 = arith.constant 1.000000e-01 : f32
    %16 = vector.broadcast %cst_11 : f32 to vector<256x128xf32>
    %17 = arith.mulf %16, %15 : vector<256x128xf32>
    %18 = arith.maximumf %15, %17 : vector<256x128xf32>
    %19 = arith.truncf %18 : vector<256x128xf32> to vector<256x128xbf16>
    %c0_12 = arith.constant 0 : index
    %c0_13 = arith.constant 0 : index
    %20 = vector.load %arg6[%c0_12, %c0_13] : memref<128x128xbf16, #tpu.memory_space<vmem>>, vector<128x128xbf16>
    %cst_14 = arith.constant dense<0.000000e+00> : vector<256x128xf32>
    %21 = tpu.matmul %19, %20, %cst_14 {dimension_numbers = #tpu.dot_dimension_numbers<[1], [0], [0], [1], [0, 0, 1, 1], [], []>} : vector<256x128xbf16>, vector<128x128xbf16>, vector<256x128xf32> -> vector<256x128xf32>
    %c0_15 = arith.constant 0 : index
    %c0_16 = arith.constant 0 : index
    %22 = vector.load %arg7[%c0_15, %c0_16] : memref<1x128xf32, #tpu.memory_space<vmem>>, vector<1x128xf32>
    %23 = vector.broadcast %22 : vector<1x128xf32> to vector<256x128xf32>
    %24 = arith.addf %21, %23 : vector<256x128xf32>
    %cst_17 = arith.constant 1.000000e-01 : f32
    %25 = vector.broadcast %cst_17 : f32 to vector<256x128xf32>
    %26 = arith.mulf %25, %24 : vector<256x128xf32>
    %27 = arith.maximumf %24, %26 : vector<256x128xf32>
    %28 = tpu.iota {dimensions = array<i32: 1>} : vector<256x128xi32>
    %c10_i32 = arith.constant 10 : i32
    %29 = vector.broadcast %c10_i32 : i32 to vector<256x128xi32>
    %30 = arith.cmpi slt, %28, %29 : vector<256x128xi32>
    %cst_18 = arith.constant -1.000000e+30 : f32
    %31 = vector.broadcast %cst_18 : f32 to vector<256x128xf32>
    %32 = arith.select %30, %27, %31 : vector<256x128xi1>, vector<256x128xf32>
    %cst_19 = arith.constant dense<0xFF800000> : vector<256xf32>
    %33 = vector.multi_reduction <maximumf>, %32, %cst_19 [1] : vector<256x128xf32> to vector<256xf32>
    %34 = vector.shape_cast %33 : vector<256xf32> to vector<256x1xf32>
    %35 = vector.broadcast %34 : vector<256x1xf32> to vector<256x128xf32>
    %36 = arith.subf %32, %35 : vector<256x128xf32>
    %37 = math.exp %36 : vector<256x128xf32>
    %cst_20 = arith.constant dense<0.000000e+00> : vector<256xf32>
    %38 = vector.multi_reduction <add>, %37, %cst_20 [1] : vector<256x128xf32> to vector<256xf32>
    %39 = vector.shape_cast %38 : vector<256xf32> to vector<256x1xf32>
    %40 = vector.broadcast %39 : vector<256x1xf32> to vector<256x128xf32>
    %41 = arith.divf %37, %40 : vector<256x128xf32>
    %c0_21 = arith.constant 0 : index
    %c0_22 = arith.constant 0 : index
    %42 = vector.load %arg8[%c0_21, %c0_22] : memref<256x128xf32, #tpu.memory_space<vmem>>, vector<256x128xf32>
    tpu.vector_store %arg8[%c0_21, %c0_22], %41 {strides = array<i32>} : memref<256x128xf32, #tpu.memory_space<vmem>>, vector<256x128xf32>,
    return
  }
  func.func @transform_0(%arg0: i32) -> (i32, i32) {
    %c0_i32 = arith.constant 0 : i32
    %c0_i32_0 = arith.constant 0 : i32
    return %arg0, %c0_i32 : i32, i32
  }
  func.func @transform_1(%arg0: i32) -> (i32, i32) {
    %c0_i32 = arith.constant 0 : i32
    %c0_i32_0 = arith.constant 0 : i32
    %c0_i32_1 = arith.constant 0 : i32
    return %c0_i32, %c0_i32_0 : i32, i32
  }
  func.func @transform_2(%arg0: i32) -> (i32, i32) {
    %c0_i32 = arith.constant 0 : i32
    %c0_i32_0 = arith.constant 0 : i32
    %c0_i32_1 = arith.constant 0 : i32
    return %c0_i32, %c0_i32_0 : i32, i32
  }
  func.func @transform_3(%arg0: i32) -> (i32, i32) {
    %c0_i32 = arith.constant 0 : i32
    %c0_i32_0 = arith.constant 0 : i32
    %c0_i32_1 = arith.constant 0 : i32
    return %c0_i32, %c0_i32_0 : i32, i32
  }
  func.func @transform_4(%arg0: i32) -> (i32, i32) {
    %c0_i32 = arith.constant 0 : i32
    %c0_i32_0 = arith.constant 0 : i32
    %c0_i32_1 = arith.constant 0 : i32
    return %c0_i32, %c0_i32_0 : i32, i32
  }
  func.func @transform_5(%arg0: i32) -> (i32, i32) {
    %c0_i32 = arith.constant 0 : i32
    %c0_i32_0 = arith.constant 0 : i32
    %c0_i32_1 = arith.constant 0 : i32
    return %c0_i32, %c0_i32_0 : i32, i32
  }
  func.func @transform_6(%arg0: i32) -> (i32, i32) {
    %c0_i32 = arith.constant 0 : i32
    %c0_i32_0 = arith.constant 0 : i32
    %c0_i32_1 = arith.constant 0 : i32
    return %c0_i32, %c0_i32_0 : i32, i32
  }
  func.func @transform_7(%arg0: i32) -> (i32, i32) {
    %c0_i32 = arith.constant 0 : i32
    %c0_i32_0 = arith.constant 0 : i32
    return %arg0, %c0_i32 : i32, i32
  }
}

</mosaic_0001>

<bundles_post_ra>
// kernel: tpu_custom_call.1
= control target key start
LH: loop header
LB: loop body
LE: loop exit
PB: predicated region body
PF: predicated region fallthrough
CT: control target
= control target key end

     0   :  { %12 = vsyncpa [#allocation3], 0  ;;  %s2954_s0 = inlined_call_operand.vmem [shape: f32[512,64], index: 0, kind: input, shape index: {}]   ;;  %s2955_s1 = inlined_call_operand.vmem [shape: bf16[64,128], index: 1, kind: input, shape index: {}]   ;;  %s2956_s2 = inlined_call_operand.vmem [shape: f32[1,128], index: 2, kind: input, shape index: {}]   ;;  %s2957_s3 = inlined_call_operand.vmem [shape: bf16[128,128], index: 3, kind: input, shape index: {}]   ;;  %s2958_s4 = inlined_call_operand.vmem [shape: f32[1,128], index: 4, kind: input, shape index: {}]   ;;  %s2959_s5 = inlined_call_operand.vmem [shape: bf16[128,128], index: 5, kind: input, shape index: {}]   ;;  %s2960_s6 = inlined_call_operand.vmem [shape: f32[1,128], index: 6, kind: input, shape index: {}]   ;;  %s2961_s7 = inlined_call_operand.hbm [shape: f32[512,128], index: 7, kind: output, shape index: {}]  }
   0x1   :  { %14 = vsyncpa [#allocation3 + $0x1], 0  ;;  %s2257_s24 = smov 0   ;;  %s2259_s25 = smov 0  }
   0x2   :  { %s2261_s26 = smov 0   ;;  %s2263_s27 = smov 0  }
   0x3 LB: > { %s2278_s28 = sadd.s32 4294967295, %s2212_s27   ;;  %s1697_s29 = sadd.s32 4294967294, %s2212_s27   ;;  %s2212_s27 = sphi %s2263_s27, %s2967_s27   ;;  %s2208_s26 = sphi %s2261_s26, %s2966_s26   ;;  %s2204_s25 = sphi %s2259_s25, %s2965_s25   ;;  %s2200_s24 = sphi %s2257_s24, %s2964_s24  }
   0x4   : > { %s2282_s30 = sadd.s32 1, %s2212_s27   ;;  %s179_s8 = sadd.s32 1, %s2208_s26 }
   0x5   : > { %s176_s9 = ssub.s32 %s2212_s27, %s2282_s30  ;;  %p189_p0 = scmp.ne.s32.totalorder %s2208_s26, %s2204_s25 }
   0x6   : > { %p177_p1 = scmp.eq.s32.totalorder %s176_s9, 0  ;;  %p190_p2 = scmp.eq.s32.totalorder %s2278_s28, 1 }
   0x7   : > { %p195_p3 = scmp.ne.s32.totalorder %s2204_s25, %s2200_s24  ;;  %p196_p4 = scmp.eq.s32.totalorder %s1697_s29, 1 }
   0x8   : > { %s2293_s10 = scalar_select %p177_p1, %s2208_s26, %s179_s8  }
   0x9   : > { %p2295_p5 = por %p190_p2, %p189_p0  ;;  %p2299_p6 = por %p196_p4, %p195_p3 }
   0xa   : > { %p1700_p7 = scmp.ge.s32.totalorder %s2212_s27, 1  ;;  %p241_p8 = scmp.lt.s32.totalorder %s2212_s27, 3 }
   0xc   : > { %p242_p9 = pnand %p1700_p7, %p241_p8 }
   0xd   : > { %v2002_v0 = vld [vmem:[%s2955_s1] sm:$0xff] (!%p242_p9)   ;;  %s1702_s15 = sshll.u32 (!%p242_p9), %s2278_s28, 5  ;;  %v2003_v1 = vld [vmem:[%s2955_s1 + $0x8] sm:$0xff] (!%p242_p9)   ;;  %v2004_v2 = vld [vmem:[%s2955_s1 + $0x10] sm:$0xff] (!%p242_p9)   ;;  %vm368_vm0 = vcmask (!%p242_p9), 523264   ;;  %s270_s22 = sand.u32 (!%p242_p9), 1, %s2204_s25  }
   0xe   : > { %245 = sbr.rel (%p242_p9) target bundleno = 1088 (0x440), region = 48  ;;  %p274_p10 = scmp.lt.s32.totalorder (!%p242_p9), %s1702_s15, 63  ;;  %1817 = vmatprep.subr.bf16.mxu0 (!%p242_p9), %v2002_v0  ;;  %1953 = vmatprep.subr.bf16.mxu1 (!%p242_p9), %v2002_v0  ;;  %v2005_v5 = vld [vmem:[%s2955_s1 + $0x18] sm:$0xff] (!%p242_p9)   ;;  %v2006_v7 = vld [vmem:[%s2957_s3] sm:$0xff] (!%p242_p9)   ;;  %v2007_v23 = vld [vmem:[%s2957_s3 + $0x8] sm:$0xff] (!%p242_p9)  }
   0xf   : > { %1818 = vmatpush3.bf16.msra.mxu0 (!%p242_p9), %v2002_v0  ;;  %1957 = vmatpush3.bf16.msra.mxu1 (!%p242_p9), %v2002_v0  ;;  %v2008_v32 = vld [vmem:[%s2957_s3 + $0x10] sm:$0xff] (!%p242_p9)   ;;  %v2009_v37 = vld [vmem:[%s2957_s3 + $0x18] sm:$0xff] (!%p242_p9)   ;;  %v2010_v46 = vld [vmem:[%s2957_s3 + $0x20] sm:$0xff] (!%p242_p9)   ;;  %s1701_s29 = sshll.u32 (!%p242_p9), %s270_s22, 8  ;;  %s1748_s9 = sshll.u32 (!%p242_p9), %s2278_s28, 12 }
  0x10   : > { %1819 = vmatprep.subr.bf16.mxu0 (!%p242_p9), %v2003_v1  ;;  %1954 = vmatprep.subr.bf16.mxu1 (!%p242_p9), %v2003_v1  ;;  %v2011_v57 = vld [vmem:[%s2957_s3 + $0x28] sm:$0xff] (!%p242_p9)   ;;  %v2012_v58 = vld [vmem:[%s2957_s3 + $0x30] sm:$0xff] (!%p242_p9)   ;;  %v2013_v59 = vld [vmem:[%s2957_s3 + $0x38] sm:$0xff] (!%p242_p9)   ;;  %s2837_s8 = scalar_lea.vmem (!%p242_p9), [#allocation2], %s1701_s29  ;;  %s2913_s28 = scalar_lea.sflag (!%p242_p9), [#allocation3], %s270_s22 }
  0x11   : > { %v2014_v60 = vld [vmem:[%s2959_s5] sm:$0xff] (!%p242_p9)   ;;  %v2015_v61 = vld [vmem:[%s2959_s5 + $0x8] sm:$0xff] (!%p242_p9)   ;;  %v2016_v62 = vld [vmem:[%s2959_s5 + $0x10] sm:$0xff] (!%p242_p9)   ;;  %s2214_s17 = smov (!%p242_p9), [#allocation2]  }
  0x12   : > { %v2017_v63 = vld [vmem:[%s2959_s5 + $0x18] sm:$0xff] (!%p242_p9)   ;;  %v2018_v0 = vld [vmem:[%s2959_s5 + $0x20] sm:$0xff] (!%p242_p9)   ;;  %s2154_s18 = sshll.u32 (!%p242_p9), %s2214_s17, 4  ;;  %s2155_s18 = int_to_ptr.vmem [resolvable:$false] %s2154_s18 }
  0x13   : > { %1820 = vmatpush3.bf16.msra.mxu0 (!%p242_p9), %v2003_v1  ;;  %1958 = vmatpush3.bf16.msra.mxu1 (!%p242_p9), %v2003_v1  ;;  %v2413_v1 = vld [vmem:[%s2956_s2] ss:$0 sm:$0xff] (!%p242_p9)  ;;  %s2156_s19 = scalar_lea.vmem (!%p242_p9), %s2155_s18, 8192 }
  0x14   : > { %1821 = vmatprep.subr.bf16.mxu0 (!%p242_p9), %v2004_v2  ;;  %1955 = vmatprep.subr.bf16.mxu1 (!%p242_p9), %v2004_v2 }
  0x15   : > { %s2969_s15 = smov (!%p274_p10, %s1702_s15), 63 }
  0x16   : > { %s1703_s20 = sshll.u32 %s2969_s15, 3  ;;  %s2905_s15 = scalar_lea.hbm %s2961_s7, %s1748_s9 }
  0x17   : > { %s2318_s23 = scalar_lea.vmem %s2954_s0, %s1703_s20  ;;  %1822 = vmatpush3.bf16.msra.mxu0 %v2004_v2  ;;  %1959 = vmatpush3.bf16.msra.mxu1 %v2004_v2 }
  0x18   : > { %v281_v3 = vld [vmem:[%s2318_s23] sm:$0xff]  ;;  %v282_v4 = vld [vmem:[%s2318_s23 + $0x8] sm:$0xff]  ;;  %v283_v8 = vld [vmem:[%s2318_s23 + $0x10] sm:$0xff]  ;;  %1823 = vmatprep.subr.bf16.mxu0 %v2005_v5  ;;  %1956 = vmatprep.subr.bf16.mxu1 %v2005_v5 }
  0x19   : > { %v313_v6 = vpack.c.bf16 %v282_v4, %v281_v3  ;;  %v284_v9 = vld [vmem:[%s2318_s23 + $0x18] sm:$0xff]  ;;  %v285_v10 = vld [vmem:[%s2318_s23 + $0x20] sm:$0xff]  ;;  %v286_v11 = vld [vmem:[%s2318_s23 + $0x28] sm:$0xff] }
  0x1a   : > { %v297_v12 = vld [vmem:[%s2318_s23 + $0x80] sm:$0xff]  ;;  %v298_v13 = vld [vmem:[%s2318_s23 + $0x88] sm:$0xff]  ;;  %v299_v15 = vld [vmem:[%s2318_s23 + $0x90] sm:$0xff]  ;;  %v314_v18 = vpack.c.bf16 %v284_v9, %v283_v8  ;;  %v315_v21 = vpack.c.bf16 %v286_v11, %v285_v10 }
  0x1b   : > { %1825 = vmatprep.mubr.msk.bf16.mxu0 %vm368_vm0, %v313_v6  ;;  %v321_v14 = vpack.c.bf16 %v298_v13, %v297_v12  ;;  %v300_v16 = vld [vmem:[%s2318_s23 + $0x98] sm:$0xff]  ;;  %v301_v17 = vld [vmem:[%s2318_s23 + $0xa0] sm:$0xff]  ;;  %v302_v20 = vld [vmem:[%s2318_s23 + $0xa8] sm:$0xff]  ;;  %1824 = vmatpush3.bf16.msra.mxu0 %v2005_v5 }
  0x1c   : > { %v322_v19 = vpack.c.bf16 %v300_v16, %v299_v15  ;;  %1960 = vmatpush3.bf16.msra.mxu1 %v2005_v5  ;;  %v323_v22 = vpack.c.bf16 %v302_v20, %v301_v17  ;;  %v287_v24 = vld [vmem:[%s2318_s23 + $0x30] sm:$0xff]  ;;  %v288_v25 = vld [vmem:[%s2318_s23 + $0x38] sm:$0xff]  ;;  %v289_v28 = vld [vmem:[%s2318_s23 + $0x40] sm:$0xff]  ;;  %1905 = vmatprep.subr.bf16.mxu0 %v2014_v60 }
  0x1d   : > { %1841 = vmatprep.mubr.msk.bf16.mxu1 %vm368_vm0, %v321_v14  ;;  %1857 = vmatprep.subr.bf16.mxu1 %v2006_v7  ;;  %v303_v26 = vld [vmem:[%s2318_s23 + $0xb0] sm:$0xff]  ;;  %v304_v27 = vld [vmem:[%s2318_s23 + $0xb8] sm:$0xff]  ;;  %v290_v29 = vld [vmem:[%s2318_s23 + $0x48] sm:$0xff]  ;;  %v316_v33 = vpack.c.bf16 %v288_v25, %v287_v24 }
  0x1e   : > { %1826 = vmatmul.mubr.msk.bf16.vlgmr.msra.gmra.mrb[0].mxu0 %vm368_vm0, %v314_v18  ;;  %v305_v30 = vld [vmem:[%s2318_s23 + $0xc0] sm:$0xff]  ;;  %v306_v31 = vld [vmem:[%s2318_s23 + $0xc8] sm:$0xff]  ;;  %v324_v34 = vpack.c.bf16 %v304_v27, %v303_v26  ;;  %v317_v35 = vpack.c.bf16 %v290_v29, %v289_v28  ;;  %v291_v38 = vld [vmem:[%s2318_s23 + $0x50] sm:$0xff] }
  0x1f   : > { %1842 = vmatmul.mubr.msk.bf16.vlgmr.msra.gmra.mrb[0].mxu1 %vm368_vm0, %v322_v19  ;;  %1829 = vmatprep.mubr.msk.bf16.mxu0 %vm368_vm0, %v315_v21  ;;  %v325_v36 = vpack.c.bf16 %v306_v31, %v305_v30  ;;  %v292_v39 = vld [vmem:[%s2318_s23 + $0x58] sm:$0xff]  ;;  %v293_v40 = vld [vmem:[%s2318_s23 + $0x60] sm:$0xff]  ;;  %v307_v41 = vld [vmem:[%s2318_s23 + $0xd0] sm:$0xff] }
  0x20   : > { %1845 = vmatprep.mubr.msk.bf16.mxu1 %vm368_vm0, %v323_v22  ;;  %1858 = vmatpush3.bf16.msra.mxu1 %v2006_v7  ;;  %v308_v42 = vld [vmem:[%s2318_s23 + $0xd8] sm:$0xff]  ;;  %v294_v43 = vld [vmem:[%s2318_s23 + $0x68] sm:$0xff]  ;;  %v309_v44 = vld [vmem:[%s2318_s23 + $0xe0] sm:$0xff]  ;;  %v318_v47 = vpack.c.bf16 %v292_v39, %v291_v38 }
  0x21   : > { %1859 = vmatprep.subr.bf16.mxu1 %v2007_v23  ;;  %v310_v45 = vld [vmem:[%s2318_s23 + $0xe8] sm:$0xff]  ;;  %v326_v48 = vpack.c.bf16 %v308_v42, %v307_v41  ;;  %v319_v49 = vpack.c.bf16 %v294_v43, %v293_v40  ;;  %v295_v51 = vld [vmem:[%s2318_s23 + $0x70] sm:$0xff]  ;;  %v296_v52 = vld [vmem:[%s2318_s23 + $0x78] sm:$0xff]  ;;  %1906 = vmatpush3.bf16.msra.mxu0 %v2014_v60 }
  0x22   : > { %v327_v50 = vpack.c.bf16 %v310_v45, %v309_v44  ;;  %v311_v53 = vld [vmem:[%s2318_s23 + $0xf0] sm:$0xff]  ;;  %v312_v54 = vld [vmem:[%s2318_s23 + $0xf8] sm:$0xff]  ;;  %v320_v55 = vpack.c.bf16 %v296_v52, %v295_v51  ;;  %1907 = vmatprep.subr.bf16.mxu0 %v2015_v61  ;;  %s1635_s23 = sshll.u32 %s2837_s8, 4  ;;  %s2907_s23 = int_to_ptr.vmem [resolvable:$true] %s1635_s23 }
  0x23   : > { %v328_v56 = vpack.c.bf16 %v312_v54, %v311_v53  ;;  %s2150_s16 = scalar_lea.vmem %s2907_s23, 4096  ;;  %p2157_p0 = scmp.lt.s32.totalorder %s2907_s23, %s2155_s18 }
  0x24   : > { %1860 = vmatpush3.bf16.msra.mxu1 %v2007_v23  ;;  %p2151_p11 = scmp.ne.s32.totalorder %s2907_s23, %s2150_s16  ;;  %p2158_p1 = scmp.lt.s32.totalorder %s2156_s19, %s2150_s16 }
  0x25   : > { %1861 = vmatprep.subr.bf16.mxu1 %v2008_v32  ;;  %1908 = vmatpush3.bf16.msra.mxu0 %v2015_v61 }
  0x26   : > { %1830 = vmatmul.mubr.msk.bf16.gmra.mrb[4].mxu0 %vm368_vm0, %v316_v33  ;;  %1909 = vmatprep.subr.bf16.mxu0 %v2016_v62  ;;  %p2152_p12 = pnand %p2151_p11, %p2295_p5  ;;  %p2159_p2 = por %p2158_p1, %p2157_p0 }
  0x27   : > { %1846 = vmatmul.mubr.msk.bf16.gmra.mrb[4].mxu1 %vm368_vm0, %v324_v34  ;;  %1833 = vmatprep.mubr.msk.bf16.mxu0 %vm368_vm0, %v317_v35 }
  0x28   : > { %1849 = vmatprep.mubr.msk.bf16.mxu1 %vm368_vm0, %v325_v36  ;;  %1862 = vmatpush3.bf16.msra.mxu1 %v2008_v32  ;;  %p2153_p13 = pneg %p2152_p12 }
  0x29   : > { %1863 = vmatprep.subr.bf16.mxu1 %v2009_v37  ;;  %1910 = vmatpush3.bf16.msra.mxu0 %v2016_v62 }
  0x2a   : > { %1911 = vmatprep.subr.bf16.mxu0 %v2017_v63  ;;  %p2160_p3 = pnand %p2159_p2, %p2153_p13 }
  0x2c   : > { %1864 = vmatpush3.bf16.msra.mxu1 %v2009_v37 }
  0x2d   : > { %1865 = vmatprep.subr.bf16.mxu1 %v2010_v46  ;;  %1912 = vmatpush3.bf16.msra.mxu0 %v2017_v63 }
  0x2e   : > { %1834 = vmatmul.mubr.msk.bf16.gmra.mrb[8].mxu0 %vm368_vm0, %v318_v47  ;;  %1913 = vmatprep.subr.bf16.mxu0 %v2018_v0 }
  0x2f   : > { %1850 = vmatmul.mubr.msk.bf16.gmra.mrb[8].mxu1 %vm368_vm0, %v326_v48  ;;  %1837 = vmatprep.mubr.msk.bf16.mxu0 %vm368_vm0, %v319_v49 }
  0x30   : > { %1853 = vmatprep.mubr.msk.bf16.mxu1 %vm368_vm0, %v327_v50  ;;  %1866 = vmatpush3.bf16.msra.mxu1 %v2010_v46 }
  0x31   : > { %1867 = vmatprep.subr.bf16.mxu1 %v2011_v57  ;;  %1914 = vmatpush3.bf16.msra.mxu0 %v2018_v0 }
  0x34   : > { %1868 = vmatpush3.bf16.msra.mxu1 %v2011_v57 }
  0x35   : > { %1869 = vmatprep.subr.bf16.mxu1 %v2012_v58 }
  0x36   : > { %1838 = vmatmul.mubr.msk.bf16.gmra.mrb[12].mxu0 %vm368_vm0, %v320_v55 }
  0x37   : > { %1854 = vmatmul.mubr.msk.bf16.gmra.mrb[12].mxu1 %vm368_vm0, %v328_v56 }
  0x38   : > { %1870 = vmatpush3.bf16.msra.mxu1 %v2012_v58 }
  0x39   : > { %1871 = vmatprep.subr.bf16.mxu1 %v2013_v59 }
  0x3c   : > { %1872 = vmatpush3.bf16.msra.mxu1 %v2013_v59 }
  0xf1   : > { %v1827_v2 = vpop.f32.mrb[0].mxu0 }
  0xf2   : > { %v1843_v3 = vpop.f32.mrb[0].mxu1  ;;  %v460_v4 = vadd.f32 %v1827_v2, %v2413_v1  ;;  %v451_v5 = vpop.f32.mrb[1].mxu0 }
  0xf3   : > { %v524_v6 = vadd.f32 %v1843_v3, %v2413_v1  ;;  %v515_v7 = vpop.f32.mrb[1].mxu1  ;;  %v452_v8 = vadd.f32 %v2413_v1, %v451_v5  ;;  %v1828_v9 = vpop.f32.mrb[2].mxu0 }
  0xf4   : > { %v516_v10 = vadd.f32 %v2413_v1, %v515_v7  ;;  %v1844_v11 = vpop.f32.mrb[2].mxu1  ;;  %v580_v12 = vmul.f32 0.1, %v460_v4  ;;  %v463_v13 = vadd.f32 %v1828_v9, %v2413_v1  ;;  %v454_v14 = vpop.f32.mrb[3].mxu0 }
  0xf5   : > { %v596_v15 = vmul.f32 0.1, %v524_v6  ;;  %v527_v16 = vadd.f32 %v1844_v11, %v2413_v1  ;;  %v518_v17 = vpop.f32.mrb[3].mxu1  ;;  %v578_v18 = vmul.f32 0.1, %v452_v8  ;;  %v455_v19 = vadd.f32 %v2413_v1, %v454_v14 }
  0xf6   : > { %v594_v20 = vmul.f32 0.1, %v516_v10  ;;  %v519_v21 = vadd.f32 %v2413_v1, %v518_v17  ;;  %v581_v22 = vmul.f32 0.1, %v463_v13  ;;  %v612_v28 = vmax.f32 %v460_v4, %v580_v12 }
  0xf7   : > { %v628_v23 = vmax.f32 %v524_v6, %v596_v15  ;;  %v597_v24 = vmul.f32 0.1, %v527_v16  ;;  %v579_v25 = vmul.f32 0.1, %v455_v19  ;;  %v610_v31 = vmax.f32 %v452_v8, %v578_v18 }
  0xf8   : > { %v626_v26 = vmax.f32 %v516_v10, %v594_v20  ;;  %v595_v27 = vmul.f32 0.1, %v519_v21  ;;  %v613_v29 = vmax.f32 %v463_v13, %v581_v22 }
  0xf9   : > { %v629_v30 = vmax.f32 %v527_v16, %v597_v24  ;;  %v611_v32 = vmax.f32 %v455_v19, %v579_v25  ;;  %v1831_v33 = vpop.f32.mrb[4].mxu0 }
  0xfa   : > { %v627_v34 = vmax.f32 %v519_v21, %v595_v27  ;;  %v1847_v35 = vpop.f32.mrb[4].mxu1  ;;  %v643_v36 = vpack.c.bf16 %v613_v29, %v612_v28  ;;  %v476_v37 = vadd.f32 %v1831_v33, %v2413_v1  ;;  %v467_v38 = vpop.f32.mrb[5].mxu0 }
  0xfb   : > { %v540_v39 = vadd.f32 %v1847_v35, %v2413_v1  ;;  %v531_v40 = vpop.f32.mrb[5].mxu1  ;;  %v2425_v41 = vpack.c.bf16 %v629_v30, %v628_v23  ;;  %v468_v42 = vadd.f32 %v2413_v1, %v467_v38  ;;  %v1832_v43 = vpop.f32.mrb[6].mxu0  ;;  %v642_v44 = vpack.c.bf16 %v611_v32, %v610_v31 }
  0xfc   : > { %v532_v45 = vadd.f32 %v2413_v1, %v531_v40  ;;  %v1848_v46 = vpop.f32.mrb[6].mxu1  ;;  %v2429_v47 = vpack.c.bf16 %v627_v34, %v626_v26  ;;  %v584_v48 = vmul.f32 0.1, %v476_v37  ;;  %v479_v49 = vadd.f32 %v1832_v43, %v2413_v1  ;;  %v470_v50 = vpop.f32.mrb[7].mxu0 }
  0xfd   : > { %v600_v51 = vmul.f32 0.1, %v540_v39  ;;  %v543_v52 = vadd.f32 %v1848_v46, %v2413_v1  ;;  %v534_v53 = vpop.f32.mrb[7].mxu1  ;;  %v582_v54 = vmul.f32 0.1, %v468_v42  ;;  %v471_v55 = vadd.f32 %v2413_v1, %v470_v50  ;;  %1873 = vmatprep.mubr.bf16.mxu1 %v642_v44 }
  0xfe   : > { %v598_v56 = vmul.f32 0.1, %v532_v45  ;;  %v535_v57 = vadd.f32 %v2413_v1, %v534_v53  ;;  %v585_v58 = vmul.f32 0.1, %v479_v49  ;;  %1874 = vmatmul.mubr.bf16.vlgmr.msra.gmra.mrb[16].mxu1 %v643_v36  ;;  %v616_v0 = vmax.f32 %v476_v37, %v584_v48 }
  0xff   : > { %v632_v59 = vmax.f32 %v540_v39, %v600_v51  ;;  %v601_v60 = vmul.f32 0.1, %v543_v52  ;;  %v583_v61 = vmul.f32 0.1, %v471_v55  ;;  %v614_v4 = vmax.f32 %v468_v42, %v582_v54 }
 0x100   : > { %v630_v62 = vmax.f32 %v532_v45, %v598_v56  ;;  %v599_v63 = vmul.f32 0.1, %v535_v57  ;;  %v617_v2 = vmax.f32 %v479_v49, %v585_v58 }
 0x101   : > { %v633_v3 = vmax.f32 %v543_v52, %v601_v60  ;;  %v615_v5 = vmax.f32 %v471_v55, %v583_v61  ;;  %v1835_v6 = vpop.f32.mrb[8].mxu0 }
 0x102   : > { %v631_v7 = vmax.f32 %v535_v57, %v599_v63  ;;  %v1851_v8 = vpop.f32.mrb[8].mxu1  ;;  %v492_v9 = vadd.f32 %v1835_v6, %v2413_v1  ;;  %v483_v10 = vpop.f32.mrb[9].mxu0  ;;  %v645_v11 = vpack.c.bf16 %v617_v2, %v616_v0 }
 0x103   : > { %v556_v12 = vadd.f32 %v1851_v8, %v2413_v1  ;;  %v547_v13 = vpop.f32.mrb[9].mxu1  ;;  %v2437_v14 = vpack.c.bf16 %v633_v3, %v632_v59  ;;  %v484_v15 = vadd.f32 %v2413_v1, %v483_v10  ;;  %v1836_v16 = vpop.f32.mrb[10].mxu0  ;;  %v644_v17 = vpack.c.bf16 %v615_v5, %v614_v4 }
 0x104   : > { %v548_v18 = vadd.f32 %v2413_v1, %v547_v13  ;;  %v1852_v19 = vpop.f32.mrb[10].mxu1  ;;  %v2441_v20 = vpack.c.bf16 %v631_v7, %v630_v62  ;;  %v588_v21 = vmul.f32 0.1, %v492_v9  ;;  %v495_v22 = vadd.f32 %v1836_v16, %v2413_v1  ;;  %v486_v23 = vpop.f32.mrb[11].mxu0 }
 0x105   : > { %v604_v24 = vmul.f32 0.1, %v556_v12  ;;  %v559_v25 = vadd.f32 %v1852_v19, %v2413_v1  ;;  %v550_v26 = vpop.f32.mrb[11].mxu1  ;;  %v586_v27 = vmul.f32 0.1, %v484_v15  ;;  %v487_v28 = vadd.f32 %v2413_v1, %v486_v23  ;;  %1877 = vmatprep.mubr.bf16.mxu1 %v644_v17 }
 0x106   : > { %v602_v29 = vmul.f32 0.1, %v548_v18  ;;  %v551_v30 = vadd.f32 %v2413_v1, %v550_v26  ;;  %v589_v31 = vmul.f32 0.1, %v495_v22  ;;  %1878 = vmatmul.mubr.bf16.gmra.mrb[20].mxu1 %v645_v11  ;;  %v620_v37 = vmax.f32 %v492_v9, %v588_v21 }
 0x107   : > { %v636_v32 = vmax.f32 %v556_v12, %v604_v24  ;;  %v605_v33 = vmul.f32 0.1, %v559_v25  ;;  %v587_v34 = vmul.f32 0.1, %v487_v28  ;;  %v618_v40 = vmax.f32 %v484_v15, %v586_v27 }
 0x108   : > { %v634_v35 = vmax.f32 %v548_v18, %v602_v29  ;;  %v603_v36 = vmul.f32 0.1, %v551_v30  ;;  %v621_v38 = vmax.f32 %v495_v22, %v589_v31 }
 0x109   : > { %v637_v39 = vmax.f32 %v559_v25, %v605_v33  ;;  %v619_v42 = vmax.f32 %v487_v28, %v587_v34  ;;  %v1839_v43 = vpop.f32.mrb[12].mxu0 }
 0x10a   : > { %v635_v44 = vmax.f32 %v551_v30, %v603_v36  ;;  %v1855_v45 = vpop.f32.mrb[12].mxu1  ;;  %v508_v46 = vadd.f32 %v1839_v43, %v2413_v1  ;;  %v499_v48 = vpop.f32.mrb[13].mxu0  ;;  %v647_v49 = vpack.c.bf16 %v621_v38, %v620_v37 }
 0x10b   : > { %v572_v50 = vadd.f32 %v1855_v45, %v2413_v1  ;;  %v563_v51 = vpop.f32.mrb[13].mxu1  ;;  %v655_v52 = vpack.c.bf16 %v637_v39, %v636_v32  ;;  %v500_v53 = vadd.f32 %v2413_v1, %v499_v48  ;;  %v1840_v54 = vpop.f32.mrb[14].mxu0  ;;  %v646_v55 = vpack.c.bf16 %v619_v42, %v618_v40 }
 0x10c   : > { %v564_v56 = vadd.f32 %v2413_v1, %v563_v51  ;;  %v1856_v57 = vpop.f32.mrb[14].mxu1  ;;  %v654_v58 = vpack.c.bf16 %v635_v44, %v634_v35  ;;  %v592_v59 = vmul.f32 0.1, %v508_v46  ;;  %v511_v60 = vadd.f32 %v1840_v54, %v2413_v1  ;;  %v502_v61 = vpop.f32.mrb[15].mxu0 }
 0x10d   : > { %v608_v62 = vmul.f32 0.1, %v572_v50  ;;  %v575_v63 = vadd.f32 %v1856_v57, %v2413_v1  ;;  %v566_v0 = vpop.f32.mrb[15].mxu1  ;;  %v590_v2 = vmul.f32 0.1, %v500_v53  ;;  %v503_v3 = vadd.f32 %v2413_v1, %v502_v61  ;;  %1881 = vmatprep.mubr.bf16.mxu1 %v646_v55 }
 0x10e   : > { %v606_v4 = vmul.f32 0.1, %v564_v56  ;;  %v567_v5 = vadd.f32 %v2413_v1, %v566_v0  ;;  %v593_v6 = vmul.f32 0.1, %v511_v60  ;;  %1882 = vmatmul.mubr.bf16.gmra.mrb[24].mxu1 %v647_v49  ;;  %v624_v12 = vmax.f32 %v508_v46, %v592_v59  ;;  %v2019_v1 = vld [vmem:[%s2959_s5 + $0x28] sm:$0xff]  }
 0x10f   : > { %v640_v7 = vmax.f32 %v572_v50, %v608_v62  ;;  %v609_v8 = vmul.f32 0.1, %v575_v63  ;;  %v591_v9 = vmul.f32 0.1, %v503_v3  ;;  %v622_v16 = vmax.f32 %v500_v53, %v590_v2  ;;  %1915 = vmatprep.subr.bf16.mxu0 %v2019_v1 }
 0x110   : > { %v638_v10 = vmax.f32 %v564_v56, %v606_v4  ;;  %v607_v11 = vmul.f32 0.1, %v567_v5  ;;  %v625_v13 = vmax.f32 %v511_v60, %v593_v6  ;;  %1916 = vmatpush3.bf16.msra.mxu0 %v2019_v1 }
 0x111   : > { %v641_v15 = vmax.f32 %v575_v63, %v609_v8  ;;  %v623_v17 = vmax.f32 %v503_v3, %v591_v9 }
 0x112   : > { %v639_v18 = vmax.f32 %v567_v5, %v607_v11  ;;  %v649_v19 = vpack.c.bf16 %v625_v13, %v624_v12 }
 0x113   : > { %v657_v21 = vpack.c.bf16 %v641_v15, %v640_v7  ;;  %v648_v22 = vpack.c.bf16 %v623_v17, %v622_v16 }
 0x114   : > { %v656_v23 = vpack.c.bf16 %v639_v18, %v638_v10 }
 0x115   : > { %1885 = vmatprep.mubr.bf16.mxu1 %v648_v22 }
 0x116   : > { %1886 = vmatmul.mubr.bf16.gmra.mrb[28].mxu1 %v649_v19 }
 0x117   : > { %1889 = vmatprep.mubr.bf16.mxu1 %v2429_v47  ;;  %v2020_v47 = vld [vmem:[%s2959_s5 + $0x30] sm:$0xff]  }
 0x118   : > { %1917 = vmatprep.subr.bf16.mxu0 %v2020_v47 }
 0x119   : > { %1918 = vmatpush3.bf16.msra.mxu0 %v2020_v47 }
 0x11e   : > { %1890 = vmatmul.mubr.bf16.gmra.mrb[32].mxu1 %v2425_v41  ;;  %v2021_v41 = vld [vmem:[%s2959_s5 + $0x38] sm:$0xff]  }
 0x11f   : > { %1893 = vmatprep.mubr.bf16.mxu1 %v2441_v20  ;;  %1919 = vmatprep.subr.bf16.mxu0 %v2021_v41 }
 0x120   : > { %1920 = vmatpush3.bf16.msra.mxu0 %v2021_v41 }
 0x126   : > { %1894 = vmatmul.mubr.bf16.gmra.mrb[36].mxu1 %v2437_v14  ;;  %v2471_v14 = vld [vmem:[%s2958_s4] ss:$0 sm:$0xff] }
 0x127   : > { %1897 = vmatprep.mubr.bf16.mxu1 %v654_v58 }
 0x12e   : > { %1898 = vmatmul.mubr.bf16.gmra.mrb[40].mxu1 %v655_v52 }
 0x12f   : > { %1901 = vmatprep.mubr.bf16.mxu1 %v656_v23 }
 0x136   : > { %1902 = vmatmul.mubr.bf16.gmra.mrb[44].mxu1 %v657_v21 }
 0x1d1   : > { %v1875_v20 = vpop.f32.mrb[16].mxu1 }
 0x1d2   : > { %v772_v24 = vadd.f32 %v1875_v20, %v2471_v14  ;;  %v763_v25 = vpop.f32.mrb[17].mxu1 }
 0x1d3   : > { %v764_v26 = vadd.f32 %v2471_v14, %v763_v25  ;;  %v1876_v27 = vpop.f32.mrb[18].mxu1 }
 0x1d4   : > { %v892_v28 = vmul.f32 0.1, %v772_v24  ;;  %v775_v29 = vadd.f32 %v1876_v27, %v2471_v14  ;;  %v766_v30 = vpop.f32.mrb[19].mxu1 }
 0x1d5   : > { %v890_v31 = vmul.f32 0.1, %v764_v26  ;;  %v767_v32 = vadd.f32 %v2471_v14, %v766_v30 }
 0x1d6   : > { %v893_v33 = vmul.f32 0.1, %v775_v29  ;;  %v924_v35 = vmax.f32 %v772_v24, %v892_v28 }
 0x1d7   : > { %v891_v34 = vmul.f32 0.1, %v767_v32  ;;  %v922_v37 = vmax.f32 %v764_v26, %v890_v31 }
 0x1d8   : > { %v925_v36 = vmax.f32 %v775_v29, %v893_v33 }
 0x1d9   : > { %v923_v38 = vmax.f32 %v767_v32, %v891_v34  ;;  %v1879_v39 = vpop.f32.mrb[20].mxu1 }
 0x1da   : > { %v955_v40 = vpack.c.bf16 %v925_v36, %v924_v35  ;;  %v788_v42 = vadd.f32 %v1879_v39, %v2471_v14  ;;  %v779_v43 = vpop.f32.mrb[21].mxu1 }
 0x1db   : > { %v780_v44 = vadd.f32 %v2471_v14, %v779_v43  ;;  %v1880_v45 = vpop.f32.mrb[22].mxu1  ;;  %v954_v46 = vpack.c.bf16 %v923_v38, %v922_v37 }
 0x1dc   : > { %v896_v48 = vmul.f32 0.1, %v788_v42  ;;  %v791_v49 = vadd.f32 %v1880_v45, %v2471_v14  ;;  %v782_v50 = vpop.f32.mrb[23].mxu1 }
 0x1dd   : > { %v894_v51 = vmul.f32 0.1, %v780_v44  ;;  %v783_v52 = vadd.f32 %v2471_v14, %v782_v50  ;;  %1921 = vmatprep.mubr.bf16.mxu0 %v954_v46 }
 0x1de   : > { %v897_v53 = vmul.f32 0.1, %v791_v49  ;;  %1922 = vmatmul.mubr.bf16.vlgmr.msra.gmra.mrb[16].mxu0 %v955_v40  ;;  %v928_v55 = vmax.f32 %v788_v42, %v896_v48 }
 0x1df   : > { %v895_v54 = vmul.f32 0.1, %v783_v52  ;;  %v926_v57 = vmax.f32 %v780_v44, %v894_v51 }
 0x1e0   : > { %v929_v56 = vmax.f32 %v791_v49, %v897_v53 }
 0x1e1   : > { %v927_v58 = vmax.f32 %v783_v52, %v895_v54  ;;  %v1883_v59 = vpop.f32.mrb[24].mxu1 }
 0x1e2   : > { %v804_v60 = vadd.f32 %v1883_v59, %v2471_v14  ;;  %v795_v61 = vpop.f32.mrb[25].mxu1  ;;  %v957_v62 = vpack.c.bf16 %v929_v56, %v928_v55 }
 0x1e3   : > { %v796_v63 = vadd.f32 %v2471_v14, %v795_v61  ;;  %v1884_v0 = vpop.f32.mrb[26].mxu1  ;;  %v956_v2 = vpack.c.bf16 %v927_v58, %v926_v57 }
 0x1e4   : > { %v900_v3 = vmul.f32 0.1, %v804_v60  ;;  %v807_v4 = vadd.f32 %v1884_v0, %v2471_v14  ;;  %v798_v5 = vpop.f32.mrb[27].mxu1 }
 0x1e5   : > { %v898_v6 = vmul.f32 0.1, %v796_v63  ;;  %v799_v7 = vadd.f32 %v2471_v14, %v798_v5  ;;  %1925 = vmatprep.mubr.bf16.mxu0 %v956_v2 }
 0x1e6   : > { %v901_v8 = vmul.f32 0.1, %v807_v4  ;;  %1926 = vmatmul.mubr.bf16.gmra.mrb[20].mxu0 %v957_v62  ;;  %v932_v10 = vmax.f32 %v804_v60, %v900_v3 }
 0x1e7   : > { %v899_v9 = vmul.f32 0.1, %v799_v7  ;;  %v930_v12 = vmax.f32 %v796_v63, %v898_v6 }
 0x1e8   : > { %v933_v11 = vmax.f32 %v807_v4, %v901_v8 }
 0x1e9   : > { %v931_v13 = vmax.f32 %v799_v7, %v899_v9  ;;  %v1887_v15 = vpop.f32.mrb[28].mxu1 }
 0x1ea   : > { %v820_v16 = vadd.f32 %v1887_v15, %v2471_v14  ;;  %v811_v17 = vpop.f32.mrb[29].mxu1  ;;  %v959_v18 = vpack.c.bf16 %v933_v11, %v932_v10 }
 0x1eb   : > { %v812_v19 = vadd.f32 %v2471_v14, %v811_v17  ;;  %v1888_v21 = vpop.f32.mrb[30].mxu1  ;;  %v958_v22 = vpack.c.bf16 %v931_v13, %v930_v12 }
 0x1ec   : > { %v904_v23 = vmul.f32 0.1, %v820_v16  ;;  %v823_v1 = vadd.f32 %v1888_v21, %v2471_v14  ;;  %v814_v47 = vpop.f32.mrb[31].mxu1 }
 0x1ed   : > { %v902_v41 = vmul.f32 0.1, %v812_v19  ;;  %v815_v20 = vadd.f32 %v2471_v14, %v814_v47  ;;  %1929 = vmatprep.mubr.bf16.mxu0 %v958_v22 }
 0x1ee   : > { %v905_v24 = vmul.f32 0.1, %v823_v1  ;;  %1930 = vmatmul.mubr.bf16.gmra.mrb[24].mxu0 %v959_v18  ;;  %v936_v26 = vmax.f32 %v820_v16, %v904_v23 }
 0x1ef   : > { %v903_v25 = vmul.f32 0.1, %v815_v20  ;;  %v934_v28 = vmax.f32 %v812_v19, %v902_v41 }
 0x1f0   : > { %v937_v27 = vmax.f32 %v823_v1, %v905_v24 }
 0x1f1   : > { %v935_v29 = vmax.f32 %v815_v20, %v903_v25  ;;  %v1891_v30 = vpop.f32.mrb[32].mxu1 }
 0x1f2   : > { %v836_v31 = vadd.f32 %v1891_v30, %v2471_v14  ;;  %v827_v32 = vpop.f32.mrb[33].mxu1  ;;  %v961_v33 = vpack.c.bf16 %v937_v27, %v936_v26 }
 0x1f3   : > { %v828_v34 = vadd.f32 %v2471_v14, %v827_v32  ;;  %v1892_v35 = vpop.f32.mrb[34].mxu1  ;;  %v960_v36 = vpack.c.bf16 %v935_v29, %v934_v28 }
 0x1f4   : > { %v908_v37 = vmul.f32 0.1, %v836_v31  ;;  %v839_v38 = vadd.f32 %v1892_v35, %v2471_v14  ;;  %v830_v39 = vpop.f32.mrb[35].mxu1 }
 0x1f5   : > { %v906_v40 = vmul.f32 0.1, %v828_v34  ;;  %v831_v42 = vadd.f32 %v2471_v14, %v830_v39  ;;  %1933 = vmatprep.mubr.bf16.mxu0 %v960_v36 }
 0x1f6   : > { %v909_v43 = vmul.f32 0.1, %v839_v38  ;;  %1934 = vmatmul.mubr.bf16.gmra.mrb[28].mxu0 %v961_v33  ;;  %v940_v45 = vmax.f32 %v836_v31, %v908_v37 }
 0x1f7   : > { %v907_v44 = vmul.f32 0.1, %v831_v42  ;;  %v938_v48 = vmax.f32 %v828_v34, %v906_v40 }
 0x1f8   : > { %v941_v46 = vmax.f32 %v839_v38, %v909_v43  ;;  %v2508_v43 = vld [vmem:[%s2960_s6] ss:$0 sm:$0xff] }
 0x1f9   : > { %v939_v49 = vmax.f32 %v831_v42, %v907_v44  ;;  %v1895_v50 = vpop.f32.mrb[36].mxu1  ;;  %v1266_v42 = vlaneseq }
 0x1fa   : > { %v852_v51 = vadd.f32 %v1895_v50, %v2471_v14  ;;  %v843_v52 = vpop.f32.mrb[37].mxu1  ;;  %v963_v53 = vpack.c.bf16 %v941_v46, %v940_v45 }
 0x1fb   : > { %v844_v54 = vadd.f32 %v2471_v14, %v843_v52  ;;  %v1896_v55 = vpop.f32.mrb[38].mxu1  ;;  %v962_v56 = vpack.c.bf16 %v939_v49, %v938_v48 }
 0x1fc   : > { %v912_v57 = vmul.f32 0.1, %v852_v51  ;;  %v855_v58 = vadd.f32 %v1896_v55, %v2471_v14  ;;  %v846_v59 = vpop.f32.mrb[39].mxu1 }
 0x1fd   : > { %v910_v60 = vmul.f32 0.1, %v844_v54  ;;  %v847_v61 = vadd.f32 %v2471_v14, %v846_v59  ;;  %1937 = vmatprep.mubr.bf16.mxu0 %v962_v56 }
 0x1fe   : > { %v913_v62 = vmul.f32 0.1, %v855_v58  ;;  %1938 = vmatmul.mubr.bf16.gmra.mrb[32].mxu0 %v963_v53  ;;  %v944_v0 = vmax.f32 %v852_v51, %v912_v57 }
 0x1ff   : > { %v911_v63 = vmul.f32 0.1, %v847_v61  ;;  %v942_v3 = vmax.f32 %v844_v54, %v910_v60 }
 0x200   : > { %v945_v2 = vmax.f32 %v855_v58, %v913_v62 }
 0x201   : > { %v943_v4 = vmax.f32 %v847_v61, %v911_v63  ;;  %v1899_v5 = vpop.f32.mrb[40].mxu1 }
 0x202   : > { %v868_v6 = vadd.f32 %v1899_v5, %v2471_v14  ;;  %v859_v7 = vpop.f32.mrb[41].mxu1  ;;  %v965_v8 = vpack.c.bf16 %v945_v2, %v944_v0 }
 0x203   : > { %v860_v9 = vadd.f32 %v2471_v14, %v859_v7  ;;  %v1900_v10 = vpop.f32.mrb[42].mxu1  ;;  %v964_v11 = vpack.c.bf16 %v943_v4, %v942_v3 }
 0x204   : > { %v916_v12 = vmul.f32 0.1, %v868_v6  ;;  %v871_v13 = vadd.f32 %v1900_v10, %v2471_v14  ;;  %v862_v15 = vpop.f32.mrb[43].mxu1 }
 0x205   : > { %v914_v16 = vmul.f32 0.1, %v860_v9  ;;  %v863_v17 = vadd.f32 %v2471_v14, %v862_v15  ;;  %1941 = vmatprep.mubr.bf16.mxu0 %v964_v11 }
 0x206   : > { %v917_v18 = vmul.f32 0.1, %v871_v13  ;;  %1942 = vmatmul.mubr.bf16.gmra.mrb[36].mxu0 %v965_v8  ;;  %v948_v21 = vmax.f32 %v868_v6, %v916_v12 }
 0x207   : > { %v915_v19 = vmul.f32 0.1, %v863_v17  ;;  %v946_v23 = vmax.f32 %v860_v9, %v914_v16 }
 0x208   : > { %v949_v22 = vmax.f32 %v871_v13, %v917_v18 }
 0x209   : > { %v947_v1 = vmax.f32 %v863_v17, %v915_v19  ;;  %v1903_v47 = vpop.f32.mrb[44].mxu1 }
 0x20a   : > { %v884_v41 = vadd.f32 %v1903_v47, %v2471_v14  ;;  %v875_v20 = vpop.f32.mrb[45].mxu1  ;;  %v967_v24 = vpack.c.bf16 %v949_v22, %v948_v21 }
 0x20b   : > { %v876_v25 = vadd.f32 %v2471_v14, %v875_v20  ;;  %v1904_v26 = vpop.f32.mrb[46].mxu1  ;;  %v966_v27 = vpack.c.bf16 %v947_v1, %v946_v23 }
 0x20c   : > { %v920_v28 = vmul.f32 0.1, %v884_v41  ;;  %v887_v29 = vadd.f32 %v1904_v26, %v2471_v14  ;;  %v878_v30 = vpop.f32.mrb[47].mxu1 }
 0x20d   : > { %v918_v31 = vmul.f32 0.1, %v876_v25  ;;  %v879_v32 = vadd.f32 %v2471_v14, %v878_v30  ;;  %1945 = vmatprep.mubr.bf16.mxu0 %v966_v27  ;;  %v2510_v14 = vand.u32 127, %v1266_v42 }
 0x20e   : > { %v921_v33 = vmul.f32 0.1, %v887_v29  ;;  %1946 = vmatmul.mubr.bf16.gmra.mrb[40].mxu0 %v967_v24  ;;  %v952_v35 = vmax.f32 %v884_v41, %v920_v28 }
 0x20f   : > { %v919_v34 = vmul.f32 0.1, %v879_v32  ;;  %v950_v37 = vmax.f32 %v876_v25, %v918_v31  ;;  %vm1268_vm1 = vcmp.lt.s32.totalorder %v2510_v14, 10 }
 0x210   : > { %v953_v36 = vmax.f32 %v887_v29, %v921_v33 }
 0x211   : > { %v951_v38 = vmax.f32 %v879_v32, %v919_v34 }
 0x212   : > { %v969_v39 = vpack.c.bf16 %v953_v36, %v952_v35 }
 0x213   : > { %v968_v40 = vpack.c.bf16 %v951_v38, %v950_v37 }
 0x215   : > { %1949 = vmatprep.mubr.bf16.mxu0 %v968_v40 }
 0x216   : > { %1950 = vmatmul.mubr.bf16.gmra.mrb[44].mxu0 %v969_v39 }
 0x2b1   : > { %v1923_v44 = vpop.f32.mrb[16].mxu0 }
 0x2b2   : > { %v1084_v45 = vadd.f32 %v1923_v44, %v2508_v43  ;;  %v1075_v46 = vpop.f32.mrb[17].mxu0 }
 0x2b3   : > { %v1076_v48 = vadd.f32 %v2508_v43, %v1075_v46  ;;  %v1924_v49 = vpop.f32.mrb[18].mxu0 }
 0x2b4   : > { %v1204_v50 = vmul.f32 0.1, %v1084_v45  ;;  %v1087_v51 = vadd.f32 %v1924_v49, %v2508_v43  ;;  %v1078_v52 = vpop.f32.mrb[19].mxu0 }
 0x2b5   : > { %v1202_v53 = vmul.f32 0.1, %v1076_v48  ;;  %v1079_v54 = vadd.f32 %v2508_v43, %v1078_v52 }
 0x2b6   : > { %v1205_v55 = vmul.f32 0.1, %v1087_v51  ;;  %v1236_v56 = vmax.f32 %v1084_v45, %v1204_v50 }
 0x2b7   : > { %v1203_v57 = vmul.f32 0.1, %v1079_v54  ;;  %v1234_v58 = vmax.f32 %v1076_v48, %v1202_v53 }
 0x2b8   : > { %v2519_v59 = vsel %vm1268_vm1, %v1236_v56, -1e+30  ;;  %v1237_v60 = vmax.f32 %v1087_v51, %v1205_v55 }
 0x2b9   : > { %1305 = vmax.xlane.f32.xlu1 %v2519_v59  ;;  %v1927_v61 = vpop.f32.mrb[20].mxu0  ;;  %v2524_v62 = vsel %vm1268_vm1, %v1234_v58, -1e+30  ;;  %v1235_v63 = vmax.f32 %v1079_v54, %v1203_v57 }
 0x2ba   : > { %v1100_v0 = vadd.f32 %v1927_v61, %v2508_v43  ;;  %v1091_v2 = vpop.f32.mrb[21].mxu0  ;;  %1301 = vmax.xlane.f32.xlu0 %v2524_v62  ;;  %v2532_v8 = vsel %vm1268_vm1, %v1237_v60, -1e+30 }
 0x2bb   : > { %v1092_v3 = vadd.f32 %v2508_v43, %v1091_v2  ;;  %v1928_v4 = vpop.f32.mrb[22].mxu0  ;;  %v2538_v11 = vsel %vm1268_vm1, %v1235_v63, -1e+30 }
 0x2bc   : > { %v1208_v5 = vmul.f32 0.1, %v1100_v0  ;;  %v1103_v6 = vadd.f32 %v1928_v4, %v2508_v43  ;;  %v1094_v7 = vpop.f32.mrb[23].mxu0 }
 0x2bd   : > { %v1206_v9 = vmul.f32 0.1, %v1092_v3  ;;  %v1095_v10 = vadd.f32 %v2508_v43, %v1094_v7  ;;  %1307 = vmax.xlane.f32.xlu1 %v2532_v8 }
 0x2be   : > { %v1209_v12 = vmul.f32 0.1, %v1103_v6  ;;  %1303 = vmax.xlane.f32.xlu0 %v2538_v11  ;;  %v1240_v13 = vmax.f32 %v1100_v0, %v1208_v5 }
 0x2bf   : > { %v1207_v15 = vmul.f32 0.1, %v1095_v10  ;;  %v1238_v19 = vmax.f32 %v1092_v3, %v1206_v9 }
 0x2c0   : > { %v2543_v16 = vsel %vm1268_vm1, %v1240_v13, -1e+30  ;;  %v1241_v17 = vmax.f32 %v1103_v6, %v1209_v12 }
 0x2c1   : > { %v1931_v18 = vpop.f32.mrb[24].mxu0  ;;  %v1239_v1 = vmax.f32 %v1095_v10, %v1207_v15  ;;  %v2557_v28 = vsel %vm1268_vm1, %v1238_v19, -1e+30 }
 0x2c2   : > { %v1116_v21 = vadd.f32 %v1931_v18, %v2508_v43  ;;  %v1107_v22 = vpop.f32.mrb[25].mxu0  ;;  %1313 = vmax.xlane.f32.xlu0 %v2543_v16  ;;  %v2549_v23 = vsel %vm1268_vm1, %v1241_v17, -1e+30 }
 0x2c3   : > { %v1108_v47 = vadd.f32 %v2508_v43, %v1107_v22  ;;  %1315 = vmax.xlane.f32.xlu1 %v2549_v23  ;;  %v1932_v41 = vpop.f32.mrb[26].mxu0  ;;  %v2562_v30 = vsel %vm1268_vm1, %v1239_v1, -1e+30 }
 0x2c4   : > { %v1212_v20 = vmul.f32 0.1, %v1116_v21  ;;  %v1119_v24 = vadd.f32 %v1932_v41, %v2508_v43  ;;  %v1110_v25 = vpop.f32.mrb[27].mxu0 }
 0x2c5   : > { %v1210_v26 = vmul.f32 0.1, %v1108_v47  ;;  %v1111_v27 = vadd.f32 %v2508_v43, %v1110_v25 }
 0x2c6   : > { %v1213_v29 = vmul.f32 0.1, %v1119_v24  ;;  %1309 = vmax.xlane.f32.xlu0 %v2557_v28  ;;  %v1244_v31 = vmax.f32 %v1116_v21, %v1212_v20 }
 0x2c7   : > { %v1211_v32 = vmul.f32 0.1, %v1111_v27  ;;  %1311 = vmax.xlane.f32.xlu1 %v2562_v30  ;;  %v1242_v36 = vmax.f32 %v1108_v47, %v1210_v26 }
 0x2c8   : > { %v2567_v33 = vsel %vm1268_vm1, %v1244_v31, -1e+30  ;;  %v1245_v34 = vmax.f32 %v1119_v24, %v1213_v29 }
 0x2c9   : > { %v1935_v35 = vpop.f32.mrb[28].mxu0  ;;  %v1243_v40 = vmax.f32 %v1111_v27, %v1211_v32  ;;  %v2581_v51 = vsel %vm1268_vm1, %v1242_v36, -1e+30 }
 0x2ca   : > { %v1132_v37 = vadd.f32 %v1935_v35, %v2508_v43  ;;  %v1123_v38 = vpop.f32.mrb[29].mxu0  ;;  %1321 = vmax.xlane.f32.xlu0 %v2567_v33  ;;  %v2573_v39 = vsel %vm1268_vm1, %v1245_v34, -1e+30 }
 0x2cb   : > { %v1124_v42 = vadd.f32 %v2508_v43, %v1123_v38  ;;  %v1936_v44 = vpop.f32.mrb[30].mxu0  ;;  %1323 = vmax.xlane.f32.xlu1 %v2573_v39  ;;  %v2586_v53 = vsel %vm1268_vm1, %v1243_v40, -1e+30 }
 0x2cc   : > { %v1216_v45 = vmul.f32 0.1, %v1132_v37  ;;  %v1135_v46 = vadd.f32 %v1936_v44, %v2508_v43  ;;  %v1126_v48 = vpop.f32.mrb[31].mxu0 }
 0x2cd   : > { %v1214_v49 = vmul.f32 0.1, %v1124_v42  ;;  %v1127_v50 = vadd.f32 %v2508_v43, %v1126_v48 }
 0x2ce   : > { %v1217_v52 = vmul.f32 0.1, %v1135_v46  ;;  %1317 = vmax.xlane.f32.xlu0 %v2581_v51  ;;  %v1248_v54 = vmax.f32 %v1132_v37, %v1216_v45 }
 0x2cf   : > { %v1215_v55 = vmul.f32 0.1, %v1127_v50  ;;  %1319 = vmax.xlane.f32.xlu1 %v2586_v53  ;;  %v1246_v60 = vmax.f32 %v1124_v42, %v1214_v49 }
 0x2d0   : > { %v2591_v56 = vsel %vm1268_vm1, %v1248_v54, -1e+30  ;;  %v1249_v57 = vmax.f32 %v1135_v46, %v1217_v52 }
 0x2d1   : > { %v1939_v58 = vpop.f32.mrb[32].mxu0  ;;  %v1247_v2 = vmax.f32 %v1127_v50, %v1215_v55  ;;  %v2605_v12 = vsel %vm1268_vm1, %v1246_v60, -1e+30 }
 0x2d2   : > { %v1148_v61 = vadd.f32 %v1939_v58, %v2508_v43  ;;  %v1139_v63 = vpop.f32.mrb[33].mxu0  ;;  %1329 = vmax.xlane.f32.xlu0 %v2591_v56  ;;  %v2597_v0 = vsel %vm1268_vm1, %v1249_v57, -1e+30 }
 0x2d3   : > { %v1140_v3 = vadd.f32 %v2508_v43, %v1139_v63  ;;  %v1940_v4 = vpop.f32.mrb[34].mxu0  ;;  %1331 = vmax.xlane.f32.xlu1 %v2597_v0  ;;  %v2610_v15 = vsel %vm1268_vm1, %v1247_v2, -1e+30 }
 0x2d4   : > { %v1220_v5 = vmul.f32 0.1, %v1148_v61  ;;  %v1151_v6 = vadd.f32 %v1940_v4, %v2508_v43  ;;  %v1142_v7 = vpop.f32.mrb[35].mxu0 }
 0x2d5   : > { %v1218_v9 = vmul.f32 0.1, %v1140_v3  ;;  %v1143_v10 = vadd.f32 %v2508_v43, %v1142_v7 }
 0x2d6   : > { %v1221_v13 = vmul.f32 0.1, %v1151_v6  ;;  %1325 = vmax.xlane.f32.xlu0 %v2605_v12  ;;  %v1252_v17 = vmax.f32 %v1148_v61, %v1220_v5 }
 0x2d7   : > { %v1219_v18 = vmul.f32 0.1, %v1143_v10  ;;  %1327 = vmax.xlane.f32.xlu1 %v2610_v15  ;;  %v1250_v1 = vmax.f32 %v1140_v3, %v1218_v9 }
 0x2d8   : > { %v2615_v19 = vsel %vm1268_vm1, %v1252_v17, -1e+30  ;;  %v1253_v21 = vmax.f32 %v1151_v6, %v1221_v13 }
 0x2d9   : > { %v1943_v22 = vpop.f32.mrb[36].mxu0  ;;  %v1251_v24 = vmax.f32 %v1143_v10, %v1219_v18  ;;  %v2629_v35 = vsel %vm1268_vm1, %v1250_v1, -1e+30 }
 0x2da   : > { %v1164_v47 = vadd.f32 %v1943_v22, %v2508_v43  ;;  %v1155_v41 = vpop.f32.mrb[37].mxu0  ;;  %1337 = vmax.xlane.f32.xlu0 %v2615_v19  ;;  %v2621_v20 = vsel %vm1268_vm1, %v1253_v21, -1e+30 }
 0x2db   : > { %v1156_v25 = vadd.f32 %v2508_v43, %v1155_v41  ;;  %v1944_v26 = vpop.f32.mrb[38].mxu0  ;;  %1339 = vmax.xlane.f32.xlu1 %v2621_v20  ;;  %v2634_v37 = vsel %vm1268_vm1, %v1251_v24, -1e+30 }
 0x2dc   : > { %v1224_v27 = vmul.f32 0.1, %v1164_v47  ;;  %v1167_v29 = vadd.f32 %v1944_v26, %v2508_v43  ;;  %v1158_v31 = vpop.f32.mrb[39].mxu0 }
 0x2dd   : > { %v1222_v32 = vmul.f32 0.1, %v1156_v25  ;;  %v1159_v34 = vadd.f32 %v2508_v43, %v1158_v31 }
 0x2de   : > { %v1225_v36 = vmul.f32 0.1, %v1167_v29  ;;  %1333 = vmax.xlane.f32.xlu0 %v2629_v35  ;;  %v1256_v38 = vmax.f32 %v1164_v47, %v1224_v27 }
 0x2df   : > { %v1223_v40 = vmul.f32 0.1, %v1159_v34  ;;  %1335 = vmax.xlane.f32.xlu1 %v2634_v37  ;;  %v1254_v46 = vmax.f32 %v1156_v25, %v1222_v32 }
 0x2e0   : > { %v2639_v42 = vsel %vm1268_vm1, %v1256_v38, -1e+30  ;;  %v1257_v44 = vmax.f32 %v1167_v29, %v1225_v36 }
 0x2e1   : > { %v1947_v45 = vpop.f32.mrb[40].mxu0  ;;  %v1255_v52 = vmax.f32 %v1159_v34, %v1223_v40  ;;  %v2653_v2 = vsel %vm1268_vm1, %v1254_v46, -1e+30 }
 0x2e2   : > { %v1180_v48 = vadd.f32 %v1947_v45, %v2508_v43  ;;  %v1171_v49 = vpop.f32.mrb[41].mxu0  ;;  %1345 = vmax.xlane.f32.xlu0 %v2639_v42  ;;  %v2645_v50 = vsel %vm1268_vm1, %v1257_v44, -1e+30 }
 0x2e3   : > { %v1172_v54 = vadd.f32 %v2508_v43, %v1171_v49  ;;  %v1948_v55 = vpop.f32.mrb[42].mxu0  ;;  %1347 = vmax.xlane.f32.xlu1 %v2645_v50  ;;  %v2658_v4 = vsel %vm1268_vm1, %v1255_v52, -1e+30 }
 0x2e4   : > { %v1228_v57 = vmul.f32 0.1, %v1180_v48  ;;  %v1183_v58 = vadd.f32 %v1948_v55, %v2508_v43  ;;  %v1174_v60 = vpop.f32.mrb[43].mxu0 }
 0x2e5   : > { %v1226_v61 = vmul.f32 0.1, %v1172_v54  ;;  %v1175_v63 = vadd.f32 %v2508_v43, %v1174_v60 }
 0x2e6   : > { %v1229_v3 = vmul.f32 0.1, %v1183_v58  ;;  %1341 = vmax.xlane.f32.xlu0 %v2653_v2  ;;  %v1260_v5 = vmax.f32 %v1180_v48, %v1228_v57 }
 0x2e7   : > { %v1227_v6 = vmul.f32 0.1, %v1175_v63  ;;  %1343 = vmax.xlane.f32.xlu1 %v2658_v4  ;;  %v1258_v13 = vmax.f32 %v1172_v54, %v1226_v61 }
 0x2e8   : > { %v2663_v7 = vsel %vm1268_vm1, %v1260_v5, -1e+30  ;;  %v1261_v9 = vmax.f32 %v1183_v58, %v1229_v3 }
 0x2e9   : > { %v1951_v10 = vpop.f32.mrb[44].mxu0  ;;  %v1259_v22 = vmax.f32 %v1175_v63, %v1227_v6  ;;  %v2677_v29 = vsel %vm1268_vm1, %v1258_v13, -1e+30 }
 0x2ea   : > { %v1196_v17 = vadd.f32 %v1951_v10, %v2508_v43  ;;  %v1187_v18 = vpop.f32.mrb[45].mxu0  ;;  %1353 = vmax.xlane.f32.xlu0 %v2663_v7  ;;  %v2669_v21 = vsel %vm1268_vm1, %v1261_v9, -1e+30 }
 0x2eb   : > { %v1188_v1 = vadd.f32 %v2508_v43, %v1187_v18  ;;  %v1952_v47 = vpop.f32.mrb[46].mxu0  ;;  %1355 = vmax.xlane.f32.xlu1 %v2669_v21  ;;  %v2682_v31 = vsel %vm1268_vm1, %v1259_v22, -1e+30 }
 0x2ec   : > { %v1199_v41 = vadd.f32 %v1952_v47, %v2508_v43  ;;  %v1190_v24 = vpop.f32.mrb[47].mxu0  ;;  %v1232_v25 = vmul.f32 0.1, %v1196_v17 }
 0x2ed   : > { %v1230_v26 = vmul.f32 0.1, %v1188_v1  ;;  %v1191_v27 = vadd.f32 %v2508_v43, %v1190_v24 }
 0x2ee   : > { %1349 = vmax.xlane.f32.xlu0 %v2677_v29  ;;  %v1233_v32 = vmul.f32 0.1, %v1199_v41  ;;  %v1264_v40 = vmax.f32 %v1196_v17, %v1232_v25 }
 0x2ef   : > { %v1231_v34 = vmul.f32 0.1, %v1191_v27  ;;  %1351 = vmax.xlane.f32.xlu1 %v2682_v31  ;;  %v1262_v36 = vmax.f32 %v1188_v1, %v1230_v26 }
 0x2f0   : > { %v1265_v45 = vmax.f32 %v1199_v41, %v1233_v32  ;;  %v2697_v46 = vsel %vm1268_vm1, %v1264_v40, -1e+30 }
 0x2f1   : > { %v2687_v38 = vsel %vm1268_vm1, %v1262_v36, -1e+30  ;;  %v1263_v43 = vmax.f32 %v1191_v27, %v1231_v34 }
 0x2f2   : > { %1357 = vmax.xlane.f32.xlu0 %v2687_v38  ;;  %v2702_v48 = vsel %vm1268_vm1, %v1265_v45, -1e+30 }
 0x2f3   : > { %v2692_v44 = vsel %vm1268_vm1, %v1263_v43, -1e+30 }
 0x2f4   : > { %1359 = vmax.xlane.f32.xlu1 %v2692_v44 }
 0x2f6   : > { %1361 = vmax.xlane.f32.xlu0 %v2697_v46 }
 0x2f8   : > { %1363 = vmax.xlane.f32.xlu1 %v2702_v48 }
 0x346   : > { %v1306_v49 = vpop.xlane.xlu1 %1305 }
 0x347   : > { %v1367_v52 = vsub.f32 %v2519_v59, %v1306_v49  ;;  %v1302_v54 = vpop.xlane.xlu0 %1301 }
 0x348   : > { %v1365_v55 = vsub.f32 %v2524_v62, %v1302_v54 }
 0x349   : > { %v1401_v57 = vmul.f32 1.442695, %v1367_v52 }
 0x34a   : > { %v1397_v58 = vmul.f32 1.442695, %v1365_v55  ;;  %v1308_v60 = vpop.xlane.xlu1 %1307 }
 0x34b   : > { %2022 = vpow2.f32 %v1401_v57  ;;  %v1368_v61 = vsub.f32 %v2532_v8, %v1308_v60  ;;  %v1304_v63 = vpop.xlane.xlu0 %1303 }
 0x34c   : > { %v1366_v3 = vsub.f32 %v2538_v11, %v1304_v63  ;;  %2024 = vpow2.f32 %v1397_v58 }
 0x34d   : > { %v1403_v14 = vmul.f32 1.442695, %v1368_v61 }
 0x34e   : > { %v1399_v5 = vmul.f32 1.442695, %v1366_v3 }
 0x34f   : > { %2026 = vpow2.f32 %v1403_v14  ;;  %v1314_v6 = vpop.xlane.xlu0 %1313 }
 0x350   : > { %v1371_v9 = vsub.f32 %v2543_v16, %v1314_v6  ;;  %v1316_v59 = vpop.xlane.xlu1 %1315  ;;  %2028 = vpow2.f32 %v1399_v5 }
 0x351   : > { %v1372_v10 = vsub.f32 %v2549_v23, %v1316_v59 }
 0x352   : > { %v1409_v62 = vmul.f32 1.442695, %v1371_v9 }
 0x353   : > { %v1411_v13 = vmul.f32 1.442695, %v1372_v10  ;;  %v1310_v17 = vpop.xlane.xlu0 %1309 }
 0x354   : > { %2030 = vpow2.f32 %v1409_v62  ;;  %v1369_v8 = vsub.f32 %v2557_v28, %v1310_v17  ;;  %v1312_v18 = vpop.xlane.xlu1 %1311 }
 0x355   : > { %v2712_v22 = vpop.eup %2022  ;;  %v1370_v11 = vsub.f32 %v2562_v30, %v1312_v18  ;;  %2032 = vpow2.f32 %v1411_v13 }
 0x356   : > { %v1405_v1 = vmul.f32 1.442695, %v1369_v8  ;;  %1465 = vadd.xlane.f32.xlu0 %v2712_v22  ;;  %v2716_v41 = vpop.eup %2024 }
 0x357   : > { %v1407_v16 = vmul.f32 1.442695, %v1370_v11  ;;  %v1322_v47 = vpop.xlane.xlu0 %1321 }
 0x358   : > { %2034 = vpow2.f32 %v1405_v1  ;;  %v1375_v23 = vsub.f32 %v2567_v33, %v1322_v47  ;;  %v1324_v24 = vpop.xlane.xlu1 %1323 }
 0x359   : > { %v2719_v25 = vpop.eup %2026  ;;  %v1376_v28 = vsub.f32 %v2573_v39, %v1324_v24  ;;  %2036 = vpow2.f32 %v1407_v16 }
 0x35a   : > { %v1417_v26 = vmul.f32 1.442695, %v1375_v23  ;;  %1467 = vadd.xlane.f32.xlu1 %v2719_v25  ;;  %1461 = vadd.xlane.f32.xlu0 %v2716_v41  ;;  %v2725_v36 = vpop.eup %2028 }
 0x35b   : > { %v1419_v30 = vmul.f32 1.442695, %v1376_v28  ;;  %v1318_v27 = vpop.xlane.xlu0 %1317 }
 0x35c   : > { %2038 = vpow2.f32 %v1417_v26  ;;  %v1373_v32 = vsub.f32 %v2581_v51, %v1318_v27  ;;  %v1320_v34 = vpop.xlane.xlu1 %1319 }
 0x35d   : > { %v1374_v33 = vsub.f32 %v2586_v53, %v1320_v34  ;;  %2040 = vpow2.f32 %v1419_v30 }
 0x35e   : > { %v2728_v43 = vpop.eup %2030  ;;  %v1413_v40 = vmul.f32 1.442695, %v1373_v32  ;;  %1463 = vadd.xlane.f32.xlu1 %v2725_v36 }
 0x35f   : > { %v1415_v39 = vmul.f32 1.442695, %v1374_v33  ;;  %1473 = vadd.xlane.f32.xlu0 %v2728_v43  ;;  %v1330_v45 = vpop.xlane.xlu0 %1329  ;;  %v2733_v51 = vpop.eup %2032 }
 0x360   : > { %2042 = vpow2.f32 %v1413_v40  ;;  %v1379_v49 = vsub.f32 %v2591_v56, %v1330_v45  ;;  %v1332_v52 = vpop.xlane.xlu1 %1331 }
 0x361   : > { %v1380_v54 = vsub.f32 %v2597_v0, %v1332_v52  ;;  %2044 = vpow2.f32 %v1415_v39 }
 0x362   : > { %v2736_v55 = vpop.eup %2034  ;;  %v1425_v53 = vmul.f32 1.442695, %v1379_v49  ;;  %1475 = vadd.xlane.f32.xlu1 %v2733_v51 }
 0x363   : > { %v1427_v57 = vmul.f32 1.442695, %v1380_v54  ;;  %1469 = vadd.xlane.f32.xlu0 %v2736_v55  ;;  %v1326_v58 = vpop.xlane.xlu0 %1325  ;;  %v2741_v56 = vpop.eup %2036 }
 0x364   : > { %2046 = vpow2.f32 %v1425_v53  ;;  %v1377_v60 = vsub.f32 %v2605_v12, %v1326_v58  ;;  %v1328_v61 = vpop.xlane.xlu1 %1327 }
 0x365   : > { %v1378_v63 = vsub.f32 %v2610_v15, %v1328_v61  ;;  %2048 = vpow2.f32 %v1427_v57 }
 0x366   : > { %v2744_v3 = vpop.eup %2038  ;;  %v1421_v0 = vmul.f32 1.442695, %v1377_v60  ;;  %1471 = vadd.xlane.f32.xlu1 %v2741_v56 }
 0x367   : > { %v1423_v14 = vmul.f32 1.442695, %v1378_v63  ;;  %1481 = vadd.xlane.f32.xlu0 %v2744_v3  ;;  %v1338_v5 = vpop.xlane.xlu0 %1337  ;;  %v2749_v12 = vpop.eup %2040 }
 0x368   : > { %2050 = vpow2.f32 %v1421_v0  ;;  %v1383_v6 = vsub.f32 %v2615_v19, %v1338_v5  ;;  %v1340_v9 = vpop.xlane.xlu1 %1339 }
 0x369   : > { %v1384_v59 = vsub.f32 %v2621_v20, %v1340_v9  ;;  %2052 = vpow2.f32 %v1423_v14 }
 0x36a   : > { %v2752_v10 = vpop.eup %2042  ;;  %v1433_v15 = vmul.f32 1.442695, %v1383_v6  ;;  %1483 = vadd.xlane.f32.xlu1 %v2749_v12 }
 0x36b   : > { %v1435_v62 = vmul.f32 1.442695, %v1384_v59  ;;  %1477 = vadd.xlane.f32.xlu0 %v2752_v10  ;;  %v1334_v13 = vpop.xlane.xlu0 %1333  ;;  %v2757_v19 = vpop.eup %2044 }
 0x36c   : > { %2054 = vpow2.f32 %v1433_v15  ;;  %v1381_v17 = vsub.f32 %v2629_v35, %v1334_v13  ;;  %v1336_v8 = vpop.xlane.xlu1 %1335 }
 0x36d   : > { %v1382_v18 = vsub.f32 %v2634_v37, %v1336_v8  ;;  %2056 = vpow2.f32 %v1435_v62 }
 0x36e   : > { %v2760_v11 = vpop.eup %2046  ;;  %v1429_v20 = vmul.f32 1.442695, %v1381_v17  ;;  %1479 = vadd.xlane.f32.xlu1 %v2757_v19 }
 0x36f   : > { %v1431_v1 = vmul.f32 1.442695, %v1382_v18  ;;  %1489 = vadd.xlane.f32.xlu0 %v2760_v11  ;;  %v1346_v16 = vpop.xlane.xlu0 %1345  ;;  %v2765_v35 = vpop.eup %2048 }
 0x370   : > { %2058 = vpow2.f32 %v1429_v20  ;;  %v1387_v47 = vsub.f32 %v2639_v42, %v1346_v16  ;;  %v1348_v23 = vpop.xlane.xlu1 %1347 }
 0x371   : > { %v1388_v24 = vsub.f32 %v2645_v50, %v1348_v23  ;;  %2060 = vpow2.f32 %v1431_v1 }
 0x372   : > { %v2768_v28 = vpop.eup %2050  ;;  %v1441_v37 = vmul.f32 1.442695, %v1387_v47  ;;  %1491 = vadd.xlane.f32.xlu1 %v2765_v35 }
 0x373   : > { %v1443_v26 = vmul.f32 1.442695, %v1388_v24  ;;  %1485 = vadd.xlane.f32.xlu0 %v2768_v28  ;;  %v1342_v30 = vpop.xlane.xlu0 %1341  ;;  %v2773_v42 = vpop.eup %2052 }
 0x374   : > { %2062 = vpow2.f32 %v1441_v37  ;;  %v1385_v27 = vsub.f32 %v2653_v2, %v1342_v30  ;;  %v1344_v32 = vpop.xlane.xlu1 %1343 }
 0x375   : > { %v1386_v34 = vsub.f32 %v2658_v4, %v1344_v32  ;;  %2064 = vpow2.f32 %v1443_v26 }
 0x376   : > { %v2776_v33 = vpop.eup %2054  ;;  %v1437_v50 = vmul.f32 1.442695, %v1385_v27  ;;  %1487 = vadd.xlane.f32.xlu1 %v2773_v42 }
 0x377   : > { %v1439_v40 = vmul.f32 1.442695, %v1386_v34  ;;  %1497 = vadd.xlane.f32.xlu0 %v2776_v33  ;;  %v1354_v39 = vpop.xlane.xlu0 %1353  ;;  %v2781_v2 = vpop.eup %2056 }
 0x378   : > { %2066 = vpow2.f32 %v1437_v50  ;;  %v1391_v45 = vsub.f32 %v2663_v7, %v1354_v39  ;;  %v1356_v49 = vpop.xlane.xlu1 %1355 }
 0x379   : > { %v1392_v52 = vsub.f32 %v2669_v21, %v1356_v49  ;;  %2068 = vpow2.f32 %v1439_v40 }
 0x37a   : > { %v2784_v54 = vpop.eup %2058  ;;  %v1449_v4 = vmul.f32 1.442695, %v1391_v45  ;;  %1499 = vadd.xlane.f32.xlu1 %v2781_v2 }
 0x37b   : > { %v1451_v53 = vmul.f32 1.442695, %v1392_v52  ;;  %1493 = vadd.xlane.f32.xlu0 %v2784_v54  ;;  %v1350_v57 = vpop.xlane.xlu0 %1349  ;;  %v2789_v7 = vpop.eup %2060 }
 0x37c   : > { %2070 = vpow2.f32 %v1449_v4  ;;  %v1389_v58 = vsub.f32 %v2677_v29, %v1350_v57  ;;  %v1352_v60 = vpop.xlane.xlu1 %1351 }
 0x37d   : > { %v1390_v61 = vsub.f32 %v2682_v31, %v1352_v60  ;;  %2072 = vpow2.f32 %v1451_v53 }
 0x37e   : > { %v2792_v63 = vpop.eup %2062  ;;  %v1445_v21 = vmul.f32 1.442695, %v1389_v58  ;;  %1495 = vadd.xlane.f32.xlu1 %v2789_v7 }
 0x37f   : > { %v1447_v0 = vmul.f32 1.442695, %v1390_v61  ;;  %1505 = vadd.xlane.f32.xlu0 %v2792_v63  ;;  %v1358_v14 = vpop.xlane.xlu0 %1357  ;;  %v2797_v6 = vpop.eup %2064 }
 0x380   : > { %2074 = vpow2.f32 %v1445_v21  ;;  %v1393_v5 = vsub.f32 %v2687_v38, %v1358_v14 }
 0x381   : > { %v1360_v29 = vpop.xlane.xlu1 %1359  ;;  %2076 = vpow2.f32 %v1447_v0 }
 0x382   : > { %v2799_v9 = vpop.eup %2066  ;;  %v1453_v59 = vmul.f32 1.442695, %v1393_v5  ;;  %v1394_v31 = vsub.f32 %v2692_v44, %v1360_v29  ;;  %1507 = vadd.xlane.f32.xlu1 %v2797_v6 }
 0x383   : > { %1501 = vadd.xlane.f32.xlu0 %v2799_v9  ;;  %v1362_v15 = vpop.xlane.xlu0 %1361  ;;  %v2805_v17 = vpop.eup %2068 }
 0x384   : > { %2078 = vpow2.f32 %v1453_v59  ;;  %v1455_v62 = vmul.f32 1.442695, %v1394_v31  ;;  %v1395_v13 = vsub.f32 %v2697_v46, %v1362_v15 }
 0x385   : > { %v1364_v38 = vpop.xlane.xlu1 %1363 }
 0x386   : > { %v2807_v8 = vpop.eup %2070  ;;  %2080 = vpow2.f32 %v1455_v62  ;;  %v1457_v18 = vmul.f32 1.442695, %v1395_v13  ;;  %v1396_v20 = vsub.f32 %v2702_v48, %v1364_v38  ;;  %1503 = vadd.xlane.f32.xlu1 %v2805_v17 }
 0x387   : > { %1513 = vadd.xlane.f32.xlu0 %v2807_v8  ;;  %v2812_v1 = vpop.eup %2072 }
 0x388   : > { %2082 = vpow2.f32 %v1457_v18  ;;  %v1459_v44 = vmul.f32 1.442695, %v1396_v20 }
 0x38a   : > { %v2814_v16 = vpop.eup %2074  ;;  %2084 = vpow2.f32 %v1459_v44  ;;  %1515 = vadd.xlane.f32.xlu1 %v2812_v1 }
 0x38b   : > { %1509 = vadd.xlane.f32.xlu0 %v2814_v16  ;;  %v2818_v46 = vpop.eup %2076 }
 0x38e   : > { %v2820_v47 = vpop.eup %2078  ;;  %1511 = vadd.xlane.f32.xlu1 %v2818_v46 }
 0x38f   : > { %1517 = vadd.xlane.f32.xlu0 %v2820_v47 }
 0x390   : > { %v2824_v48 = vpop.eup %2080 }
 0x392   : > { %v2826_v23 = vpop.eup %2082  ;;  %1519 = vadd.xlane.f32.xlu1 %v2824_v48 }
 0x393   : > { %1521 = vadd.xlane.f32.xlu0 %v2826_v23 }
 0x394   : > { %v2830_v24 = vpop.eup %2084 }
 0x396   : > { %1523 = vadd.xlane.f32.xlu1 %v2830_v24 }
 0x3e3   : > { %v1466_v37 = vpop.xlane.xlu0 %1465 }
 0x3e4   : > { %2086 = vrcp.f32 %v1466_v37 }
 0x3e7   : > { %v1468_v26 = vpop.xlane.xlu1 %1467  ;;  %v1462_v30 = vpop.xlane.xlu0 %1461 }
 0x3e8   : > { %2088 = vrcp.f32 %v1468_v26 }
 0x3e9   : > { %2090 = vrcp.f32 %v1462_v30 }
 0x3eb   : > { %v1464_v27 = vpop.xlane.xlu1 %1463 }
 0x3ec   : > { %2092 = vrcp.f32 %v1464_v27  ;;  %v1474_v32 = vpop.xlane.xlu0 %1473 }
 0x3ed   : > { %2094 = vrcp.f32 %v1474_v32 }
 0x3ee   : > { %v2087_v34 = vpop.eup %2086 }
 0x3ef   : > { %v1530_v50 = vmul.f32 %v2087_v34, %v2712_v22  ;;  %v1476_v40 = vpop.xlane.xlu1 %1475 }
 0x3f0   : > { %2096 = vrcp.f32 %v1476_v40  ;;  %v1470_v39 = vpop.xlane.xlu0 %1469 }
 0x3f1   : > { %1591 = vst [vmem:[%s2837_s8 + $0x10] sm:$0xff] %v1530_v50  ;;  %2098 = vrcp.f32 %v1470_v39 }
 0x3f2   : > { %v2089_v45 = vpop.eup %2088 }
 0x3f3   : > { %v2091_v49 = vpop.eup %2090  ;;  %v1532_v52 = vmul.f32 %v2089_v45, %v2719_v25  ;;  %v1472_v4 = vpop.xlane.xlu1 %1471 }
 0x3f4   : > { %v1526_v53 = vmul.f32 %v2091_v49, %v2716_v41  ;;  %2100 = vrcp.f32 %v1472_v4  ;;  %v1482_v22 = vpop.xlane.xlu0 %1481 }
 0x3f5   : > { %1592 = vst [vmem:[%s2837_s8 + $0x18] sm:$0xff] %v1532_v52  ;;  %2102 = vrcp.f32 %v1482_v22 }
 0x3f6   : > { %v2093_v57 = vpop.eup %2092  ;;  %1589 = vst [vmem:[%s2837_s8] sm:$0xff] %v1526_v53 }
 0x3f7   : > { %v2095_v58 = vpop.eup %2094  ;;  %v1528_v60 = vmul.f32 %v2093_v57, %v2725_v36  ;;  %v1484_v61 = vpop.xlane.xlu1 %1483 }
 0x3f8   : > { %v1538_v21 = vmul.f32 %v2095_v58, %v2728_v43  ;;  %2104 = vrcp.f32 %v1484_v61  ;;  %v1478_v25 = vpop.xlane.xlu0 %1477 }
 0x3f9   : > { %1590 = vst [vmem:[%s2837_s8 + $0x8] sm:$0xff] %v1528_v60  ;;  %2106 = vrcp.f32 %v1478_v25 }
 0x3fa   : > { %v2097_v41 = vpop.eup %2096  ;;  %1595 = vst [vmem:[%s2837_s8 + $0x30] sm:$0xff] %v1538_v21 }
 0x3fb   : > { %v2099_v0 = vpop.eup %2098  ;;  %v1540_v14 = vmul.f32 %v2097_v41, %v2733_v51  ;;  %v1480_v5 = vpop.xlane.xlu1 %1479 }
 0x3fc   : > { %v1534_v29 = vmul.f32 %v2099_v0, %v2736_v55  ;;  %2108 = vrcp.f32 %v1480_v5  ;;  %v1490_v36 = vpop.xlane.xlu0 %1489 }
 0x3fd   : > { %1596 = vst [vmem:[%s2837_s8 + $0x38] sm:$0xff] %v1540_v14  ;;  %2110 = vrcp.f32 %v1490_v36 }
 0x3fe   : > { %v2101_v43 = vpop.eup %2100  ;;  %1593 = vst [vmem:[%s2837_s8 + $0x20] sm:$0xff] %v1534_v29 }
 0x3ff   : > { %v2103_v59 = vpop.eup %2102  ;;  %v1536_v31 = vmul.f32 %v2101_v43, %v2741_v56  ;;  %v1492_v15 = vpop.xlane.xlu1 %1491 }
 0x400   : > { %v1546_v62 = vmul.f32 %v2103_v59, %v2744_v3  ;;  %2112 = vrcp.f32 %v1492_v15  ;;  %v1486_v51 = vpop.xlane.xlu0 %1485 }
 0x401   : > { %1594 = vst [vmem:[%s2837_s8 + $0x28] sm:$0xff] %v1536_v31  ;;  %2114 = vrcp.f32 %v1486_v51 }
 0x402   : > { %v2105_v55 = vpop.eup %2104  ;;  %1599 = vst [vmem:[%s2837_s8 + $0x50] sm:$0xff] %v1546_v62 }
 0x403   : > { %v2107_v13 = vpop.eup %2106  ;;  %v1548_v38 = vmul.f32 %v2105_v55, %v2749_v12  ;;  %v1488_v18 = vpop.xlane.xlu1 %1487 }
 0x404   : > { %v1542_v20 = vmul.f32 %v2107_v13, %v2752_v10  ;;  %2116 = vrcp.f32 %v1488_v18  ;;  %v1498_v56 = vpop.xlane.xlu0 %1497 }
 0x405   : > { %1600 = vst [vmem:[%s2837_s8 + $0x58] sm:$0xff] %v1548_v38  ;;  %2118 = vrcp.f32 %v1498_v56 }
 0x406   : > { %v2109_v3 = vpop.eup %2108  ;;  %1597 = vst [vmem:[%s2837_s8 + $0x40] sm:$0xff] %v1542_v20 }
 0x407   : > { %v2111_v44 = vpop.eup %2110  ;;  %v1544_v37 = vmul.f32 %v2109_v3, %v2757_v19  ;;  %v1500_v26 = vpop.xlane.xlu1 %1499 }
 0x408   : > { %v1554_v30 = vmul.f32 %v2111_v44, %v2760_v11  ;;  %2120 = vrcp.f32 %v1500_v26  ;;  %v1494_v12 = vpop.xlane.xlu0 %1493 }
 0x409   : > { %1598 = vst [vmem:[%s2837_s8 + $0x48] sm:$0xff] %v1544_v37  ;;  %2122 = vrcp.f32 %v1494_v12 }
 0x40a   : > { %v2113_v10 = vpop.eup %2112  ;;  %1603 = vst [vmem:[%s2837_s8 + $0x70] sm:$0xff] %v1554_v30 }
 0x40b   : > { %v2115_v27 = vpop.eup %2114  ;;  %v1556_v32 = vmul.f32 %v2113_v10, %v2765_v35  ;;  %v1496_v34 = vpop.xlane.xlu1 %1495 }
 0x40c   : > { %v1550_v50 = vmul.f32 %v2115_v27, %v2768_v28  ;;  %2124 = vrcp.f32 %v1496_v34  ;;  %v1506_v19 = vpop.xlane.xlu0 %1505 }
 0x40d   : > { %1604 = vst [vmem:[%s2837_s8 + $0x78] sm:$0xff] %v1556_v32  ;;  %2126 = vrcp.f32 %v1506_v19 }
 0x40e   : > { %v2117_v11 = vpop.eup %2116  ;;  %1601 = vst [vmem:[%s2837_s8 + $0x60] sm:$0xff] %v1550_v50 }
 0x40f   : > { %v2119_v40 = vpop.eup %2118  ;;  %v1552_v39 = vmul.f32 %v2117_v11, %v2773_v42  ;;  %v1508_v45 = vpop.xlane.xlu1 %1507 }
 0x410   : > { %v1562_v49 = vmul.f32 %v2119_v40, %v2776_v33  ;;  %2128 = vrcp.f32 %v1508_v45  ;;  %v1502_v35 = vpop.xlane.xlu0 %1501 }
 0x411   : > { %1602 = vst [vmem:[%s2837_s8 + $0x68] sm:$0xff] %v1552_v39  ;;  %2130 = vrcp.f32 %v1502_v35 }
 0x412   : > { %v2121_v28 = vpop.eup %2120  ;;  %1607 = vst [vmem:[%s2837_s8 + $0x90] sm:$0xff] %v1562_v49 }
 0x413   : > { %v2123_v52 = vpop.eup %2122  ;;  %v1564_v4 = vmul.f32 %v2121_v28, %v2781_v2  ;;  %v1504_v53 = vpop.xlane.xlu1 %1503 }
 0x414   : > { %v1558_v22 = vmul.f32 %v2123_v52, %v2784_v54  ;;  %2132 = vrcp.f32 %v1504_v53  ;;  %v1514_v42 = vpop.xlane.xlu0 %1513 }
 0x415   : > { %1608 = vst [vmem:[%s2837_s8 + $0x98] sm:$0xff] %v1564_v4  ;;  %2134 = vrcp.f32 %v1514_v42 }
 0x416   : > { %v2125_v33 = vpop.eup %2124  ;;  %1605 = vst [vmem:[%s2837_s8 + $0x80] sm:$0xff] %v1558_v22 }
 0x417   : > { %v2127_v57 = vpop.eup %2126  ;;  %v1560_v58 = vmul.f32 %v2125_v33, %v2789_v7  ;;  %v1516_v60 = vpop.xlane.xlu1 %1515 }
 0x418   : > { %v1570_v61 = vmul.f32 %v2127_v57, %v2792_v63  ;;  %2136 = vrcp.f32 %v1516_v60  ;;  %v1510_v2 = vpop.xlane.xlu0 %1509 }
 0x419   : > { %1606 = vst [vmem:[%s2837_s8 + $0x88] sm:$0xff] %v1560_v58  ;;  %2138 = vrcp.f32 %v1510_v2 }
 0x41a   : > { %v2129_v54 = vpop.eup %2128  ;;  %1611 = vst [vmem:[%s2837_s8 + $0xb0] sm:$0xff] %v1570_v61 }
 0x41b   : > { %v2131_v21 = vpop.eup %2130  ;;  %v1572_v25 = vmul.f32 %v2129_v54, %v2797_v6  ;;  %v1512_v41 = vpop.xlane.xlu1 %1511 }
 0x41c   : > { %v1566_v0 = vmul.f32 %v2131_v21, %v2799_v9  ;;  %2140 = vrcp.f32 %v1512_v41  ;;  %v1518_v7 = vpop.xlane.xlu0 %1517 }
 0x41d   : > { %1612 = vst [vmem:[%s2837_s8 + $0xb8] sm:$0xff] %v1572_v25  ;;  %2142 = vrcp.f32 %v1518_v7 }
 0x41e   : > { %v2133_v63 = vpop.eup %2132  ;;  %1609 = vst [vmem:[%s2837_s8 + $0xa0] sm:$0xff] %v1566_v0 }
 0x41f   : > { %v2135_v14 = vpop.eup %2134  ;;  %v1568_v5 = vmul.f32 %v2133_v63, %v2805_v17  ;;  %v1520_v29 = vpop.xlane.xlu1 %1519 }
 0x420   : > { %v1578_v36 = vmul.f32 %v2135_v14, %v2807_v8  ;;  %2144 = vrcp.f32 %v1520_v29  ;;  %v1522_v6 = vpop.xlane.xlu0 %1521 }
 0x421   : > { %1610 = vst [vmem:[%s2837_s8 + $0xa8] sm:$0xff] %v1568_v5  ;;  %2146 = vrcp.f32 %v1522_v6 }
 0x422   : > { %v2137_v9 = vpop.eup %2136  ;;  %1615 = vst [vmem:[%s2837_s8 + $0xd0] sm:$0xff] %v1578_v36 }
 0x423   : > { %v2139_v43 = vpop.eup %2138  ;;  %v1580_v59 = vmul.f32 %v2137_v9, %v2812_v1  ;;  %v1524_v31 = vpop.xlane.xlu1 %1523 }
 0x424   : > { %v1574_v17 = vmul.f32 %v2139_v43, %v2814_v16  ;;  %2148 = vrcp.f32 %v1524_v31 }
 0x425   : > { %1616 = vst [vmem:[%s2837_s8 + $0xd8] sm:$0xff] %v1580_v59 }
 0x426   : > { %v2141_v8 = vpop.eup %2140  ;;  %1613 = vst [vmem:[%s2837_s8 + $0xc0] sm:$0xff] %v1574_v17 }
 0x427   : > { %v2143_v15 = vpop.eup %2142  ;;  %v1576_v62 = vmul.f32 %v2141_v8, %v2818_v46 }
 0x428   : > { %v1582_v51 = vmul.f32 %v2143_v15, %v2820_v47 }
 0x429   : > { %1614 = vst [vmem:[%s2837_s8 + $0xc8] sm:$0xff] %v1576_v62 }
 0x42a   : > { %v2145_v55 = vpop.eup %2144  ;;  %1617 = vst [vmem:[%s2837_s8 + $0xe0] sm:$0xff] %v1582_v51 }
 0x42b   : > { %v2147_v1 = vpop.eup %2146  ;;  %v1584_v16 = vmul.f32 %v2145_v55, %v2824_v48 }
 0x42c   : > { %v1586_v13 = vmul.f32 %v2147_v1, %v2826_v23 }
 0x42d   : > { %1618 = vst [vmem:[%s2837_s8 + $0xe8] sm:$0xff] %v1584_v16 }
 0x42e   : > { %v2149_v38 = vpop.eup %2148  ;;  %1619 = vst [vmem:[%s2837_s8 + $0xf0] sm:$0xff] %v1586_v13 }
 0x42f   : > { %v1588_v46 = vmul.f32 %v2149_v38, %v2830_v24 }
 0x431   : > { %1620 = vst [vmem:[%s2837_s8 + $0xf8] sm:$0xff] %v1588_v46 }
 0x432   : > { %2163 = shalt.err (!%p2160_p3)
}
 0x433   : > { %s2164_s20 = scalar_lea.hbm %s2905_s15, 4096  ;;  %s2168_s29 = scalar_lea.hbm %s2961_s7, 8192 }
 0x434   : > { %p2165_p4 = scmp.ne.s32.totalorder %s2905_s15, %s2164_s20  ;;  %p2169_p9 = scmp.lt.u32.totalorder %s2905_s15, %s2961_s7 }
 0x435   : > { %p2170_p10 = scmp.lt.u32.totalorder %s2168_s29, %s2164_s20  ;;  %p2172_p12 = scmp.lt.u32.totalorder %s2164_s20, %s2905_s15 }
 0x436   : > { %p2166_p7 = pnand %p2165_p4, %p2295_p5 }
 0x437   : > { %p2171_p11 = por %p2170_p10, %p2169_p9 }
 0x438   : > { %p2167_p8 = pneg %p2166_p7 }
 0x439   : > { %p2173_p13 = por %p2172_p12, %p2171_p11 }
 0x43b   : > { %p2174_p0 = pnand %p2173_p13, %p2167_p8 }
 0x43d   : > { %2177 = shalt.err (!%p2174_p0)
}
 0x43e   : > { %s2215_s13 = smov 128   ;;  %s2216_s14 = smov 8  }
 0x43f   : > { %1961 = dma.vmem_to_hbm [thread:$0]  (%p2295_p5), %s2907_s23, 4096, %s2905_s15, %s2913_s28, %s2215_s13, %s2215_s13, %s2216_s14  }
 0x440 PF: > { %p1967_p1 = scmp.ge.s32.totalorder %s2212_s27, 2  ;;  %s1650_s16 = sand.u32 1, %s2200_s24  }
 0x441   : > { %s1651_s17 = scalar_lea.sflag [#allocation3], %s1650_s16 }
 0x442   : > { %p1964_p2 = pnand %p1967_p1, %p2299_p6 }
 0x444   : > { %2195 = dma.done.wait (!%p1964_p2), %s1651_s17, 4096  }
 0x445   : > { %2197 = vsyncadd (!%p1964_p2), %s1651_s17, 4294963200  ;;  %p17_p3 = scmp.ge.s32.totalorder %s2282_s30, 4   ;;  %s2964_s24 = smov %s2204_s25 }
 0x446   : > { %s2965_s25 = smov %s2208_s26  ;;  %s2966_s26 = smov %s2293_s10 }
 0x447   : > { %s2967_s27 = smov %s2282_s30  ;;  %19 = sbr.rel (!%p17_p3) target bundleno = 3 (0x3), region = 83 }
 0x44e   :  { %1656 = vsyncpa [#allocation3], 1 }
 0x44f   :  { %1658 = vsyncpa [#allocation3 + $0x1], 1 }

// kernel: tpu_custom_call.1
= control target key start
LH: loop header
LB: loop body
LE: loop exit
PB: predicated region body
PF: predicated region fallthrough
CT: control target
= control target key end

     0   :  { %12 = vsyncpa [#allocation3], 0  ;;  %s2954_s0 = inlined_call_operand.vmem [shape: f32[512,64], index: 0, kind: input, shape index: {}]   ;;  %s2955_s1 = inlined_call_operand.vmem [shape: bf16[64,128], index: 1, kind: input, shape index: {}]   ;;  %s2956_s2 = inlined_call_operand.vmem [shape: f32[1,128], index: 2, kind: input, shape index: {}]   ;;  %s2957_s3 = inlined_call_operand.vmem [shape: bf16[128,128], index: 3, kind: input, shape index: {}]   ;;  %s2958_s4 = inlined_call_operand.vmem [shape: f32[1,128], index: 4, kind: input, shape index: {}]   ;;  %s2959_s5 = inlined_call_operand.vmem [shape: bf16[128,128], index: 5, kind: input, shape index: {}]   ;;  %s2960_s6 = inlined_call_operand.vmem [shape: f32[1,128], index: 6, kind: input, shape index: {}]   ;;  %s2961_s7 = inlined_call_operand.hbm [shape: f32[512,128], index: 7, kind: output, shape index: {}]  }
   0x1   :  { %14 = vsyncpa [#allocation3 + $0x1], 0  ;;  %s2257_s24 = smov 0   ;;  %s2259_s25 = smov 0  }
   0x2   :  { %s2261_s26 = smov 0   ;;  %s2263_s27 = smov 0  }
   0x3 LB: > { %s2278_s28 = sadd.s32 4294967295, %s2212_s27   ;;  %s1697_s29 = sadd.s32 4294967294, %s2212_s27   ;;  %s2212_s27 = sphi %s2263_s27, %s2967_s27   ;;  %s2208_s26 = sphi %s2261_s26, %s2966_s26   ;;  %s2204_s25 = sphi %s2259_s25, %s2965_s25   ;;  %s2200_s24 = sphi %s2257_s24, %s2964_s24  }
   0x4   : > { %s2282_s30 = sadd.s32 1, %s2212_s27   ;;  %s179_s8 = sadd.s32 1, %s2208_s26 }
   0x5   : > { %s176_s9 = ssub.s32 %s2212_s27, %s2282_s30  ;;  %p189_p0 = scmp.ne.s32.totalorder %s2208_s26, %s2204_s25 }
   0x6   : > { %p177_p1 = scmp.eq.s32.totalorder %s176_s9, 0  ;;  %p190_p2 = scmp.eq.s32.totalorder %s2278_s28, 1 }
   0x7   : > { %p195_p3 = scmp.ne.s32.totalorder %s2204_s25, %s2200_s24  ;;  %p196_p4 = scmp.eq.s32.totalorder %s1697_s29, 1 }
   0x8   : > { %s2293_s10 = scalar_select %p177_p1, %s2208_s26, %s179_s8  }
   0x9   : > { %p2295_p5 = por %p190_p2, %p189_p0  ;;  %p2299_p6 = por %p196_p4, %p195_p3 }
   0xa   : > { %p1700_p7 = scmp.ge.s32.totalorder %s2212_s27, 1  ;;  %p241_p8 = scmp.lt.s32.totalorder %s2212_s27, 3 }
   0xc   : > { %p242_p9 = pnand %p1700_p7, %p241_p8 }
   0xd   : > { %v2002_v0 = vld [vmem:[%s2955_s1] sm:$0xff] (!%p242_p9)   ;;  %s1702_s15 = sshll.u32 (!%p242_p9), %s2278_s28, 5  ;;  %v2003_v1 = vld [vmem:[%s2955_s1 + $0x8] sm:$0xff] (!%p242_p9)   ;;  %v2004_v2 = vld [vmem:[%s2955_s1 + $0x10] sm:$0xff] (!%p242_p9)   ;;  %vm368_vm0 = vcmask (!%p242_p9), 523264   ;;  %s270_s22 = sand.u32 (!%p242_p9), 1, %s2204_s25  }
   0xe   : > { %245 = sbr.rel (%p242_p9) target bundleno = 1088 (0x440), region = 48  ;;  %p274_p10 = scmp.lt.s32.totalorder (!%p242_p9), %s1702_s15, 63  ;;  %1817 = vmatprep.subr.bf16.mxu0 (!%p242_p9), %v2002_v0  ;;  %1953 = vmatprep.subr.bf16.mxu1 (!%p242_p9), %v2002_v0  ;;  %v2005_v5 = vld [vmem:[%s2955_s1 + $0x18] sm:$0xff] (!%p242_p9)   ;;  %v2006_v7 = vld [vmem:[%s2957_s3] sm:$0xff] (!%p242_p9)   ;;  %v2007_v23 = vld [vmem:[%s2957_s3 + $0x8] sm:$0xff] (!%p242_p9)  }
   0xf   : > { %1818 = vmatpush3.bf16.msra.mxu0 (!%p242_p9), %v2002_v0  ;;  %1957 = vmatpush3.bf16.msra.mxu1 (!%p242_p9), %v2002_v0  ;;  %v2008_v32 = vld [vmem:[%s2957_s3 + $0x10] sm:$0xff] (!%p242_p9)   ;;  %v2009_v37 = vld [vmem:[%s2957_s3 + $0x18] sm:$0xff] (!%p242_p9)   ;;  %v2010_v46 = vld [vmem:[%s2957_s3 + $0x20] sm:$0xff] (!%p242_p9)   ;;  %s1701_s29 = sshll.u32 (!%p242_p9), %s270_s22, 8  ;;  %s1748_s9 = sshll.u32 (!%p242_p9), %s2278_s28, 12 }
  0x10   : > { %1819 = vmatprep.subr.bf16.mxu0 (!%p242_p9), %v2003_v1  ;;  %1954 = vmatprep.subr.bf16.mxu1 (!%p242_p9), %v2003_v1  ;;  %v2011_v57 = vld [vmem:[%s2957_s3 + $0x28] sm:$0xff] (!%p242_p9)   ;;  %v2012_v58 = vld [vmem:[%s2957_s3 + $0x30] sm:$0xff] (!%p242_p9)   ;;  %v2013_v59 = vld [vmem:[%s2957_s3 + $0x38] sm:$0xff] (!%p242_p9)   ;;  %s2837_s8 = scalar_lea.vmem (!%p242_p9), [#allocation2], %s1701_s29  ;;  %s2913_s28 = scalar_lea.sflag (!%p242_p9), [#allocation3], %s270_s22 }
  0x11   : > { %v2014_v60 = vld [vmem:[%s2959_s5] sm:$0xff] (!%p242_p9)   ;;  %v2015_v61 = vld [vmem:[%s2959_s5 + $0x8] sm:$0xff] (!%p242_p9)   ;;  %v2016_v62 = vld [vmem:[%s2959_s5 + $0x10] sm:$0xff] (!%p242_p9)   ;;  %s2214_s17 = smov (!%p242_p9), [#allocation2]  }
  0x12   : > { %v2017_v63 = vld [vmem:[%s2959_s5 + $0x18] sm:$0xff] (!%p242_p9)   ;;  %v2018_v0 = vld [vmem:[%s2959_s5 + $0x20] sm:$0xff] (!%p242_p9)   ;;  %s2154_s18 = sshll.u32 (!%p242_p9), %s2214_s17, 4  ;;  %s2155_s18 = int_to_ptr.vmem [resolvable:$false] %s2154_s18 }
  0x13   : > { %1820 = vmatpush3.bf16.msra.mxu0 (!%p242_p9), %v2003_v1  ;;  %1958 = vmatpush3.bf16.msra.mxu1 (!%p242_p9), %v2003_v1  ;;  %v2413_v1 = vld [vmem:[%s2956_s2] ss:$0 sm:$0xff] (!%p242_p9)  ;;  %s2156_s19 = scalar_lea.vmem (!%p242_p9), %s2155_s18, 8192 }
  0x14   : > { %1821 = vmatprep.subr.bf16.mxu0 (!%p242_p9), %v2004_v2  ;;  %1955 = vmatprep.subr.bf16.mxu1 (!%p242_p9), %v2004_v2 }
  0x15   : > { %s2969_s15 = smov (!%p274_p10, %s1702_s15), 63 }
  0x16   : > { %s1703_s20 = sshll.u32 %s2969_s15, 3  ;;  %s2905_s15 = scalar_lea.hbm %s2961_s7, %s1748_s9 }
  0x17   : > { %s2318_s23 = scalar_lea.vmem %s2954_s0, %s1703_s20  ;;  %1822 = vmatpush3.bf16.msra.mxu0 %v2004_v2  ;;  %1959 = vmatpush3.bf16.msra.mxu1 %v2004_v2 }
  0x18   : > { %v281_v3 = vld [vmem:[%s2318_s23] sm:$0xff]  ;;  %v282_v4 = vld [vmem:[%s2318_s23 + $0x8] sm:$0xff]  ;;  %v283_v8 = vld [vmem:[%s2318_s23 + $0x10] sm:$0xff]  ;;  %1823 = vmatprep.subr.bf16.mxu0 %v2005_v5  ;;  %1956 = vmatprep.subr.bf16.mxu1 %v2005_v5 }
  0x19   : > { %v313_v6 = vpack.c.bf16 %v282_v4, %v281_v3  ;;  %v284_v9 = vld [vmem:[%s2318_s23 + $0x18] sm:$0xff]  ;;  %v285_v10 = vld [vmem:[%s2318_s23 + $0x20] sm:$0xff]  ;;  %v286_v11 = vld [vmem:[%s2318_s23 + $0x28] sm:$0xff] }
  0x1a   : > { %v297_v12 = vld [vmem:[%s2318_s23 + $0x80] sm:$0xff]  ;;  %v298_v13 = vld [vmem:[%s2318_s23 + $0x88] sm:$0xff]  ;;  %v299_v15 = vld [vmem:[%s2318_s23 + $0x90] sm:$0xff]  ;;  %v314_v18 = vpack.c.bf16 %v284_v9, %v283_v8  ;;  %v315_v21 = vpack.c.bf16 %v286_v11, %v285_v10 }
  0x1b   : > { %1825 = vmatprep.mubr.msk.bf16.mxu0 %vm368_vm0, %v313_v6  ;;  %v321_v14 = vpack.c.bf16 %v298_v13, %v297_v12  ;;  %v300_v16 = vld [vmem:[%s2318_s23 + $0x98] sm:$0xff]  ;;  %v301_v17 = vld [vmem:[%s2318_s23 + $0xa0] sm:$0xff]  ;;  %v302_v20 = vld [vmem:[%s2318_s23 + $0xa8] sm:$0xff]  ;;  %1824 = vmatpush3.bf16.msra.mxu0 %v2005_v5 }
  0x1c   : > { %v322_v19 = vpack.c.bf16 %v300_v16, %v299_v15  ;;  %1960 = vmatpush3.bf16.msra.mxu1 %v2005_v5  ;;  %v323_v22 = vpack.c.bf16 %v302_v20, %v301_v17  ;;  %v287_v24 = vld [vmem:[%s2318_s23 + $0x30] sm:$0xff]  ;;  %v288_v25 = vld [vmem:[%s2318_s23 + $0x38] sm:$0xff]  ;;  %v289_v28 = vld [vmem:[%s2318_s23 + $0x40] sm:$0xff]  ;;  %1905 = vmatprep.subr.bf16.mxu0 %v2014_v60 }
  0x1d   : > { %1841 = vmatprep.mubr.msk.bf16.mxu1 %vm368_vm0, %v321_v14  ;;  %1857 = vmatprep.subr.bf16.mxu1 %v2006_v7  ;;  %v303_v26 = vld [vmem:[%s2318_s23 + $0xb0] sm:$0xff]  ;;  %v304_v27 = vld [vmem:[%s2318_s23 + $0xb8] sm:$0xff]  ;;  %v290_v29 = vld [vmem:[%s2318_s23 + $0x48] sm:$0xff]  ;;  %v316_v33 = vpack.c.bf16 %v288_v25, %v287_v24 }
  0x1e   : > { %1826 = vmatmul.mubr.msk.bf16.vlgmr.msra.gmra.mrb[0].mxu0 %vm368_vm0, %v314_v18  ;;  %v305_v30 = vld [vmem:[%s2318_s23 + $0xc0] sm:$0xff]  ;;  %v306_v31 = vld [vmem:[%s2318_s23 + $0xc8] sm:$0xff]  ;;  %v324_v34 = vpack.c.bf16 %v304_v27, %v303_v26  ;;  %v317_v35 = vpack.c.bf16 %v290_v29, %v289_v28  ;;  %v291_v38 = vld [vmem:[%s2318_s23 + $0x50] sm:$0xff] }
  0x1f   : > { %1842 = vmatmul.mubr.msk.bf16.vlgmr.msra.gmra.mrb[0].mxu1 %vm368_vm0, %v322_v19  ;;  %1829 = vmatprep.mubr.msk.bf16.mxu0 %vm368_vm0, %v315_v21  ;;  %v325_v36 = vpack.c.bf16 %v306_v31, %v305_v30  ;;  %v292_v39 = vld [vmem:[%s2318_s23 + $0x58] sm:$0xff]  ;;  %v293_v40 = vld [vmem:[%s2318_s23 + $0x60] sm:$0xff]  ;;  %v307_v41 = vld [vmem:[%s2318_s23 + $0xd0] sm:$0xff] }
  0x20   : > { %1845 = vmatprep.mubr.msk.bf16.mxu1 %vm368_vm0, %v323_v22  ;;  %1858 = vmatpush3.bf16.msra.mxu1 %v2006_v7  ;;  %v308_v42 = vld [vmem:[%s2318_s23 + $0xd8] sm:$0xff]  ;;  %v294_v43 = vld [vmem:[%s2318_s23 + $0x68] sm:$0xff]  ;;  %v309_v44 = vld [vmem:[%s2318_s23 + $0xe0] sm:$0xff]  ;;  %v318_v47 = vpack.c.bf16 %v292_v39, %v291_v38 }
  0x21   : > { %1859 = vmatprep.subr.bf16.mxu1 %v2007_v23  ;;  %v310_v45 = vld [vmem:[%s2318_s23 + $0xe8] sm:$0xff]  ;;  %v326_v48 = vpack.c.bf16 %v308_v42, %v307_v41  ;;  %v319_v49 = vpack.c.bf16 %v294_v43, %v293_v40  ;;  %v295_v51 = vld [vmem:[%s2318_s23 + $0x70] sm:$0xff]  ;;  %v296_v52 = vld [vmem:[%s2318_s23 + $0x78] sm:$0xff]  ;;  %1906 = vmatpush3.bf16.msra.mxu0 %v2014_v60 }
  0x22   : > { %v327_v50 = vpack.c.bf16 %v310_v45, %v309_v44  ;;  %v311_v53 = vld [vmem:[%s2318_s23 + $0xf0] sm:$0xff]  ;;  %v312_v54 = vld [vmem:[%s2318_s23 + $0xf8] sm:$0xff]  ;;  %v320_v55 = vpack.c.bf16 %v296_v52, %v295_v51  ;;  %1907 = vmatprep.subr.bf16.mxu0 %v2015_v61  ;;  %s1635_s23 = sshll.u32 %s2837_s8, 4  ;;  %s2907_s23 = int_to_ptr.vmem [resolvable:$true] %s1635_s23 }
  0x23   : > { %v328_v56 = vpack.c.bf16 %v312_v54, %v311_v53  ;;  %s2150_s16 = scalar_lea.vmem %s2907_s23, 4096  ;;  %p2157_p0 = scmp.lt.s32.totalorder %s2907_s23, %s2155_s18 }
  0x24   : > { %1860 = vmatpush3.bf16.msra.mxu1 %v2007_v23  ;;  %p2151_p11 = scmp.ne.s32.totalorder %s2907_s23, %s2150_s16  ;;  %p2158_p1 = scmp.lt.s32.totalorder %s2156_s19, %s2150_s16 }
  0x25   : > { %1861 = vmatprep.subr.bf16.mxu1 %v2008_v32  ;;  %1908 = vmatpush3.bf16.msra.mxu0 %v2015_v61 }
  0x26   : > { %1830 = vmatmul.mubr.msk.bf16.gmra.mrb[4].mxu0 %vm368_vm0, %v316_v33  ;;  %1909 = vmatprep.subr.bf16.mxu0 %v2016_v62  ;;  %p2152_p12 = pnand %p2151_p11, %p2295_p5  ;;  %p2159_p2 = por %p2158_p1, %p2157_p0 }
  0x27   : > { %1846 = vmatmul.mubr.msk.bf16.gmra.mrb[4].mxu1 %vm368_vm0, %v324_v34  ;;  %1833 = vmatprep.mubr.msk.bf16.mxu0 %vm368_vm0, %v317_v35 }
  0x28   : > { %1849 = vmatprep.mubr.msk.bf16.mxu1 %vm368_vm0, %v325_v36  ;;  %1862 = vmatpush3.bf16.msra.mxu1 %v2008_v32  ;;  %p2153_p13 = pneg %p2152_p12 }
  0x29   : > { %1863 = vmatprep.subr.bf16.mxu1 %v2009_v37  ;;  %1910 = vmatpush3.bf16.msra.mxu0 %v2016_v62 }
  0x2a   : > { %1911 = vmatprep.subr.bf16.mxu0 %v2017_v63  ;;  %p2160_p3 = pnand %p2159_p2, %p2153_p13 }
  0x2c   : > { %1864 = vmatpush3.bf16.msra.mxu1 %v2009_v37 }
  0x2d   : > { %1865 = vmatprep.subr.bf16.mxu1 %v2010_v46  ;;  %1912 = vmatpush3.bf16.msra.mxu0 %v2017_v63 }
  0x2e   : > { %1834 = vmatmul.mubr.msk.bf16.gmra.mrb[8].mxu0 %vm368_vm0, %v318_v47  ;;  %1913 = vmatprep.subr.bf16.mxu0 %v2018_v0 }
  0x2f   : > { %1850 = vmatmul.mubr.msk.bf16.gmra.mrb[8].mxu1 %vm368_vm0, %v326_v48  ;;  %1837 = vmatprep.mubr.msk.bf16.mxu0 %vm368_vm0, %v319_v49 }
  0x30   : > { %1853 = vmatprep.mubr.msk.bf16.mxu1 %vm368_vm0, %v327_v50  ;;  %1866 = vmatpush3.bf16.msra.mxu1 %v2010_v46 }
  0x31   : > { %1867 = vmatprep.subr.bf16.mxu1 %v2011_v57  ;;  %1914 = vmatpush3.bf16.msra.mxu0 %v2018_v0 }
  0x34   : > { %1868 = vmatpush3.bf16.msra.mxu1 %v2011_v57 }
  0x35   : > { %1869 = vmatprep.subr.bf16.mxu1 %v2012_v58 }
  0x36   : > { %1838 = vmatmul.mubr.msk.bf16.gmra.mrb[12].mxu0 %vm368_vm0, %v320_v55 }
  0x37   : > { %1854 = vmatmul.mubr.msk.bf16.gmra.mrb[12].mxu1 %vm368_vm0, %v328_v56 }
  0x38   : > { %1870 = vmatpush3.bf16.msra.mxu1 %v2012_v58 }
  0x39   : > { %1871 = vmatprep.subr.bf16.mxu1 %v2013_v59 }
  0x3c   : > { %1872 = vmatpush3.bf16.msra.mxu1 %v2013_v59 }
  0xf1   : > { %v1827_v2 = vpop.f32.mrb[0].mxu0 }
  0xf2   : > { %v1843_v3 = vpop.f32.mrb[0].mxu1  ;;  %v460_v4 = vadd.f32 %v1827_v2, %v2413_v1  ;;  %v451_v5 = vpop.f32.mrb[1].mxu0 }
  0xf3   : > { %v524_v6 = vadd.f32 %v1843_v3, %v2413_v1  ;;  %v515_v7 = vpop.f32.mrb[1].mxu1  ;;  %v452_v8 = vadd.f32 %v2413_v1, %v451_v5  ;;  %v1828_v9 = vpop.f32.mrb[2].mxu0 }
  0xf4   : > { %v516_v10 = vadd.f32 %v2413_v1, %v515_v7  ;;  %v1844_v11 = vpop.f32.mrb[2].mxu1  ;;  %v580_v12 = vmul.f32 0.1, %v460_v4  ;;  %v463_v13 = vadd.f32 %v1828_v9, %v2413_v1  ;;  %v454_v14 = vpop.f32.mrb[3].mxu0 }
  0xf5   : > { %v596_v15 = vmul.f32 0.1, %v524_v6  ;;  %v527_v16 = vadd.f32 %v1844_v11, %v2413_v1  ;;  %v518_v17 = vpop.f32.mrb[3].mxu1  ;;  %v578_v18 = vmul.f32 0.1, %v452_v8  ;;  %v455_v19 = vadd.f32 %v2413_v1, %v454_v14 }
  0xf6   : > { %v594_v20 = vmul.f32 0.1, %v516_v10  ;;  %v519_v21 = vadd.f32 %v2413_v1, %v518_v17  ;;  %v581_v22 = vmul.f32 0.1, %v463_v13  ;;  %v612_v28 = vmax.f32 %v460_v4, %v580_v12 }
  0xf7   : > { %v628_v23 = vmax.f32 %v524_v6, %v596_v15  ;;  %v597_v24 = vmul.f32 0.1, %v527_v16  ;;  %v579_v25 = vmul.f32 0.1, %v455_v19  ;;  %v610_v31 = vmax.f32 %v452_v8, %v578_v18 }
  0xf8   : > { %v626_v26 = vmax.f32 %v516_v10, %v594_v20  ;;  %v595_v27 = vmul.f32 0.1, %v519_v21  ;;  %v613_v29 = vmax.f32 %v463_v13, %v581_v22 }
  0xf9   : > { %v629_v30 = vmax.f32 %v527_v16, %v597_v24  ;;  %v611_v32 = vmax.f32 %v455_v19, %v579_v25  ;;  %v1831_v33 = vpop.f32.mrb[4].mxu0 }
  0xfa   : > { %v627_v34 = vmax.f32 %v519_v21, %v595_v27  ;;  %v1847_v35 = vpop.f32.mrb[4].mxu1  ;;  %v643_v36 = vpack.c.bf16 %v613_v29, %v612_v28  ;;  %v476_v37 = vadd.f32 %v1831_v33, %v2413_v1  ;;  %v467_v38 = vpop.f32.mrb[5].mxu0 }
  0xfb   : > { %v540_v39 = vadd.f32 %v1847_v35, %v2413_v1  ;;  %v531_v40 = vpop.f32.mrb[5].mxu1  ;;  %v2425_v41 = vpack.c.bf16 %v629_v30, %v628_v23  ;;  %v468_v42 = vadd.f32 %v2413_v1, %v467_v38  ;;  %v1832_v43 = vpop.f32.mrb[6].mxu0  ;;  %v642_v44 = vpack.c.bf16 %v611_v32, %v610_v31 }
  0xfc   : > { %v532_v45 = vadd.f32 %v2413_v1, %v531_v40  ;;  %v1848_v46 = vpop.f32.mrb[6].mxu1  ;;  %v2429_v47 = vpack.c.bf16 %v627_v34, %v626_v26  ;;  %v584_v48 = vmul.f32 0.1, %v476_v37  ;;  %v479_v49 = vadd.f32 %v1832_v43, %v2413_v1  ;;  %v470_v50 = vpop.f32.mrb[7].mxu0 }
  0xfd   : > { %v600_v51 = vmul.f32 0.1, %v540_v39  ;;  %v543_v52 = vadd.f32 %v1848_v46, %v2413_v1  ;;  %v534_v53 = vpop.f32.mrb[7].mxu1  ;;  %v582_v54 = vmul.f32 0.1, %v468_v42  ;;  %v471_v55 = vadd.f32 %v2413_v1, %v470_v50  ;;  %1873 = vmatprep.mubr.bf16.mxu1 %v642_v44 }
  0xfe   : > { %v598_v56 = vmul.f32 0.1, %v532_v45  ;;  %v535_v57 = vadd.f32 %v2413_v1, %v534_v53  ;;  %v585_v58 = vmul.f32 0.1, %v479_v49  ;;  %1874 = vmatmul.mubr.bf16.vlgmr.msra.gmra.mrb[16].mxu1 %v643_v36  ;;  %v616_v0 = vmax.f32 %v476_v37, %v584_v48 }
  0xff   : > { %v632_v59 = vmax.f32 %v540_v39, %v600_v51  ;;  %v601_v60 = vmul.f32 0.1, %v543_v52  ;;  %v583_v61 = vmul.f32 0.1, %v471_v55  ;;  %v614_v4 = vmax.f32 %v468_v42, %v582_v54 }
 0x100   : > { %v630_v62 = vmax.f32 %v532_v45, %v598_v56  ;;  %v599_v63 = vmul.f32 0.1, %v535_v57  ;;  %v617_v2 = vmax.f32 %v479_v49, %v585_v58 }
 0x101   : > { %v633_v3 = vmax.f32 %v543_v52, %v601_v60  ;;  %v615_v5 = vmax.f32 %v471_v55, %v583_v61  ;;  %v1835_v6 = vpop.f32.mrb[8].mxu0 }
 0x102   : > { %v631_v7 = vmax.f32 %v535_v57, %v599_v63  ;;  %v1851_v8 = vpop.f32.mrb[8].mxu1  ;;  %v492_v9 = vadd.f32 %v1835_v6, %v2413_v1  ;;  %v483_v10 = vpop.f32.mrb[9].mxu0  ;;  %v645_v11 = vpack.c.bf16 %v617_v2, %v616_v0 }
 0x103   : > { %v556_v12 = vadd.f32 %v1851_v8, %v2413_v1  ;;  %v547_v13 = vpop.f32.mrb[9].mxu1  ;;  %v2437_v14 = vpack.c.bf16 %v633_v3, %v632_v59  ;;  %v484_v15 = vadd.f32 %v2413_v1, %v483_v10  ;;  %v1836_v16 = vpop.f32.mrb[10].mxu0  ;;  %v644_v17 = vpack.c.bf16 %v615_v5, %v614_v4 }
 0x104   : > { %v548_v18 = vadd.f32 %v2413_v1, %v547_v13  ;;  %v1852_v19 = vpop.f32.mrb[10].mxu1  ;;  %v2441_v20 = vpack.c.bf16 %v631_v7, %v630_v62  ;;  %v588_v21 = vmul.f32 0.1, %v492_v9  ;;  %v495_v22 = vadd.f32 %v1836_v16, %v2413_v1  ;;  %v486_v23 = vpop.f32.mrb[11].mxu0 }
 0x105   : > { %v604_v24 = vmul.f32 0.1, %v556_v12  ;;  %v559_v25 = vadd.f32 %v1852_v19, %v2413_v1  ;;  %v550_v26 = vpop.f32.mrb[11].mxu1  ;;  %v586_v27 = vmul.f32 0.1, %v484_v15  ;;  %v487_v28 = vadd.f32 %v2413_v1, %v486_v23  ;;  %1877 = vmatprep.mubr.bf16.mxu1 %v644_v17 }
 0x106   : > { %v602_v29 = vmul.f32 0.1, %v548_v18  ;;  %v551_v30 = vadd.f32 %v2413_v1, %v550_v26  ;;  %v589_v31 = vmul.f32 0.1, %v495_v22  ;;  %1878 = vmatmul.mubr.bf16.gmra.mrb[20].mxu1 %v645_v11  ;;  %v620_v37 = vmax.f32 %v492_v9, %v588_v21 }
 0x107   : > { %v636_v32 = vmax.f32 %v556_v12, %v604_v24  ;;  %v605_v33 = vmul.f32 0.1, %v559_v25  ;;  %v587_v34 = vmul.f32 0.1, %v487_v28  ;;  %v618_v40 = vmax.f32 %v484_v15, %v586_v27 }
 0x108   : > { %v634_v35 = vmax.f32 %v548_v18, %v602_v29  ;;  %v603_v36 = vmul.f32 0.1, %v551_v30  ;;  %v621_v38 = vmax.f32 %v495_v22, %v589_v31 }
 0x109   : > { %v637_v39 = vmax.f32 %v559_v25, %v605_v33  ;;  %v619_v42 = vmax.f32 %v487_v28, %v587_v34  ;;  %v1839_v43 = vpop.f32.mrb[12].mxu0 }
 0x10a   : > { %v635_v44 = vmax.f32 %v551_v30, %v603_v36  ;;  %v1855_v45 = vpop.f32.mrb[12].mxu1  ;;  %v508_v46 = vadd.f32 %v1839_v43, %v2413_v1  ;;  %v499_v48 = vpop.f32.mrb[13].mxu0  ;;  %v647_v49 = vpack.c.bf16 %v621_v38, %v620_v37 }
 0x10b   : > { %v572_v50 = vadd.f32 %v1855_v45, %v2413_v1  ;;  %v563_v51 = vpop.f32.mrb[13].mxu1  ;;  %v655_v52 = vpack.c.bf16 %v637_v39, %v636_v32  ;;  %v500_v53 = vadd.f32 %v2413_v1, %v499_v48  ;;  %v1840_v54 = vpop.f32.mrb[14].mxu0  ;;  %v646_v55 = vpack.c.bf16 %v619_v42, %v618_v40 }
 0x10c   : > { %v564_v56 = vadd.f32 %v2413_v1, %v563_v51  ;;  %v1856_v57 = vpop.f32.mrb[14].mxu1  ;;  %v654_v58 = vpack.c.bf16 %v635_v44, %v634_v35  ;;  %v592_v59 = vmul.f32 0.1, %v508_v46  ;;  %v511_v60 = vadd.f32 %v1840_v54, %v2413_v1  ;;  %v502_v61 = vpop.f32.mrb[15].mxu0 }
 0x10d   : > { %v608_v62 = vmul.f32 0.1, %v572_v50  ;;  %v575_v63 = vadd.f32 %v1856_v57, %v2413_v1  ;;  %v566_v0 = vpop.f32.mrb[15].mxu1  ;;  %v590_v2 = vmul.f32 0.1, %v500_v53  ;;  %v503_v3 = vadd.f32 %v2413_v1, %v502_v61  ;;  %1881 = vmatprep.mubr.bf16.mxu1 %v646_v55 }
 0x10e   : > { %v606_v4 = vmul.f32 0.1, %v564_v56  ;;  %v567_v5 = vadd.f32 %v2413_v1, %v566_v0  ;;  %v593_v6 = vmul.f32 0.1, %v511_v60  ;;  %1882 = vmatmul.mubr.bf16.gmra.mrb[24].mxu1 %v647_v49  ;;  %v624_v12 = vmax.f32 %v508_v46, %v592_v59  ;;  %v2019_v1 = vld [vmem:[%s2959_s5 + $0x28] sm:$0xff]  }
 0x10f   : > { %v640_v7 = vmax.f32 %v572_v50, %v608_v62  ;;  %v609_v8 = vmul.f32 0.1, %v575_v63  ;;  %v591_v9 = vmul.f32 0.1, %v503_v3  ;;  %v622_v16 = vmax.f32 %v500_v53, %v590_v2  ;;  %1915 = vmatprep.subr.bf16.mxu0 %v2019_v1 }
 0x110   : > { %v638_v10 = vmax.f32 %v564_v56, %v606_v4  ;;  %v607_v11 = vmul.f32 0.1, %v567_v5  ;;  %v625_v13 = vmax.f32 %v511_v60, %v593_v6  ;;  %1916 = vmatpush3.bf16.msra.mxu0 %v2019_v1 }
 0x111   : > { %v641_v15 = vmax.f32 %v575_v63, %v609_v8  ;;  %v623_v17 = vmax.f32 %v503_v3, %v591_v9 }
 0x112   : > { %v639_v18 = vmax.f32 %v567_v5, %v607_v11  ;;  %v649_v19 = vpack.c.bf16 %v625_v13, %v624_v12 }
 0x113   : > { %v657_v21 = vpack.c.bf16 %v641_v15, %v640_v7  ;;  %v648_v22 = vpack.c.bf16 %v623_v17, %v622_v16 }
 0x114   : > { %v656_v23 = vpack.c.bf16 %v639_v18, %v638_v10 }
 0x115   : > { %1885 = vmatprep.mubr.bf16.mxu1 %v648_v22 }
 0x116   : > { %1886 = vmatmul.mubr.bf16.gmra.mrb[28].mxu1 %v649_v19 }
 0x117   : > { %1889 = vmatprep.mubr.bf16.mxu1 %v2429_v47  ;;  %v2020_v47 = vld [vmem:[%s2959_s5 + $0x30] sm:$0xff]  }
 0x118   : > { %1917 = vmatprep.subr.bf16.mxu0 %v2020_v47 }
 0x119   : > { %1918 = vmatpush3.bf16.msra.mxu0 %v2020_v47 }
 0x11e   : > { %1890 = vmatmul.mubr.bf16.gmra.mrb[32].mxu1 %v2425_v41  ;;  %v2021_v41 = vld [vmem:[%s2959_s5 + $0x38] sm:$0xff]  }
 0x11f   : > { %1893 = vmatprep.mubr.bf16.mxu1 %v2441_v20  ;;  %1919 = vmatprep.subr.bf16.mxu0 %v2021_v41 }
 0x120   : > { %1920 = vmatpush3.bf16.msra.mxu0 %v2021_v41 }
 0x126   : > { %1894 = vmatmul.mubr.bf16.gmra.mrb[36].mxu1 %v2437_v14  ;;  %v2471_v14 = vld [vmem:[%s2958_s4] ss:$0 sm:$0xff] }
 0x127   : > { %1897 = vmatprep.mubr.bf16.mxu1 %v654_v58 }
 0x12e   : > { %1898 = vmatmul.mubr.bf16.gmra.mrb[40].mxu1 %v655_v52 }
 0x12f   : > { %1901 = vmatprep.mubr.bf16.mxu1 %v656_v23 }
 0x136   : > { %1902 = vmatmul.mubr.bf16.gmra.mrb[44].mxu1 %v657_v21 }
 0x1d1   : > { %v1875_v20 = vpop.f32.mrb[16].mxu1 }
 0x1d2   : > { %v772_v24 = vadd.f32 %v1875_v20, %v2471_v14  ;;  %v763_v25 = vpop.f32.mrb[17].mxu1 }
 0x1d3   : > { %v764_v26 = vadd.f32 %v2471_v14, %v763_v25  ;;  %v1876_v27 = vpop.f32.mrb[18].mxu1 }
 0x1d4   : > { %v892_v28 = vmul.f32 0.1, %v772_v24  ;;  %v775_v29 = vadd.f32 %v1876_v27, %v2471_v14  ;;  %v766_v30 = vpop.f32.mrb[19].mxu1 }
 0x1d5   : > { %v890_v31 = vmul.f32 0.1, %v764_v26  ;;  %v767_v32 = vadd.f32 %v2471_v14, %v766_v30 }
 0x1d6   : > { %v893_v33 = vmul.f32 0.1, %v775_v29  ;;  %v924_v35 = vmax.f32 %v772_v24, %v892_v28 }
 0x1d7   : > { %v891_v34 = vmul.f32 0.1, %v767_v32  ;;  %v922_v37 = vmax.f32 %v764_v26, %v890_v31 }
 0x1d8   : > { %v925_v36 = vmax.f32 %v775_v29, %v893_v33 }
 0x1d9   : > { %v923_v38 = vmax.f32 %v767_v32, %v891_v34  ;;  %v1879_v39 = vpop.f32.mrb[20].mxu1 }
 0x1da   : > { %v955_v40 = vpack.c.bf16 %v925_v36, %v924_v35  ;;  %v788_v42 = vadd.f32 %v1879_v39, %v2471_v14  ;;  %v779_v43 = vpop.f32.mrb[21].mxu1 }
 0x1db   : > { %v780_v44 = vadd.f32 %v2471_v14, %v779_v43  ;;  %v1880_v45 = vpop.f32.mrb[22].mxu1  ;;  %v954_v46 = vpack.c.bf16 %v923_v38, %v922_v37 }
 0x1dc   : > { %v896_v48 = vmul.f32 0.1, %v788_v42  ;;  %v791_v49 = vadd.f32 %v1880_v45, %v2471_v14  ;;  %v782_v50 = vpop.f32.mrb[23].mxu1 }
 0x1dd   : > { %v894_v51 = vmul.f32 0.1, %v780_v44  ;;  %v783_v52 = vadd.f32 %v2471_v14, %v782_v50  ;;  %1921 = vmatprep.mubr.bf16.mxu0 %v954_v46 }
 0x1de   : > { %v897_v53 = vmul.f32 0.1, %v791_v49  ;;  %1922 = vmatmul.mubr.bf16.vlgmr.msra.gmra.mrb[16].mxu0 %v955_v40  ;;  %v928_v55 = vmax.f32 %v788_v42, %v896_v48 }
 0x1df   : > { %v895_v54 = vmul.f32 0.1, %v783_v52  ;;  %v926_v57 = vmax.f32 %v780_v44, %v894_v51 }
 0x1e0   : > { %v929_v56 = vmax.f32 %v791_v49, %v897_v53 }
 0x1e1   : > { %v927_v58 = vmax.f32 %v783_v52, %v895_v54  ;;  %v1883_v59 = vpop.f32.mrb[24].mxu1 }
 0x1e2   : > { %v804_v60 = vadd.f32 %v1883_v59, %v2471_v14  ;;  %v795_v61 = vpop.f32.mrb[25].mxu1  ;;  %v957_v62 = vpack.c.bf16 %v929_v56, %v928_v55 }
 0x1e3   : > { %v796_v63 = vadd.f32 %v2471_v14, %v795_v61  ;;  %v1884_v0 = vpop.f32.mrb[26].mxu1  ;;  %v956_v2 = vpack.c.bf16 %v927_v58, %v926_v57 }
 0x1e4   : > { %v900_v3 = vmul.f32 0.1, %v804_v60  ;;  %v807_v4 = vadd.f32 %v1884_v0, %v2471_v14  ;;  %v798_v5 = vpop.f32.mrb[27].mxu1 }
 0x1e5   : > { %v898_v6 = vmul.f32 0.1, %v796_v63  ;;  %v799_v7 = vadd.f32 %v2471_v14, %v798_v5  ;;  %1925 = vmatprep.mubr.bf16.mxu0 %v956_v2 }
 0x1e6   : > { %v901_v8 = vmul.f32 0.1, %v807_v4  ;;  %1926 = vmatmul.mubr.bf16.gmra.mrb[20].mxu0 %v957_v62  ;;  %v932_v10 = vmax.f32 %v804_v60, %v900_v3 }
 0x1e7   : > { %v899_v9 = vmul.f32 0.1, %v799_v7  ;;  %v930_v12 = vmax.f32 %v796_v63, %v898_v6 }
 0x1e8   : > { %v933_v11 = vmax.f32 %v807_v4, %v901_v8 }
 0x1e9   : > { %v931_v13 = vmax.f32 %v799_v7, %v899_v9  ;;  %v1887_v15 = vpop.f32.mrb[28].mxu1 }
 0x1ea   : > { %v820_v16 = vadd.f32 %v1887_v15, %v2471_v14  ;;  %v811_v17 = vpop.f32.mrb[29].mxu1  ;;  %v959_v18 = vpack.c.bf16 %v933_v11, %v932_v10 }
 0x1eb   : > { %v812_v19 = vadd.f32 %v2471_v14, %v811_v17  ;;  %v1888_v21 = vpop.f32.mrb[30].mxu1  ;;  %v958_v22 = vpack.c.bf16 %v931_v13, %v930_v12 }
 0x1ec   : > { %v904_v23 = vmul.f32 0.1, %v820_v16  ;;  %v823_v1 = vadd.f32 %v1888_v21, %v2471_v14  ;;  %v814_v47 = vpop.f32.mrb[31].mxu1 }
 0x1ed   : > { %v902_v41 = vmul.f32 0.1, %v812_v19  ;;  %v815_v20 = vadd.f32 %v2471_v14, %v814_v47  ;;  %1929 = vmatprep.mubr.bf16.mxu0 %v958_v22 }
 0x1ee   : > { %v905_v24 = vmul.f32 0.1, %v823_v1  ;;  %1930 = vmatmul.mubr.bf16.gmra.mrb[24].mxu0 %v959_v18  ;;  %v936_v26 = vmax.f32 %v820_v16, %v904_v23 }
 0x1ef   : > { %v903_v25 = vmul.f32 0.1, %v815_v20  ;;  %v934_v28 = vmax.f32 %v812_v19, %v902_v41 }
 0x1f0   : > { %v937_v27 = vmax.f32 %v823_v1, %v905_v24 }
 0x1f1   : > { %v935_v29 = vmax.f32 %v815_v20, %v903_v25  ;;  %v1891_v30 = vpop.f32.mrb[32].mxu1 }
 0x1f2   : > { %v836_v31 = vadd.f32 %v1891_v30, %v2471_v14  ;;  %v827_v32 = vpop.f32.mrb[33].mxu1  ;;  %v961_v33 = vpack.c.bf16 %v937_v27, %v936_v26 }
 0x1f3   : > { %v828_v34 = vadd.f32 %v2471_v14, %v827_v32  ;;  %v1892_v35 = vpop.f32.mrb[34].mxu1  ;;  %v960_v36 = vpack.c.bf16 %v935_v29, %v934_v28 }
 0x1f4   : > { %v908_v37 = vmul.f32 0.1, %v836_v31  ;;  %v839_v38 = vadd.f32 %v1892_v35, %v2471_v14  ;;  %v830_v39 = vpop.f32.mrb[35].mxu1 }
 0x1f5   : > { %v906_v40 = vmul.f32 0.1, %v828_v34  ;;  %v831_v42 = vadd.f32 %v2471_v14, %v830_v39  ;;  %1933 = vmatprep.mubr.bf16.mxu0 %v960_v36 }
 0x1f6   : > { %v909_v43 = vmul.f32 0.1, %v839_v38  ;;  %1934 = vmatmul.mubr.bf16.gmra.mrb[28].mxu0 %v961_v33  ;;  %v940_v45 = vmax.f32 %v836_v31, %v908_v37 }
 0x1f7   : > { %v907_v44 = vmul.f32 0.1, %v831_v42  ;;  %v938_v48 = vmax.f32 %v828_v34, %v906_v40 }
 0x1f8   : > { %v941_v46 = vmax.f32 %v839_v38, %v909_v43  ;;  %v2508_v43 = vld [vmem:[%s2960_s6] ss:$0 sm:$0xff] }
 0x1f9   : > { %v939_v49 = vmax.f32 %v831_v42, %v907_v44  ;;  %v1895_v50 = vpop.f32.mrb[36].mxu1  ;;  %v1266_v42 = vlaneseq }
 0x1fa   : > { %v852_v51 = vadd.f32 %v1895_v50, %v2471_v14  ;;  %v843_v52 = vpop.f32.mrb[37].mxu1  ;;  %v963_v53 = vpack.c.bf16 %v941_v46, %v940_v45 }
 0x1fb   : > { %v844_v54 = vadd.f32 %v2471_v14, %v843_v52  ;;  %v1896_v55 = vpop.f32.mrb[38].mxu1  ;;  %v962_v56 = vpack.c.bf16 %v939_v49, %v938_v48 }
 0x1fc   : > { %v912_v57 = vmul.f32 0.1, %v852_v51  ;;  %v855_v58 = vadd.f32 %v1896_v55, %v2471_v14  ;;  %v846_v59 = vpop.f32.mrb[39].mxu1 }
 0x1fd   : > { %v910_v60 = vmul.f32 0.1, %v844_v54  ;;  %v847_v61 = vadd.f32 %v2471_v14, %v846_v59  ;;  %1937 = vmatprep.mubr.bf16.mxu0 %v962_v56 }
 0x1fe   : > { %v913_v62 = vmul.f32 0.1, %v855_v58  ;;  %1938 = vmatmul.mubr.bf16.gmra.mrb[32].mxu0 %v963_v53  ;;  %v944_v0 = vmax.f32 %v852_v51, %v912_v57 }
 0x1ff   : > { %v911_v63 = vmul.f32 0.1, %v847_v61  ;;  %v942_v3 = vmax.f32 %v844_v54, %v910_v60 }
 0x200   : > { %v945_v2 = vmax.f32 %v855_v58, %v913_v62 }
 0x201   : > { %v943_v4 = vmax.f32 %v847_v61, %v911_v63  ;;  %v1899_v5 = vpop.f32.mrb[40].mxu1 }
 0x202   : > { %v868_v6 = vadd.f32 %v1899_v5, %v2471_v14  ;;  %v859_v7 = vpop.f32.mrb[41].mxu1  ;;  %v965_v8 = vpack.c.bf16 %v945_v2, %v944_v0 }
 0x203   : > { %v860_v9 = vadd.f32 %v2471_v14, %v859_v7  ;;  %v1900_v10 = vpop.f32.mrb[42].mxu1  ;;  %v964_v11 = vpack.c.bf16 %v943_v4, %v942_v3 }
 0x204   : > { %v916_v12 = vmul.f32 0.1, %v868_v6  ;;  %v871_v13 = vadd.f32 %v1900_v10, %v2471_v14  ;;  %v862_v15 = vpop.f32.mrb[43].mxu1 }
 0x205   : > { %v914_v16 = vmul.f32 0.1, %v860_v9  ;;  %v863_v17 = vadd.f32 %v2471_v14, %v862_v15  ;;  %1941 = vmatprep.mubr.bf16.mxu0 %v964_v11 }
 0x206   : > { %v917_v18 = vmul.f32 0.1, %v871_v13  ;;  %1942 = vmatmul.mubr.bf16.gmra.mrb[36].mxu0 %v965_v8  ;;  %v948_v21 = vmax.f32 %v868_v6, %v916_v12 }
 0x207   : > { %v915_v19 = vmul.f32 0.1, %v863_v17  ;;  %v946_v23 = vmax.f32 %v860_v9, %v914_v16 }
 0x208   : > { %v949_v22 = vmax.f32 %v871_v13, %v917_v18 }
 0x209   : > { %v947_v1 = vmax.f32 %v863_v17, %v915_v19  ;;  %v1903_v47 = vpop.f32.mrb[44].mxu1 }
 0x20a   : > { %v884_v41 = vadd.f32 %v1903_v47, %v2471_v14  ;;  %v875_v20 = vpop.f32.mrb[45].mxu1  ;;  %v967_v24 = vpack.c.bf16 %v949_v22, %v948_v21 }
 0x20b   : > { %v876_v25 = vadd.f32 %v2471_v14, %v875_v20  ;;  %v1904_v26 = vpop.f32.mrb[46].mxu1  ;;  %v966_v27 = vpack.c.bf16 %v947_v1, %v946_v23 }
 0x20c   : > { %v920_v28 = vmul.f32 0.1, %v884_v41  ;;  %v887_v29 = vadd.f32 %v1904_v26, %v2471_v14  ;;  %v878_v30 = vpop.f32.mrb[47].mxu1 }
 0x20d   : > { %v918_v31 = vmul.f32 0.1, %v876_v25  ;;  %v879_v32 = vadd.f32 %v2471_v14, %v878_v30  ;;  %1945 = vmatprep.mubr.bf16.mxu0 %v966_v27  ;;  %v2510_v14 = vand.u32 127, %v1266_v42 }
 0x20e   : > { %v921_v33 = vmul.f32 0.1, %v887_v29  ;;  %1946 = vmatmul.mubr.bf16.gmra.mrb[40].mxu0 %v967_v24  ;;  %v952_v35 = vmax.f32 %v884_v41, %v920_v28 }
 0x20f   : > { %v919_v34 = vmul.f32 0.1, %v879_v32  ;;  %v950_v37 = vmax.f32 %v876_v25, %v918_v31  ;;  %vm1268_vm1 = vcmp.lt.s32.totalorder %v2510_v14, 10 }
 0x210   : > { %v953_v36 = vmax.f32 %v887_v29, %v921_v33 }
 0x211   : > { %v951_v38 = vmax.f32 %v879_v32, %v919_v34 }
 0x212   : > { %v969_v39 = vpack.c.bf16 %v953_v36, %v952_v35 }
 0x213   : > { %v968_v40 = vpack.c.bf16 %v951_v38, %v950_v37 }
 0x215   : > { %1949 = vmatprep.mubr.bf16.mxu0 %v968_v40 }
 0x216   : > { %1950 = vmatmul.mubr.bf16.gmra.mrb[44].mxu0 %v969_v39 }
 0x2b1   : > { %v1923_v44 = vpop.f32.mrb[16].mxu0 }
 0x2b2   : > { %v1084_v45 = vadd.f32 %v1923_v44, %v2508_v43  ;;  %v1075_v46 = vpop.f32.mrb[17].mxu0 }
 0x2b3   : > { %v1076_v48 = vadd.f32 %v2508_v43, %v1075_v46  ;;  %v1924_v49 = vpop.f32.mrb[18].mxu0 }
 0x2b4   : > { %v1204_v50 = vmul.f32 0.1, %v1084_v45  ;;  %v1087_v51 = vadd.f32 %v1924_v49, %v2508_v43  ;;  %v1078_v52 = vpop.f32.mrb[19].mxu0 }
 0x2b5   : > { %v1202_v53 = vmul.f32 0.1, %v1076_v48  ;;  %v1079_v54 = vadd.f32 %v2508_v43, %v1078_v52 }
 0x2b6   : > { %v1205_v55 = vmul.f32 0.1, %v1087_v51  ;;  %v1236_v56 = vmax.f32 %v1084_v45, %v1204_v50 }
 0x2b7   : > { %v1203_v57 = vmul.f32 0.1, %v1079_v54  ;;  %v1234_v58 = vmax.f32 %v1076_v48, %v1202_v53 }
 0x2b8   : > { %v2519_v59 = vsel %vm1268_vm1, %v1236_v56, -1e+30  ;;  %v1237_v60 = vmax.f32 %v1087_v51, %v1205_v55 }
 0x2b9   : > { %1305 = vmax.xlane.f32.xlu1 %v2519_v59  ;;  %v1927_v61 = vpop.f32.mrb[20].mxu0  ;;  %v2524_v62 = vsel %vm1268_vm1, %v1234_v58, -1e+30  ;;  %v1235_v63 = vmax.f32 %v1079_v54, %v1203_v57 }
 0x2ba   : > { %v1100_v0 = vadd.f32 %v1927_v61, %v2508_v43  ;;  %v1091_v2 = vpop.f32.mrb[21].mxu0  ;;  %1301 = vmax.xlane.f32.xlu0 %v2524_v62  ;;  %v2532_v8 = vsel %vm1268_vm1, %v1237_v60, -1e+30 }
 0x2bb   : > { %v1092_v3 = vadd.f32 %v2508_v43, %v1091_v2  ;;  %v1928_v4 = vpop.f32.mrb[22].mxu0  ;;  %v2538_v11 = vsel %vm1268_vm1, %v1235_v63, -1e+30 }
 0x2bc   : > { %v1208_v5 = vmul.f32 0.1, %v1100_v0  ;;  %v1103_v6 = vadd.f32 %v1928_v4, %v2508_v43  ;;  %v1094_v7 = vpop.f32.mrb[23].mxu0 }
 0x2bd   : > { %v1206_v9 = vmul.f32 0.1, %v1092_v3  ;;  %v1095_v10 = vadd.f32 %v2508_v43, %v1094_v7  ;;  %1307 = vmax.xlane.f32.xlu1 %v2532_v8 }
 0x2be   : > { %v1209_v12 = vmul.f32 0.1, %v1103_v6  ;;  %1303 = vmax.xlane.f32.xlu0 %v2538_v11  ;;  %v1240_v13 = vmax.f32 %v1100_v0, %v1208_v5 }
 0x2bf   : > { %v1207_v15 = vmul.f32 0.1, %v1095_v10  ;;  %v1238_v19 = vmax.f32 %v1092_v3, %v1206_v9 }
 0x2c0   : > { %v2543_v16 = vsel %vm1268_vm1, %v1240_v13, -1e+30  ;;  %v1241_v17 = vmax.f32 %v1103_v6, %v1209_v12 }
 0x2c1   : > { %v1931_v18 = vpop.f32.mrb[24].mxu0  ;;  %v1239_v1 = vmax.f32 %v1095_v10, %v1207_v15  ;;  %v2557_v28 = vsel %vm1268_vm1, %v1238_v19, -1e+30 }
 0x2c2   : > { %v1116_v21 = vadd.f32 %v1931_v18, %v2508_v43  ;;  %v1107_v22 = vpop.f32.mrb[25].mxu0  ;;  %1313 = vmax.xlane.f32.xlu0 %v2543_v16  ;;  %v2549_v23 = vsel %vm1268_vm1, %v1241_v17, -1e+30 }
 0x2c3   : > { %v1108_v47 = vadd.f32 %v2508_v43, %v1107_v22  ;;  %1315 = vmax.xlane.f32.xlu1 %v2549_v23  ;;  %v1932_v41 = vpop.f32.mrb[26].mxu0  ;;  %v2562_v30 = vsel %vm1268_vm1, %v1239_v1, -1e+30 }
 0x2c4   : > { %v1212_v20 = vmul.f32 0.1, %v1116_v21  ;;  %v1119_v24 = vadd.f32 %v1932_v41, %v2508_v43  ;;  %v1110_v25 = vpop.f32.mrb[27].mxu0 }
 0x2c5   : > { %v1210_v26 = vmul.f32 0.1, %v1108_v47  ;;  %v1111_v27 = vadd.f32 %v2508_v43, %v1110_v25 }
 0x2c6   : > { %v1213_v29 = vmul.f32 0.1, %v1119_v24  ;;  %1309 = vmax.xlane.f32.xlu0 %v2557_v28  ;;  %v1244_v31 = vmax.f32 %v1116_v21, %v1212_v20 }
 0x2c7   : > { %v1211_v32 = vmul.f32 0.1, %v1111_v27  ;;  %1311 = vmax.xlane.f32.xlu1 %v2562_v30  ;;  %v1242_v36 = vmax.f32 %v1108_v47, %v1210_v26 }
 0x2c8   : > { %v2567_v33 = vsel %vm1268_vm1, %v1244_v31, -1e+30  ;;  %v1245_v34 = vmax.f32 %v1119_v24, %v1213_v29 }
 0x2c9   : > { %v1935_v35 = vpop.f32.mrb[28].mxu0  ;;  %v1243_v40 = vmax.f32 %v1111_v27, %v1211_v32  ;;  %v2581_v51 = vsel %vm1268_vm1, %v1242_v36, -1e+30 }
 0x2ca   : > { %v1132_v37 = vadd.f32 %v1935_v35, %v2508_v43  ;;  %v1123_v38 = vpop.f32.mrb[29].mxu0  ;;  %1321 = vmax.xlane.f32.xlu0 %v2567_v33  ;;  %v2573_v39 = vsel %vm1268_vm1, %v1245_v34, -1e+30 }
 0x2cb   : > { %v1124_v42 = vadd.f32 %v2508_v43, %v1123_v38  ;;  %v1936_v44 = vpop.f32.mrb[30].mxu0  ;;  %1323 = vmax.xlane.f32.xlu1 %v2573_v39  ;;  %v2586_v53 = vsel %vm1268_vm1, %v1243_v40, -1e+30 }
 0x2cc   : > { %v1216_v45 = vmul.f32 0.1, %v1132_v37  ;;  %v1135_v46 = vadd.f32 %v1936_v44, %v2508_v43  ;;  %v1126_v48 = vpop.f32.mrb[31].mxu0 }
 0x2cd   : > { %v1214_v49 = vmul.f32 0.1, %v1124_v42  ;;  %v1127_v50 = vadd.f32 %v2508_v43, %v1126_v48 }
 0x2ce   : > { %v1217_v52 = vmul.f32 0.1, %v1135_v46  ;;  %1317 = vmax.xlane.f32.xlu0 %v2581_v51  ;;  %v1248_v54 = vmax.f32 %v1132_v37, %v1216_v45 }
 0x2cf   : > { %v1215_v55 = vmul.f32 0.1, %v1127_v50  ;;  %1319 = vmax.xlane.f32.xlu1 %v2586_v53  ;;  %v1246_v60 = vmax.f32 %v1124_v42, %v1214_v49 }
 0x2d0   : > { %v2591_v56 = vsel %vm1268_vm1, %v1248_v54, -1e+30  ;;  %v1249_v57 = vmax.f32 %v1135_v46, %v1217_v52 }
 0x2d1   : > { %v1939_v58 = vpop.f32.mrb[32].mxu0  ;;  %v1247_v2 = vmax.f32 %v1127_v50, %v1215_v55  ;;  %v2605_v12 = vsel %vm1268_vm1, %v1246_v60, -1e+30 }
 0x2d2   : > { %v1148_v61 = vadd.f32 %v1939_v58, %v2508_v43  ;;  %v1139_v63 = vpop.f32.mrb[33].mxu0  ;;  %1329 = vmax.xlane.f32.xlu0 %v2591_v56  ;;  %v2597_v0 = vsel %vm1268_vm1, %v1249_v57, -1e+30 }
 0x2d3   : > { %v1140_v3 = vadd.f32 %v2508_v43, %v1139_v63  ;;  %v1940_v4 = vpop.f32.mrb[34].mxu0  ;;  %1331 = vmax.xlane.f32.xlu1 %v2597_v0  ;;  %v2610_v15 = vsel %vm1268_vm1, %v1247_v2, -1e+30 }
 0x2d4   : > { %v1220_v5 = vmul.f32 0.1, %v1148_v61  ;;  %v1151_v6 = vadd.f32 %v1940_v4, %v2508_v43  ;;  %v1142_v7 = vpop.f32.mrb[35].mxu0 }
 0x2d5   : > { %v1218_v9 = vmul.f32 0.1, %v1140_v3  ;;  %v1143_v10 = vadd.f32 %v2508_v43, %v1142_v7 }
 0x2d6   : > { %v1221_v13 = vmul.f32 0.1, %v1151_v6  ;;  %1325 = vmax.xlane.f32.xlu0 %v2605_v12  ;;  %v1252_v17 = vmax.f32 %v1148_v61, %v1220_v5 }
 0x2d7   : > { %v1219_v18 = vmul.f32 0.1, %v1143_v10  ;;  %1327 = vmax.xlane.f32.xlu1 %v2610_v15  ;;  %v1250_v1 = vmax.f32 %v1140_v3, %v1218_v9 }
 0x2d8   : > { %v2615_v19 = vsel %vm1268_vm1, %v1252_v17, -1e+30  ;;  %v1253_v21 = vmax.f32 %v1151_v6, %v1221_v13 }
 0x2d9   : > { %v1943_v22 = vpop.f32.mrb[36].mxu0  ;;  %v1251_v24 = vmax.f32 %v1143_v10, %v1219_v18  ;;  %v2629_v35 = vsel %vm1268_vm1, %v1250_v1, -1e+30 }
 0x2da   : > { %v1164_v47 = vadd.f32 %v1943_v22, %v2508_v43  ;;  %v1155_v41 = vpop.f32.mrb[37].mxu0  ;;  %1337 = vmax.xlane.f32.xlu0 %v2615_v19  ;;  %v2621_v20 = vsel %vm1268_vm1, %v1253_v21, -1e+30 }
 0x2db   : > { %v1156_v25 = vadd.f32 %v2508_v43, %v1155_v41  ;;  %v1944_v26 = vpop.f32.mrb[38].mxu0  ;;  %1339 = vmax.xlane.f32.xlu1 %v2621_v20  ;;  %v2634_v37 = vsel %vm1268_vm1, %v1251_v24, -1e+30 }
 0x2dc   : > { %v1224_v27 = vmul.f32 0.1, %v1164_v47  ;;  %v1167_v29 = vadd.f32 %v1944_v26, %v2508_v43  ;;  %v1158_v31 = vpop.f32.mrb[39].mxu0 }
 0x2dd   : > { %v1222_v32 = vmul.f32 0.1, %v1156_v25  ;;  %v1159_v34 = vadd.f32 %v2508_v43, %v1158_v31 }
 0x2de   : > { %v1225_v36 = vmul.f32 0.1, %v1167_v29  ;;  %1333 = vmax.xlane.f32.xlu0 %v2629_v35  ;;  %v1256_v38 = vmax.f32 %v1164_v47, %v1224_v27 }
 0x2df   : > { %v1223_v40 = vmul.f32 0.1, %v1159_v34  ;;  %1335 = vmax.xlane.f32.xlu1 %v2634_v37  ;;  %v1254_v46 = vmax.f32 %v1156_v25, %v1222_v32 }
 0x2e0   : > { %v2639_v42 = vsel %vm1268_vm1, %v1256_v38, -1e+30  ;;  %v1257_v44 = vmax.f32 %v1167_v29, %v1225_v36 }
 0x2e1   : > { %v1947_v45 = vpop.f32.mrb[40].mxu0  ;;  %v1255_v52 = vmax.f32 %v1159_v34, %v1223_v40  ;;  %v2653_v2 = vsel %vm1268_vm1, %v1254_v46, -1e+30 }
 0x2e2   : > { %v1180_v48 = vadd.f32 %v1947_v45, %v2508_v43  ;;  %v1171_v49 = vpop.f32.mrb[41].mxu0  ;;  %1345 = vmax.xlane.f32.xlu0 %v2639_v42  ;;  %v2645_v50 = vsel %vm1268_vm1, %v1257_v44, -1e+30 }
 0x2e3   : > { %v1172_v54 = vadd.f32 %v2508_v43, %v1171_v49  ;;  %v1948_v55 = vpop.f32.mrb[42].mxu0  ;;  %1347 = vmax.xlane.f32.xlu1 %v2645_v50  ;;  %v2658_v4 = vsel %vm1268_vm1, %v1255_v52, -1e+30 }
 0x2e4   : > { %v1228_v57 = vmul.f32 0.1, %v1180_v48  ;;  %v1183_v58 = vadd.f32 %v1948_v55, %v2508_v43  ;;  %v1174_v60 = vpop.f32.mrb[43].mxu0 }
 0x2e5   : > { %v1226_v61 = vmul.f32 0.1, %v1172_v54  ;;  %v1175_v63 = vadd.f32 %v2508_v43, %v1174_v60 }
 0x2e6   : > { %v1229_v3 = vmul.f32 0.1, %v1183_v58  ;;  %1341 = vmax.xlane.f32.xlu0 %v2653_v2  ;;  %v1260_v5 = vmax.f32 %v1180_v48, %v1228_v57 }
 0x2e7   : > { %v1227_v6 = vmul.f32 0.1, %v1175_v63  ;;  %1343 = vmax.xlane.f32.xlu1 %v2658_v4  ;;  %v1258_v13 = vmax.f32 %v1172_v54, %v1226_v61 }
 0x2e8   : > { %v2663_v7 = vsel %vm1268_vm1, %v1260_v5, -1e+30  ;;  %v1261_v9 = vmax.f32 %v1183_v58, %v1229_v3 }
 0x2e9   : > { %v1951_v10 = vpop.f32.mrb[44].mxu0  ;;  %v1259_v22 = vmax.f32 %v1175_v63, %v1227_v6  ;;  %v2677_v29 = vsel %vm1268_vm1, %v1258_v13, -1e+30 }
 0x2ea   : > { %v1196_v17 = vadd.f32 %v1951_v10, %v2508_v43  ;;  %v1187_v18 = vpop.f32.mrb[45].mxu0  ;;  %1353 = vmax.xlane.f32.xlu0 %v2663_v7  ;;  %v2669_v21 = vsel %vm1268_vm1, %v1261_v9, -1e+30 }
 0x2eb   : > { %v1188_v1 = vadd.f32 %v2508_v43, %v1187_v18  ;;  %v1952_v47 = vpop.f32.mrb[46].mxu0  ;;  %1355 = vmax.xlane.f32.xlu1 %v2669_v21  ;;  %v2682_v31 = vsel %vm1268_vm1, %v1259_v22, -1e+30 }
 0x2ec   : > { %v1199_v41 = vadd.f32 %v1952_v47, %v2508_v43  ;;  %v1190_v24 = vpop.f32.mrb[47].mxu0  ;;  %v1232_v25 = vmul.f32 0.1, %v1196_v17 }
 0x2ed   : > { %v1230_v26 = vmul.f32 0.1, %v1188_v1  ;;  %v1191_v27 = vadd.f32 %v2508_v43, %v1190_v24 }
 0x2ee   : > { %1349 = vmax.xlane.f32.xlu0 %v2677_v29  ;;  %v1233_v32 = vmul.f32 0.1, %v1199_v41  ;;  %v1264_v40 = vmax.f32 %v1196_v17, %v1232_v25 }
 0x2ef   : > { %v1231_v34 = vmul.f32 0.1, %v1191_v27  ;;  %1351 = vmax.xlane.f32.xlu1 %v2682_v31  ;;  %v1262_v36 = vmax.f32 %v1188_v1, %v1230_v26 }
 0x2f0   : > { %v1265_v45 = vmax.f32 %v1199_v41, %v1233_v32  ;;  %v2697_v46 = vsel %vm1268_vm1, %v1264_v40, -1e+30 }
 0x2f1   : > { %v2687_v38 = vsel %vm1268_vm1, %v1262_v36, -1e+30  ;;  %v1263_v43 = vmax.f32 %v1191_v27, %v1231_v34 }
 0x2f2   : > { %1357 = vmax.xlane.f32.xlu0 %v2687_v38  ;;  %v2702_v48 = vsel %vm1268_vm1, %v1265_v45, -1e+30 }
 0x2f3   : > { %v2692_v44 = vsel %vm1268_vm1, %v1263_v43, -1e+30 }
 0x2f4   : > { %1359 = vmax.xlane.f32.xlu1 %v2692_v44 }
 0x2f6   : > { %1361 = vmax.xlane.f32.xlu0 %v2697_v46 }
 0x2f8   : > { %1363 = vmax.xlane.f32.xlu1 %v2702_v48 }
 0x346   : > { %v1306_v49 = vpop.xlane.xlu1 %1305 }
 0x347   : > { %v1367_v52 = vsub.f32 %v2519_v59, %v1306_v49  ;;  %v1302_v54 = vpop.xlane.xlu0 %1301 }
 0x348   : > { %v1365_v55 = vsub.f32 %v2524_v62, %v1302_v54 }
 0x349   : > { %v1401_v57 = vmul.f32 1.442695, %v1367_v52 }
 0x34a   : > { %v1397_v58 = vmul.f32 1.442695, %v1365_v55  ;;  %v1308_v60 = vpop.xlane.xlu1 %1307 }
 0x34b   : > { %2022 = vpow2.f32 %v1401_v57  ;;  %v1368_v61 = vsub.f32 %v2532_v8, %v1308_v60  ;;  %v1304_v63 = vpop.xlane.xlu0 %1303 }
 0x34c   : > { %v1366_v3 = vsub.f32 %v2538_v11, %v1304_v63  ;;  %2024 = vpow2.f32 %v1397_v58 }
 0x34d   : > { %v1403_v14 = vmul.f32 1.442695, %v1368_v61 }
 0x34e   : > { %v1399_v5 = vmul.f32 1.442695, %v1366_v3 }
 0x34f   : > { %2026 = vpow2.f32 %v1403_v14  ;;  %v1314_v6 = vpop.xlane.xlu0 %1313 }
 0x350   : > { %v1371_v9 = vsub.f32 %v2543_v16, %v1314_v6  ;;  %v1316_v59 = vpop.xlane.xlu1 %1315  ;;  %2028 = vpow2.f32 %v1399_v5 }
 0x351   : > { %v1372_v10 = vsub.f32 %v2549_v23, %v1316_v59 }
 0x352   : > { %v1409_v62 = vmul.f32 1.442695, %v1371_v9 }
 0x353   : > { %v1411_v13 = vmul.f32 1.442695, %v1372_v10  ;;  %v1310_v17 = vpop.xlane.xlu0 %1309 }
 0x354   : > { %2030 = vpow2.f32 %v1409_v62  ;;  %v1369_v8 = vsub.f32 %v2557_v28, %v1310_v17  ;;  %v1312_v18 = vpop.xlane.xlu1 %1311 }
 0x355   : > { %v2712_v22 = vpop.eup %2022  ;;  %v1370_v11 = vsub.f32 %v2562_v30, %v1312_v18  ;;  %2032 = vpow2.f32 %v1411_v13 }
 0x356   : > { %v1405_v1 = vmul.f32 1.442695, %v1369_v8  ;;  %1465 = vadd.xlane.f32.xlu0 %v2712_v22  ;;  %v2716_v41 = vpop.eup %2024 }
 0x357   : > { %v1407_v16 = vmul.f32 1.442695, %v1370_v11  ;;  %v1322_v47 = vpop.xlane.xlu0 %1321 }
 0x358   : > { %2034 = vpow2.f32 %v1405_v1  ;;  %v1375_v23 = vsub.f32 %v2567_v33, %v1322_v47  ;;  %v1324_v24 = vpop.xlane.xlu1 %1323 }
 0x359   : > { %v2719_v25 = vpop.eup %2026  ;;  %v1376_v28 = vsub.f32 %v2573_v39, %v1324_v24  ;;  %2036 = vpow2.f32 %v1407_v16 }
 0x35a   : > { %v1417_v26 = vmul.f32 1.442695, %v1375_v23  ;;  %1467 = vadd.xlane.f32.xlu1 %v2719_v25  ;;  %1461 = vadd.xlane.f32.xlu0 %v2716_v41  ;;  %v2725_v36 = vpop.eup %2028 }
 0x35b   : > { %v1419_v30 = vmul.f32 1.442695, %v1376_v28  ;;  %v1318_v27 = vpop.xlane.xlu0 %1317 }
 0x35c   : > { %2038 = vpow2.f32 %v1417_v26  ;;  %v1373_v32 = vsub.f32 %v2581_v51, %v1318_v27  ;;  %v1320_v34 = vpop.xlane.xlu1 %1319 }
 0x35d   : > { %v1374_v33 = vsub.f32 %v2586_v53, %v1320_v34  ;;  %2040 = vpow2.f32 %v1419_v30 }
 0x35e   : > { %v2728_v43 = vpop.eup %2030  ;;  %v1413_v40 = vmul.f32 1.442695, %v1373_v32  ;;  %1463 = vadd.xlane.f32.xlu1 %v2725_v36 }
 0x35f   : > { %v1415_v39 = vmul.f32 1.442695, %v1374_v33  ;;  %1473 = vadd.xlane.f32.xlu0 %v2728_v43  ;;  %v1330_v45 = vpop.xlane.xlu0 %1329  ;;  %v2733_v51 = vpop.eup %2032 }
 0x360   : > { %2042 = vpow2.f32 %v1413_v40  ;;  %v1379_v49 = vsub.f32 %v2591_v56, %v1330_v45  ;;  %v1332_v52 = vpop.xlane.xlu1 %1331 }
 0x361   : > { %v1380_v54 = vsub.f32 %v2597_v0, %v1332_v52  ;;  %2044 = vpow2.f32 %v1415_v39 }
 0x362   : > { %v2736_v55 = vpop.eup %2034  ;;  %v1425_v53 = vmul.f32 1.442695, %v1379_v49  ;;  %1475 = vadd.xlane.f32.xlu1 %v2733_v51 }
 0x363   : > { %v1427_v57 = vmul.f32 1.442695, %v1380_v54  ;;  %1469 = vadd.xlane.f32.xlu0 %v2736_v55  ;;  %v1326_v58 = vpop.xlane.xlu0 %1325  ;;  %v2741_v56 = vpop.eup %2036 }
 0x364   : > { %2046 = vpow2.f32 %v1425_v53  ;;  %v1377_v60 = vsub.f32 %v2605_v12, %v1326_v58  ;;  %v1328_v61 = vpop.xlane.xlu1 %1327 }
 0x365   : > { %v1378_v63 = vsub.f32 %v2610_v15, %v1328_v61  ;;  %2048 = vpow2.f32 %v1427_v57 }
 0x366   : > { %v2744_v3 = vpop.eup %2038  ;;  %v1421_v0 = vmul.f32 1.442695, %v1377_v60  ;;  %1471 = vadd.xlane.f32.xlu1 %v2741_v56 }
 0x367   : > { %v1423_v14 = vmul.f32 1.442695, %v1378_v63  ;;  %1481 = vadd.xlane.f32.xlu0 %v2744_v3  ;;  %v1338_v5 = vpop.xlane.xlu0 %1337  ;;  %v2749_v12 = vpop.eup %2040 }
 0x368   : > { %2050 = vpow2.f32 %v1421_v0  ;;  %v1383_v6 = vsub.f32 %v2615_v19, %v1338_v5  ;;  %v1340_v9 = vpop.xlane.xlu1 %1339 }
 0x369   : > { %v1384_v59 = vsub.f32 %v2621_v20, %v1340_v9  ;;  %2052 = vpow2.f32 %v1423_v14 }
 0x36a   : > { %v2752_v10 = vpop.eup %2042  ;;  %v1433_v15 = vmul.f32 1.442695, %v1383_v6  ;;  %1483 = vadd.xlane.f32.xlu1 %v2749_v12 }
 0x36b   : > { %v1435_v62 = vmul.f32 1.442695, %v1384_v59  ;;  %1477 = vadd.xlane.f32.xlu0 %v2752_v10  ;;  %v1334_v13 = vpop.xlane.xlu0 %1333  ;;  %v2757_v19 = vpop.eup %2044 }
 0x36c   : > { %2054 = vpow2.f32 %v1433_v15  ;;  %v1381_v17 = vsub.f32 %v2629_v35, %v1334_v13  ;;  %v1336_v8 = vpop.xlane.xlu1 %1335 }
 0x36d   : > { %v1382_v18 = vsub.f32 %v2634_v37, %v1336_v8  ;;  %2056 = vpow2.f32 %v1435_v62 }
 0x36e   : > { %v2760_v11 = vpop.eup %2046  ;;  %v1429_v20 = vmul.f32 1.442695, %v1381_v17  ;;  %1479 = vadd.xlane.f32.xlu1 %v2757_v19 }
 0x36f   : > { %v1431_v1 = vmul.f32 1.442695, %v1382_v18  ;;  %1489 = vadd.xlane.f32.xlu0 %v2760_v11  ;;  %v1346_v16 = vpop.xlane.xlu0 %1345  ;;  %v2765_v35 = vpop.eup %2048 }
 0x370   : > { %2058 = vpow2.f32 %v1429_v20  ;;  %v1387_v47 = vsub.f32 %v2639_v42, %v1346_v16  ;;  %v1348_v23 = vpop.xlane.xlu1 %1347 }
 0x371   : > { %v1388_v24 = vsub.f32 %v2645_v50, %v1348_v23  ;;  %2060 = vpow2.f32 %v1431_v1 }
 0x372   : > { %v2768_v28 = vpop.eup %2050  ;;  %v1441_v37 = vmul.f32 1.442695, %v1387_v47  ;;  %1491 = vadd.xlane.f32.xlu1 %v2765_v35 }
 0x373   : > { %v1443_v26 = vmul.f32 1.442695, %v1388_v24  ;;  %1485 = vadd.xlane.f32.xlu0 %v2768_v28  ;;  %v1342_v30 = vpop.xlane.xlu0 %1341  ;;  %v2773_v42 = vpop.eup %2052 }
 0x374   : > { %2062 = vpow2.f32 %v1441_v37  ;;  %v1385_v27 = vsub.f32 %v2653_v2, %v1342_v30  ;;  %v1344_v32 = vpop.xlane.xlu1 %1343 }
 0x375   : > { %v1386_v34 = vsub.f32 %v2658_v4, %v1344_v32  ;;  %2064 = vpow2.f32 %v1443_v26 }
 0x376   : > { %v2776_v33 = vpop.eup %2054  ;;  %v1437_v50 = vmul.f32 1.442695, %v1385_v27  ;;  %1487 = vadd.xlane.f32.xlu1 %v2773_v42 }
 0x377   : > { %v1439_v40 = vmul.f32 1.442695, %v1386_v34  ;;  %1497 = vadd.xlane.f32.xlu0 %v2776_v33  ;;  %v1354_v39 = vpop.xlane.xlu0 %1353  ;;  %v2781_v2 = vpop.eup %2056 }
 0x378   : > { %2066 = vpow2.f32 %v1437_v50  ;;  %v1391_v45 = vsub.f32 %v2663_v7, %v1354_v39  ;;  %v1356_v49 = vpop.xlane.xlu1 %1355 }
 0x379   : > { %v1392_v52 = vsub.f32 %v2669_v21, %v1356_v49  ;;  %2068 = vpow2.f32 %v1439_v40 }
 0x37a   : > { %v2784_v54 = vpop.eup %2058  ;;  %v1449_v4 = vmul.f32 1.442695, %v1391_v45  ;;  %1499 = vadd.xlane.f32.xlu1 %v2781_v2 }
 0x37b   : > { %v1451_v53 = vmul.f32 1.442695, %v1392_v52  ;;  %1493 = vadd.xlane.f32.xlu0 %v2784_v54  ;;  %v1350_v57 = vpop.xlane.xlu0 %1349  ;;  %v2789_v7 = vpop.eup %2060 }
 0x37c   : > { %2070 = vpow2.f32 %v1449_v4  ;;  %v1389_v58 = vsub.f32 %v2677_v29, %v1350_v57  ;;  %v1352_v60 = vpop.xlane.xlu1 %1351 }
 0x37d   : > { %v1390_v61 = vsub.f32 %v2682_v31, %v1352_v60  ;;  %2072 = vpow2.f32 %v1451_v53 }
 0x37e   : > { %v2792_v63 = vpop.eup %2062  ;;  %v1445_v21 = vmul.f32 1.442695, %v1389_v58  ;;  %1495 = vadd.xlane.f32.xlu1 %v2789_v7 }
 0x37f   : > { %v1447_v0 = vmul.f32 1.442695, %v1390_v61  ;;  %1505 = vadd.xlane.f32.xlu0 %v2792_v63  ;;  %v1358_v14 = vpop.xlane.xlu0 %1357  ;;  %v2797_v6 = vpop.eup %2064 }
 0x380   : > { %2074 = vpow2.f32 %v1445_v21  ;;  %v1393_v5 = vsub.f32 %v2687_v38, %v1358_v14 }
 0x381   : > { %v1360_v29 = vpop.xlane.xlu1 %1359  ;;  %2076 = vpow2.f32 %v1447_v0 }
 0x382   : > { %v2799_v9 = vpop.eup %2066  ;;  %v1453_v59 = vmul.f32 1.442695, %v1393_v5  ;;  %v1394_v31 = vsub.f32 %v2692_v44, %v1360_v29  ;;  %1507 = vadd.xlane.f32.xlu1 %v2797_v6 }
 0x383   : > { %1501 = vadd.xlane.f32.xlu0 %v2799_v9  ;;  %v1362_v15 = vpop.xlane.xlu0 %1361  ;;  %v2805_v17 = vpop.eup %2068 }
 0x384   : > { %2078 = vpow2.f32 %v1453_v59  ;;  %v1455_v62 = vmul.f32 1.442695, %v1394_v31  ;;  %v1395_v13 = vsub.f32 %v2697_v46, %v1362_v15 }
 0x385   : > { %v1364_v38 = vpop.xlane.xlu1 %1363 }
 0x386   : > { %v2807_v8 = vpop.eup %2070  ;;  %2080 = vpow2.f32 %v1455_v62  ;;  %v1457_v18 = vmul.f32 1.442695, %v1395_v13  ;;  %v1396_v20 = vsub.f32 %v2702_v48, %v1364_v38  ;;  %1503 = vadd.xlane.f32.xlu1 %v2805_v17 }
 0x387   : > { %1513 = vadd.xlane.f32.xlu0 %v2807_v8  ;;  %v2812_v1 = vpop.eup %2072 }
 0x388   : > { %2082 = vpow2.f32 %v1457_v18  ;;  %v1459_v44 = vmul.f32 1.442695, %v1396_v20 }
 0x38a   : > { %v2814_v16 = vpop.eup %2074  ;;  %2084 = vpow2.f32 %v1459_v44  ;;  %1515 = vadd.xlane.f32.xlu1 %v2812_v1 }
 0x38b   : > { %1509 = vadd.xlane.f32.xlu0 %v2814_v16  ;;  %v2818_v46 = vpop.eup %2076 }
 0x38e   : > { %v2820_v47 = vpop.eup %2078  ;;  %1511 = vadd.xlane.f32.xlu1 %v2818_v46 }
 0x38f   : > { %1517 = vadd.xlane.f32.xlu0 %v2820_v47 }
 0x390   : > { %v2824_v48 = vpop.eup %2080 }
 0x392   : > { %v2826_v23 = vpop.eup %2082  ;;  %1519 = vadd.xlane.f32.xlu1 %v2824_v48 }
 0x393   : > { %1521 = vadd.xlane.f32.xlu0 %v2826_v23 }
 0x394   : > { %v2830_v24 = vpop.eup %2084 }
 0x396   : > { %1523 = vadd.xlane.f32.xlu1 %v2830_v24 }
 0x3e3   : > { %v1466_v37 = vpop.xlane.xlu0 %1465 }
 0x3e4   : > { %2086 = vrcp.f32 %v1466_v37 }
 0x3e7   : > { %v1468_v26 = vpop.xlane.xlu1 %1467  ;;  %v1462_v30 = vpop.xlane.xlu0 %1461 }
 0x3e8   : > { %2088 = vrcp.f32 %v1468_v26 }
 0x3e9   : > { %2090 = vrcp.f32 %v1462_v30 }
 0x3eb   : > { %v1464_v27 = vpop.xlane.xlu1 %1463 }
 0x3ec   : > { %2092 = vrcp.f32 %v1464_v27  ;;  %v1474_v32 = vpop.xlane.xlu0 %1473 }
 0x3ed   : > { %2094 = vrcp.f32 %v1474_v32 }
 0x3ee   : > { %v2087_v34 = vpop.eup %2086 }
 0x3ef   : > { %v1530_v50 = vmul.f32 %v2087_v34, %v2712_v22  ;;  %v1476_v40 = vpop.xlane.xlu1 %1475 }
 0x3f0   : > { %2096 = vrcp.f32 %v1476_v40  ;;  %v1470_v39 = vpop.xlane.xlu0 %1469 }
 0x3f1   : > { %1591 = vst [vmem:[%s2837_s8 + $0x10] sm:$0xff] %v1530_v50  ;;  %2098 = vrcp.f32 %v1470_v39 }
 0x3f2   : > { %v2089_v45 = vpop.eup %2088 }
 0x3f3   : > { %v2091_v49 = vpop.eup %2090  ;;  %v1532_v52 = vmul.f32 %v2089_v45, %v2719_v25  ;;  %v1472_v4 = vpop.xlane.xlu1 %1471 }
 0x3f4   : > { %v1526_v53 = vmul.f32 %v2091_v49, %v2716_v41  ;;  %2100 = vrcp.f32 %v1472_v4  ;;  %v1482_v22 = vpop.xlane.xlu0 %1481 }
 0x3f5   : > { %1592 = vst [vmem:[%s2837_s8 + $0x18] sm:$0xff] %v1532_v52  ;;  %2102 = vrcp.f32 %v1482_v22 }
 0x3f6   : > { %v2093_v57 = vpop.eup %2092  ;;  %1589 = vst [vmem:[%s2837_s8] sm:$0xff] %v1526_v53 }
 0x3f7   : > { %v2095_v58 = vpop.eup %2094  ;;  %v1528_v60 = vmul.f32 %v2093_v57, %v2725_v36  ;;  %v1484_v61 = vpop.xlane.xlu1 %1483 }
 0x3f8   : > { %v1538_v21 = vmul.f32 %v2095_v58, %v2728_v43  ;;  %2104 = vrcp.f32 %v1484_v61  ;;  %v1478_v25 = vpop.xlane.xlu0 %1477 }
 0x3f9   : > { %1590 = vst [vmem:[%s2837_s8 + $0x8] sm:$0xff] %v1528_v60  ;;  %2106 = vrcp.f32 %v1478_v25 }
 0x3fa   : > { %v2097_v41 = vpop.eup %2096  ;;  %1595 = vst [vmem:[%s2837_s8 + $0x30] sm:$0xff] %v1538_v21 }
 0x3fb   : > { %v2099_v0 = vpop.eup %2098  ;;  %v1540_v14 = vmul.f32 %v2097_v41, %v2733_v51  ;;  %v1480_v5 = vpop.xlane.xlu1 %1479 }
 0x3fc   : > { %v1534_v29 = vmul.f32 %v2099_v0, %v2736_v55  ;;  %2108 = vrcp.f32 %v1480_v5  ;;  %v1490_v36 = vpop.xlane.xlu0 %1489 }
 0x3fd   : > { %1596 = vst [vmem:[%s2837_s8 + $0x38] sm:$0xff] %v1540_v14  ;;  %2110 = vrcp.f32 %v1490_v36 }
 0x3fe   : > { %v2101_v43 = vpop.eup %2100  ;;  %1593 = vst [vmem:[%s2837_s8 + $0x20] sm:$0xff] %v1534_v29 }
 0x3ff   : > { %v2103_v59 = vpop.eup %2102  ;;  %v1536_v31 = vmul.f32 %v2101_v43, %v2741_v56  ;;  %v1492_v15 = vpop.xlane.xlu1 %1491 }
 0x400   : > { %v1546_v62 = vmul.f32 %v2103_v59, %v2744_v3  ;;  %2112 = vrcp.f32 %v1492_v15  ;;  %v1486_v51 = vpop.xlane.xlu0 %1485 }
 0x401   : > { %1594 = vst [vmem:[%s2837_s8 + $0x28] sm:$0xff] %v1536_v31  ;;  %2114 = vrcp.f32 %v1486_v51 }
 0x402   : > { %v2105_v55 = vpop.eup %2104  ;;  %1599 = vst [vmem:[%s2837_s8 + $0x50] sm:$0xff] %v1546_v62 }
 0x403   : > { %v2107_v13 = vpop.eup %2106  ;;  %v1548_v38 = vmul.f32 %v2105_v55, %v2749_v12  ;;  %v1488_v18 = vpop.xlane.xlu1 %1487 }
 0x404   : > { %v1542_v20 = vmul.f32 %v2107_v13, %v2752_v10  ;;  %2116 = vrcp.f32 %v1488_v18  ;;  %v1498_v56 = vpop.xlane.xlu0 %1497 }
 0x405   : > { %1600 = vst [vmem:[%s2837_s8 + $0x58] sm:$0xff] %v1548_v38  ;;  %2118 = vrcp.f32 %v1498_v56 }
 0x406   : > { %v2109_v3 = vpop.eup %2108  ;;  %1597 = vst [vmem:[%s2837_s8 + $0x40] sm:$0xff] %v1542_v20 }
 0x407   : > { %v2111_v44 = vpop.eup %2110  ;;  %v1544_v37 = vmul.f32 %v2109_v3, %v2757_v19  ;;  %v1500_v26 = vpop.xlane.xlu1 %1499 }
 0x408   : > { %v1554_v30 = vmul.f32 %v2111_v44, %v2760_v11  ;;  %2120 = vrcp.f32 %v1500_v26  ;;  %v1494_v12 = vpop.xlane.xlu0 %1493 }
 0x409   : > { %1598 = vst [vmem:[%s2837_s8 + $0x48] sm:$0xff] %v1544_v37  ;;  %2122 = vrcp.f32 %v1494_v12 }
 0x40a   : > { %v2113_v10 = vpop.eup %2112  ;;  %1603 = vst [vmem:[%s2837_s8 + $0x70] sm:$0xff] %v1554_v30 }
 0x40b   : > { %v2115_v27 = vpop.eup %2114  ;;  %v1556_v32 = vmul.f32 %v2113_v10, %v2765_v35  ;;  %v1496_v34 = vpop.xlane.xlu1 %1495 }
 0x40c   : > { %v1550_v50 = vmul.f32 %v2115_v27, %v2768_v28  ;;  %2124 = vrcp.f32 %v1496_v34  ;;  %v1506_v19 = vpop.xlane.xlu0 %1505 }
 0x40d   : > { %1604 = vst [vmem:[%s2837_s8 + $0x78] sm:$0xff] %v1556_v32  ;;  %2126 = vrcp.f32 %v1506_v19 }
 0x40e   : > { %v2117_v11 = vpop.eup %2116  ;;  %1601 = vst [vmem:[%s2837_s8 + $0x60] sm:$0xff] %v1550_v50 }
 0x40f   : > { %v2119_v40 = vpop.eup %2118  ;;  %v1552_v39 = vmul.f32 %v2117_v11, %v2773_v42  ;;  %v1508_v45 = vpop.xlane.xlu1 %1507 }
 0x410   : > { %v1562_v49 = vmul.f32 %v2119_v40, %v2776_v33  ;;  %2128 = vrcp.f32 %v1508_v45  ;;  %v1502_v35 = vpop.xlane.xlu0 %1501 }
 0x411   : > { %1602 = vst [vmem:[%s2837_s8 + $0x68] sm:$0xff] %v1552_v39  ;;  %2130 = vrcp.f32 %v1502_v35 }
 0x412   : > { %v2121_v28 = vpop.eup %2120  ;;  %1607 = vst [vmem:[%s2837_s8 + $0x90] sm:$0xff] %v1562_v49 }
 0x413   : > { %v2123_v52 = vpop.eup %2122  ;;  %v1564_v4 = vmul.f32 %v2121_v28, %v2781_v2  ;;  %v1504_v53 = vpop.xlane.xlu1 %1503 }
 0x414   : > { %v1558_v22 = vmul.f32 %v2123_v52, %v2784_v54  ;;  %2132 = vrcp.f32 %v1504_v53  ;;  %v1514_v42 = vpop.xlane.xlu0 %1513 }
 0x415   : > { %1608 = vst [vmem:[%s2837_s8 + $0x98] sm:$0xff] %v1564_v4  ;;  %2134 = vrcp.f32 %v1514_v42 }
 0x416   : > { %v2125_v33 = vpop.eup %2124  ;;  %1605 = vst [vmem:[%s2837_s8 + $0x80] sm:$0xff] %v1558_v22 }
 0x417   : > { %v2127_v57 = vpop.eup %2126  ;;  %v1560_v58 = vmul.f32 %v2125_v33, %v2789_v7  ;;  %v1516_v60 = vpop.xlane.xlu1 %1515 }
 0x418   : > { %v1570_v61 = vmul.f32 %v2127_v57, %v2792_v63  ;;  %2136 = vrcp.f32 %v1516_v60  ;;  %v1510_v2 = vpop.xlane.xlu0 %1509 }
 0x419   : > { %1606 = vst [vmem:[%s2837_s8 + $0x88] sm:$0xff] %v1560_v58  ;;  %2138 = vrcp.f32 %v1510_v2 }
 0x41a   : > { %v2129_v54 = vpop.eup %2128  ;;  %1611 = vst [vmem:[%s2837_s8 + $0xb0] sm:$0xff] %v1570_v61 }
 0x41b   : > { %v2131_v21 = vpop.eup %2130  ;;  %v1572_v25 = vmul.f32 %v2129_v54, %v2797_v6  ;;  %v1512_v41 = vpop.xlane.xlu1 %1511 }
 0x41c   : > { %v1566_v0 = vmul.f32 %v2131_v21, %v2799_v9  ;;  %2140 = vrcp.f32 %v1512_v41  ;;  %v1518_v7 = vpop.xlane.xlu0 %1517 }
 0x41d   : > { %1612 = vst [vmem:[%s2837_s8 + $0xb8] sm:$0xff] %v1572_v25  ;;  %2142 = vrcp.f32 %v1518_v7 }
 0x41e   : > { %v2133_v63 = vpop.eup %2132  ;;  %1609 = vst [vmem:[%s2837_s8 + $0xa0] sm:$0xff] %v1566_v0 }
 0x41f   : > { %v2135_v14 = vpop.eup %2134  ;;  %v1568_v5 = vmul.f32 %v2133_v63, %v2805_v17  ;;  %v1520_v29 = vpop.xlane.xlu1 %1519 }
 0x420   : > { %v1578_v36 = vmul.f32 %v2135_v14, %v2807_v8  ;;  %2144 = vrcp.f32 %v1520_v29  ;;  %v1522_v6 = vpop.xlane.xlu0 %1521 }
 0x421   : > { %1610 = vst [vmem:[%s2837_s8 + $0xa8] sm:$0xff] %v1568_v5  ;;  %2146 = vrcp.f32 %v1522_v6 }
 0x422   : > { %v2137_v9 = vpop.eup %2136  ;;  %1615 = vst [vmem:[%s2837_s8 + $0xd0] sm:$0xff] %v1578_v36 }
 0x423   : > { %v2139_v43 = vpop.eup %2138  ;;  %v1580_v59 = vmul.f32 %v2137_v9, %v2812_v1  ;;  %v1524_v31 = vpop.xlane.xlu1 %1523 }
 0x424   : > { %v1574_v17 = vmul.f32 %v2139_v43, %v2814_v16  ;;  %2148 = vrcp.f32 %v1524_v31 }
 0x425   : > { %1616 = vst [vmem:[%s2837_s8 + $0xd8] sm:$0xff] %v1580_v59 }
 0x426   : > { %v2141_v8 = vpop.eup %2140  ;;  %1613 = vst [vmem:[%s2837_s8 + $0xc0] sm:$0xff] %v1574_v17 }
 0x427   : > { %v2143_v15 = vpop.eup %2142  ;;  %v1576_v62 = vmul.f32 %v2141_v8, %v2818_v46 }
 0x428   : > { %v1582_v51 = vmul.f32 %v2143_v15, %v2820_v47 }
 0x429   : > { %1614 = vst [vmem:[%s2837_s8 + $0xc8] sm:$0xff] %v1576_v62 }
 0x42a   : > { %v2145_v55 = vpop.eup %2144  ;;  %1617 = vst [vmem:[%s2837_s8 + $0xe0] sm:$0xff] %v1582_v51 }
 0x42b   : > { %v2147_v1 = vpop.eup %2146  ;;  %v1584_v16 = vmul.f32 %v2145_v55, %v2824_v48 }
 0x42c   : > { %v1586_v13 = vmul.f32 %v2147_v1, %v2826_v23 }
 0x42d   : > { %1618 = vst [vmem:[%s2837_s8 + $0xe8] sm:$0xff] %v1584_v16 }
 0x42e   : > { %v2149_v38 = vpop.eup %2148  ;;  %1619 = vst [vmem:[%s2837_s8 + $0xf0] sm:$0xff] %v1586_v13 }
 0x42f   : > { %v1588_v46 = vmul.f32 %v2149_v38, %v2830_v24 }
 0x431   : > { %1620 = vst [vmem:[%s2837_s8 + $0xf8] sm:$0xff] %v1588_v46 }
 0x432   : > { %2163 = shalt.err (!%p2160_p3)
}
 0x433   : > { %s2164_s20 = scalar_lea.hbm %s2905_s15, 4096  ;;  %s2168_s29 = scalar_lea.hbm %s2961_s7, 8192 }
 0x434   : > { %p2165_p4 = scmp.ne.s32.totalorder %s2905_s15, %s2164_s20  ;;  %p2169_p9 = scmp.lt.u32.totalorder %s2905_s15, %s2961_s7 }
 0x435   : > { %p2170_p10 = scmp.lt.u32.totalorder %s2168_s29, %s2164_s20  ;;  %p2172_p12 = scmp.lt.u32.totalorder %s2164_s20, %s2905_s15 }
 0x436   : > { %p2166_p7 = pnand %p2165_p4, %p2295_p5 }
 0x437   : > { %p2171_p11 = por %p2170_p10, %p2169_p9 }
 0x438   : > { %p2167_p8 = pneg %p2166_p7 }
 0x439   : > { %p2173_p13 = por %p2172_p12, %p2171_p11 }
 0x43b   : > { %p2174_p0 = pnand %p2173_p13, %p2167_p8 }
 0x43d   : > { %2177 = shalt.err (!%p2174_p0)
}
 0x43e   : > { %s2215_s13 = smov 128   ;;  %s2216_s14 = smov 8  }
 0x43f   : > { %1961 = dma.vmem_to_hbm [thread:$0]  (%p2295_p5), %s2907_s23, 4096, %s2905_s15, %s2913_s28, %s2215_s13, %s2215_s13, %s2216_s14  }
 0x440 PF: > { %p1967_p1 = scmp.ge.s32.totalorder %s2212_s27, 2  ;;  %s1650_s16 = sand.u32 1, %s2200_s24  }
 0x441   : > { %s1651_s17 = scalar_lea.sflag [#allocation3], %s1650_s16 }
 0x442   : > { %p1964_p2 = pnand %p1967_p1, %p2299_p6 }
 0x444   : > { %2195 = dma.done.wait (!%p1964_p2), %s1651_s17, 4096  }
 0x445   : > { %2197 = vsyncadd (!%p1964_p2), %s1651_s17, 4294963200  ;;  %p17_p3 = scmp.ge.s32.totalorder %s2282_s30, 4   ;;  %s2964_s24 = smov %s2204_s25 }
 0x446   : > { %s2965_s25 = smov %s2208_s26  ;;  %s2966_s26 = smov %s2293_s10 }
 0x447   : > { %s2967_s27 = smov %s2282_s30  ;;  %19 = sbr.rel (!%p17_p3) target bundleno = 3 (0x3), region = 83 }
 0x44e   :  { %1656 = vsyncpa [#allocation3], 1 }
 0x44f   :  { %1658 = vsyncpa [#allocation3 + $0x1], 1 }

</bundles_post_ra>
